<compile_context>
chip_gen: v5e
topology: v5e:2x2
jax: 0.10.0
libtpu: 0.0.40
codegen_flags: <defaults>
</compile_context>

<pallas_src>
import functools

import numpy as np
import jax
import jax.numpy as jnp
from jax import lax
from jax.experimental import pallas as pl
from jax.experimental.pallas import tpu as pltpu

NEG_SLOPE = 0.33          # the module uses nn.LeakyReLU(0.33) everywhere
C1, C2 = 8, 64            # filblock channel counts from the module definition
OCHUNK = 16               # fN is streamed over chunks of OCHUNK of the 64 channels


def _leaky(x):
    return jnp.where(x >= 0, x, NEG_SLOPE * x)


# --------------------------------------------------------------------------
# Fused kernel: one grid step processes a batch tile of BT samples.
# Everything heavy is a 2-D MXU matmul; im2col patches and the lifted fL
# weights are prepared in the wrapper, where layout plumbing is free.
# --------------------------------------------------------------------------
def _fused_kernel(gx_ref, gxt_ref, p0_ref, p1_ref, p2_ref, p3_ref,
                  w1_ref, b1_ref, w2_ref, b2_ref,
                  w3_ref, b3_ref, w4_ref, b4_ref,
                  wn_ref, bn_ref,
                  wm0_ref, wm1_ref, wm2_ref, wm3_ref,
                  bm0_ref, bm1_ref, bm2_ref, bm3_ref,
                  wl0_ref, wl1_ref, wl2_ref, wl3_ref,
                  bl_ref, o_ref, *, nodes, hidden, bt, n_items):
    N, H, BT = nodes, hidden, bt
    NN = N * N
    p_refs = (p0_ref, p1_ref, p2_ref, p3_ref)
    wm_refs = (wm0_ref, wm1_ref, wm2_ref, wm3_ref)
    bm_refs = (bm0_ref, bm1_ref, bm2_ref, bm3_ref)
    wl_refs = (wl0_ref, wl1_ref, wl2_ref, wl3_ref)

    # Weight loads hoisted: loaded once per grid step, reused for every sample.
    w1 = w1_ref[...]; b1 = b1_ref[...]
    w2 = w2_ref[...]; b2 = b2_ref[...]
    w3 = w3_ref[...]; b3 = b3_ref[...]
    w4 = w4_ref[...]; b4 = b4_ref[...]
    wn = wn_ref[...]; bn = bn_ref[...]                            # (H, C2*N) [h,(o,j)], (H,1)
    bl = bl_ref[...]                                              # (1, 1)

    # ---- MotifC convolutions: one MXU matmul per motif size over the whole
    #      batch tile (patch columns ordered (b, item, i, j); taps zero-padded).
    convs = []
    for k in range(4):
        c = jnp.dot(wm_refs[k][...], p_refs[k][...],
                    preferred_element_type=jnp.float32) + bm_refs[k][...]
        convs.append(_leaky(c))                                   # (H, BT*n_k*N*N)

    for bb in range(BT):                                          # static unroll
        # ---------------- graph path: fN(fT(A)) ----------------
        A = gx_ref[bb]                                            # (N, N)  [i, j]
        At = gxt_ref[bb]                                          # (N, N)  [j, i]
        out1 = jnp.dot(w1, A, preferred_element_type=jnp.float32) + b1    # (C1,N) [c,j]
        out2 = jnp.dot(w2, At, preferred_element_type=jnp.float32) + b2   # (C1,N) [c,i]

        # filblock(1 -> C1) in both row arrangements (cheap VPU recompute;
        # avoids small XLU transposes).
        y1a = _leaky(out1[:, None, :] + out2[:, :, None]).reshape(C1 * N, N)  # [(c,i), j]
        y1b = _leaky(out1[:, :, None] + out2[:, None, :]).reshape(C1 * N, N)  # [(c,j), i]

        # filblock(C1 -> C2)
        o1 = jnp.dot(w3, y1a, preferred_element_type=jnp.float32) + b3    # (C2,N) [o,j]
        o2 = jnp.dot(w4, y1b, preferred_element_type=jnp.float32) + b4    # (C2,N) [o,i]

        # fN: Conv2d(C2, H, (1, N)); y2 is built and contracted in channel
        # chunks so the full (C2, N, N) intermediate never lives at once.
        fn = jnp.zeros((H, N), jnp.float32)
        for oc in range(0, C2, OCHUNK):
            y2c = _leaky(o1[oc:oc + OCHUNK, :, None]
                         + o2[oc:oc + OCHUNK, None, :])           # (OCHUNK,N,N) [o,j,i]
            fn = fn + jnp.dot(wn[:, oc * N:(oc + OCHUNK) * N],
                              y2c.reshape(OCHUNK * N, N),
                              preferred_element_type=jnp.float32)
        graph_b = _leaky(fn + bn)                                 # (H, N) [h, i]

        # ---------------- motif path: fL(MotifC(lx)) ----------------
        # The 1/n_k item-mean and the fL (1,N) conv coefficients are folded
        # into the lifted weights, so this is a pure MXU contraction.
        fl_pre = jnp.zeros((1, N), jnp.float32)
        for k in range(4):
            width = n_items[k] * NN
            ck = convs[k][:, bb * width:(bb + 1) * width]         # (H, n_k*N*N), 256-aligned slice
            for h in range(H):
                fl_pre = fl_pre + jnp.dot(ck[h:h + 1, :], wl_refs[k][h],
                                          preferred_element_type=jnp.float32)
        fl_b = _leaky(fl_pre + bl)                                # (1, N)

        # fused final add of the two branches
        o_ref[bb] = graph_b + fl_b


# --------------------------------------------------------------------------
# Parameters (deterministic, PyTorch OIHW layouts)
# --------------------------------------------------------------------------
def init_params(key, nodes, hidden):
    N, H = nodes, hidden
    ks = jax.random.split(key, 20)

    def w(k, shape, scale=0.1):
        return (scale * jax.random.normal(k, shape)).astype(jnp.float32)

    p = {}
    # fT: filblock(1, 8) then filblock(8, 64)
    p["ft1_w1"] = w(ks[0], (8, 1, N, 1));   p["ft1_b1"] = w(ks[1], (8,))
    p["ft1_w2"] = w(ks[2], (8, 1, 1, N));   p["ft1_b2"] = w(ks[3], (8,))
    p["ft2_w1"] = w(ks[4], (64, 8, N, 1));  p["ft2_b1"] = w(ks[5], (64,))
    p["ft2_w2"] = w(ks[6], (64, 8, 1, N));  p["ft2_b2"] = w(ks[7], (64,))
    # fN: Conv2d(64, H, (1, N))
    p["fn_w"] = w(ks[8], (H, 64, 1, N));    p["fn_b"] = w(ks[9], (H,))
    # fL: Conv2d(4, 1, (1, N))   (requires 4*H == 4, i.e. H == 1)
    p["fl_w"] = w(ks[10], (1, 4 * H, 1, N)); p["fl_b"] = w(ks[11], (1,))
    # MotifC convs t1..t4
    for i, kk in enumerate((3, 4, 5, 6)):
        p[f"mt{i}_w"] = w(ks[12 + 2 * i], (H, 1, kk, kk))
        p[f"mt{i}_b"] = w(ks[13 + 2 * i], (H,))
    return p


def _const_spec(arr):
    nd = arr.ndim
    return pl.BlockSpec(arr.shape, lambda t, _nd=nd: (0,) * _nd)


# --------------------------------------------------------------------------
# Wrapper: DualTopologyLearning.forward(gx, lx)  ->  (B, H, N, 1)
# --------------------------------------------------------------------------
def dual_topology_forward(params, gx, lx, *, nodes, hidden):
    N, H = nodes, hidden
    NN = N * N
    B = gx.shape[0]
    f32 = jnp.float32
    kks = (3, 4, 5, 6)

    # Batch tiling: at most two grid steps (batch halves) so both v7x TensorCores
    # get work; on v5e/v6e the extra step is ~0.35us and weights are not re-DMA'd
    # (constant index maps).  Larger B folds >1 sample per step.
    BT = B // 2 if (B >= 2 and B % 2 == 0) else B
    n_tiles = B // BT

    gxs = gx.reshape(B, N, N).astype(f32)                         # filblock .view(-1,1,N,N)
    gxt = jnp.transpose(gxs, (0, 2, 1))                           # wrapper-side layout plumbing

    # ---- graph-path weights, flattened for 2-D MXU matmuls ----
    w1 = params["ft1_w1"][:, 0, :, 0]                             # (8, N)   over i
    w2 = params["ft1_w2"][:, 0, 0, :]                             # (8, N)   over j
    b1 = params["ft1_b1"].reshape(-1, 1)
    b2 = params["ft1_b2"].reshape(-1, 1)
    w3 = params["ft2_w1"][:, :, :, 0].reshape(C2, C1 * N)         # [o, (c,i)]
    w4 = params["ft2_w2"][:, :, 0, :].reshape(C2, C1 * N)         # [o, (c,j)]
    b3 = params["ft2_b1"].reshape(-1, 1)
    b4 = params["ft2_b2"].reshape(-1, 1)
    wn = params["fn_w"][:, :, 0, :].reshape(H, C2 * N)            # [h, (o,j)]
    bn = params["fn_b"].reshape(-1, 1)

    # ---- motif path: im2col patches + lifted fL weights (wrapper-side plumbing) ----
    n_items = tuple(len(lx[k]) for k in range(4))
    # TODO(synk): the zeros_like(emb2) fallback for empty lx[2]/lx[3] with
    # use5/use6=False is not ported; this covers non-empty motif lists only.
    for k in range(4):
        assert n_items[k] > 0, "empty motif list path not ported"

    wl_all = params["fl_w"][0, :, 0, :]                           # (4H, N)
    eye = jnp.eye(N, dtype=f32)
    patches, wm, bm, wlift = [], [], [], []
    for k, kk in enumerate(kks):
        taps = kk * kk
        tpad = -(-taps // 8) * 8                                  # sublane-aligned tap count
        xk = jnp.stack([item[:, 0].astype(f32) for item in lx[k]], axis=1)   # (B, n_k, S, S)
        cols = [xk[:, :, dy:dy + N, dx:dx + N]
                for dy in range(kk) for dx in range(kk)]                     # each (B, n_k, N, N)
        pk = jnp.stack(cols, axis=0).reshape(taps, B * n_items[k] * NN)      # rows: taps, cols: (b,m,i,j)
        patches.append(jnp.pad(pk, ((0, tpad - taps), (0, 0))))
        wm.append(jnp.pad(params[f"mt{k}_w"].reshape(H, taps),
                          ((0, 0), (0, tpad - taps))))
        bm.append(params[f"mt{k}_b"].reshape(H, 1))
        # lifted fL weight:  wl_k[h, m*NN + i*N + j, i2] = (i == i2) * Wl[k*H+h, j] / n_k
        wk = wl_all[k * H:(k + 1) * H] / n_items[k]                          # (H, N)
        base = eye[None, :, None, :] * wk[:, None, :, None]                  # (H, N, N, N) [h,i,j,i2]
        lift = jnp.broadcast_to(base[:, None],
                                (H, n_items[k], N, N, N)).reshape(H, n_items[k] * NN, N)
        wlift.append(lift)
    bl = params["fl_b"].reshape(1, 1)

    in_specs = [pl.BlockSpec((BT, N, N), lambda t: (t, 0, 0)),
                pl.BlockSpec((BT, N, N), lambda t: (t, 0, 0))]
    in_specs += [pl.BlockSpec((p.shape[0], BT * n_items[k] * NN), lambda t: (0, t))
                 for k, p in enumerate(patches)]
    in_specs += [_const_spec(a) for a in (w1, b1, w2, b2, w3, b3, w4, b4, wn, bn)]
    in_specs += [_const_spec(a) for a in wm]
    in_specs += [_const_spec(a) for a in bm]
    in_specs += [_const_spec(a) for a in wlift]
    in_specs += [_const_spec(bl)]

    out = pl.pallas_call(
        functools.partial(_fused_kernel, nodes=N, hidden=H, bt=BT, n_items=n_items),
        out_shape=jax.ShapeDtypeStruct((B, H, N), f32),
        grid=(n_tiles,),
        in_specs=in_specs,
        out_specs=pl.BlockSpec((BT, H, N), lambda t: (t, 0, 0)),
        compiler_params=pltpu.CompilerParams(dimension_semantics=("parallel",)),
    )(gxs, gxt, *patches, w1, b1, w2, b2, w3, b3, w4, b4, wn, bn,
      *wm, *bm, *wlift, bl)

    # back to NCHW (B, H, N, 1)
    return out.reshape(B, H, N, 1)


# --------------------------------------------------------------------------
# Pure-JAX reference (lax.conv, mirrors the PyTorch module op-by-op)
# --------------------------------------------------------------------------
def _conv_nchw(x, w, b):
    y = lax.conv_general_dilated(x, w, (1, 1), "VALID",
                                 dimension_numbers=("NCHW", "OIHW", "NCHW"),
                                 precision=lax.Precision.HIGHEST)
    return y + b.reshape(1, -1, 1, 1)


def reference_forward(params, gx, lx, *, nodes, hidden):
    N = nodes

    def filblock(A, w1, b1, w2, b2):
        c1 = _conv_nchw(A, w1, b1)                    # (B, O, 1, N)
        c2 = _conv_nchw(A, w2, b2)                    # (B, O, N, 1)
        return (jnp.concatenate([c1] * N, axis=2)
                + jnp.concatenate([c2] * N, axis=3))

    x = gx.reshape(-1, 1, N, N)
    x = _leaky(filblock(x, params["ft1_w1"], params["ft1_b1"],
                        params["ft1_w2"], params["ft1_b2"]))
    x = _leaky(filblock(x.reshape(-1, 8, N, N), params["ft2_w1"], params["ft2_b1"],
                        params["ft2_w2"], params["ft2_b2"]))
    fn = _leaky(_conv_nchw(x, params["fn_w"], params["fn_b"]))           # (B, H, N, 1)

    embs = []
    for k in range(4):
        outs = [_leaky(_conv_nchw(item, params[f"mt{k}_w"], params[f"mt{k}_b"]))
                for item in lx[k]]
        embs.append(sum(outs) / len(lx[k]))
    m_cat = jnp.concatenate(embs, axis=1)                                # (B, 4H, N, N)
    fl = _leaky(_conv_nchw(m_cat, params["fl_w"], params["fl_b"]))       # (B, 1, N, 1)
    return fn + fl


if __name__ == "__main__":
    POOL, HIDDEN, BATCH = 16, 1, 2        # num_hidden=1: only value for which the
                                          # reference cat/fL channel counts line up
    key = jax.random.PRNGKey(0)
    keys = jax.random.split(key, 11)
    params = init_params(keys[0], POOL, HIDDEN)
    gx = jax.random.normal(keys[1], (BATCH, 1, POOL, POOL), dtype=jnp.float32)

    n_items = (3, 2, 2, 2)
    lx, idx = [], 2
    for k, kk in enumerate((3, 4, 5, 6)):
        side = POOL + kk - 1              # items sized so conv output is (N, N)
        lst = [jax.random.normal(keys[idx + m], (BATCH, 1, side, side),
                                 dtype=jnp.float32) for m in range(n_items[k])]
        idx += n_items[k]
        lx.append(lst)

    out = dual_topology_forward(params, gx, lx, nodes=POOL, hidden=HIDDEN)
    out = jax.block_until_ready(out)

    ref = reference_forward(params, gx, lx, nodes=POOL, hidden=HIDDEN)
    np.testing.assert_allclose(np.asarray(out), np.asarray(ref), rtol=2e-3, atol=2e-3)
    print("KERNEL_OK")
</pallas_src>

<mosaic_0001>
module attributes {stable_mosaic.version = 11 : i64} {
  func.func @_fused_kernel(%arg0: i32, %arg1: memref<1x16x16xf32, #tpu.memory_space<vmem>>, %arg2: memref<1x16x16xf32, #tpu.memory_space<vmem>>, %arg3: memref<16x768xf32, #tpu.memory_space<vmem>>, %arg4: memref<16x512xf32, #tpu.memory_space<vmem>>, %arg5: memref<32x512xf32, #tpu.memory_space<vmem>>, %arg6: memref<40x512xf32, #tpu.memory_space<vmem>>, %arg7: memref<8x16xf32, #tpu.memory_space<vmem>>, %arg8: memref<8x1xf32, #tpu.memory_space<vmem>>, %arg9: memref<8x16xf32, #tpu.memory_space<vmem>>, %arg10: memref<8x1xf32, #tpu.memory_space<vmem>>, %arg11: memref<64x128xf32, #tpu.memory_space<vmem>>, %arg12: memref<64x1xf32, #tpu.memory_space<vmem>>, %arg13: memref<64x128xf32, #tpu.memory_space<vmem>>, %arg14: memref<64x1xf32, #tpu.memory_space<vmem>>, %arg15: memref<1x1024xf32, #tpu.memory_space<vmem>>, %arg16: memref<1x1xf32, #tpu.memory_space<vmem>>, %arg17: memref<1x16xf32, #tpu.memory_space<vmem>>, %arg18: memref<1x16xf32, #tpu.memory_space<vmem>>, %arg19: memref<1x32xf32, #tpu.memory_space<vmem>>, %arg20: memref<1x40xf32, #tpu.memory_space<vmem>>, %arg21: memref<1x1xf32, #tpu.memory_space<vmem>>, %arg22: memref<1x1xf32, #tpu.memory_space<vmem>>, %arg23: memref<1x1xf32, #tpu.memory_space<vmem>>, %arg24: memref<1x1xf32, #tpu.memory_space<vmem>>, %arg25: memref<1x768x16xf32, #tpu.memory_space<vmem>>, %arg26: memref<1x512x16xf32, #tpu.memory_space<vmem>>, %arg27: memref<1x512x16xf32, #tpu.memory_space<vmem>>, %arg28: memref<1x512x16xf32, #tpu.memory_space<vmem>>, %arg29: memref<1x1xf32, #tpu.memory_space<vmem>>, %arg30: memref<1x1x16xf32, #tpu.memory_space<vmem>>) attributes {dimension_semantics = [#tpu.dimension_semantics<parallel>], iteration_bounds = array<i64: 2>, scalar_prefetch = 0 : i64, scratch_operands = 0 : i64, tpu.core_type = #tpu.core_type<tc>, window_params = [{transform_indices = @transform_0, window_bounds = array<i64: 1, 16, 16>}, {transform_indices = @transform_1, window_bounds = array<i64: 1, 16, 16>}, {transform_indices = @transform_2, window_bounds = array<i64: 16, 768>}, {transform_indices = @transform_3, window_bounds = array<i64: 16, 512>}, {transform_indices = @transform_4, window_bounds = array<i64: 32, 512>}, {transform_indices = @transform_5, window_bounds = array<i64: 40, 512>}, {pipeline_mode = #tpu.pipeline_mode<synchronous>, transform_indices = @transform_6, window_bounds = array<i64: 8, 16>}, {pipeline_mode = #tpu.pipeline_mode<synchronous>, transform_indices = @transform_7, window_bounds = array<i64: 8, 1>}, {pipeline_mode = #tpu.pipeline_mode<synchronous>, transform_indices = @transform_8, window_bounds = array<i64: 8, 16>}, {pipeline_mode = #tpu.pipeline_mode<synchronous>, transform_indices = @transform_9, window_bounds = array<i64: 8, 1>}, {pipeline_mode = #tpu.pipeline_mode<synchronous>, transform_indices = @transform_10, window_bounds = array<i64: 64, 128>}, {pipeline_mode = #tpu.pipeline_mode<synchronous>, transform_indices = @transform_11, window_bounds = array<i64: 64, 1>}, {pipeline_mode = #tpu.pipeline_mode<synchronous>, transform_indices = @transform_12, window_bounds = array<i64: 64, 128>}, {pipeline_mode = #tpu.pipeline_mode<synchronous>, transform_indices = @transform_13, window_bounds = array<i64: 64, 1>}, {pipeline_mode = #tpu.pipeline_mode<synchronous>, transform_indices = @transform_14, window_bounds = array<i64: 1, 1024>}, {pipeline_mode = #tpu.pipeline_mode<synchronous>, transform_indices = @transform_15, window_bounds = array<i64: 1, 1>}, {pipeline_mode = #tpu.pipeline_mode<synchronous>, transform_indices = @transform_16, window_bounds = array<i64: 1, 16>}, {pipeline_mode = #tpu.pipeline_mode<synchronous>, transform_indices = @transform_17, window_bounds = array<i64: 1, 16>}, {pipeline_mode = #tpu.pipeline_mode<synchronous>, transform_indices = @transform_18, window_bounds = array<i64: 1, 32>}, {pipeline_mode = #tpu.pipeline_mode<synchronous>, transform_indices = @transform_19, window_bounds = array<i64: 1, 40>}, {pipeline_mode = #tpu.pipeline_mode<synchronous>, transform_indices = @transform_20, window_bounds = array<i64: 1, 1>}, {pipeline_mode = #tpu.pipeline_mode<synchronous>, transform_indices = @transform_21, window_bounds = array<i64: 1, 1>}, {pipeline_mode = #tpu.pipeline_mode<synchronous>, transform_indices = @transform_22, window_bounds = array<i64: 1, 1>}, {pipeline_mode = #tpu.pipeline_mode<synchronous>, transform_indices = @transform_23, window_bounds = array<i64: 1, 1>}, {pipeline_mode = #tpu.pipeline_mode<synchronous>, transform_indices = @transform_24, window_bounds = array<i64: 1, 768, 16>}, {pipeline_mode = #tpu.pipeline_mode<synchronous>, transform_indices = @transform_25, window_bounds = array<i64: 1, 512, 16>}, {pipeline_mode = #tpu.pipeline_mode<synchronous>, transform_indices = @transform_26, window_bounds = array<i64: 1, 512, 16>}, {pipeline_mode = #tpu.pipeline_mode<synchronous>, transform_indices = @transform_27, window_bounds = array<i64: 1, 512, 16>}, {pipeline_mode = #tpu.pipeline_mode<synchronous>, transform_indices = @transform_28, window_bounds = array<i64: 1, 1>}, {transform_indices = @transform_29, window_bounds = array<i64: 1, 1, 16>}]} {
    %c0 = arith.constant 0 : index
    %c0_0 = arith.constant 0 : index
    %0 = vector.load %arg7[%c0, %c0_0] : memref<8x16xf32, #tpu.memory_space<vmem>>, vector<8x16xf32>
    %c0_1 = arith.constant 0 : index
    %c0_2 = arith.constant 0 : index
    %1 = vector.load %arg8[%c0_1, %c0_2] : memref<8x1xf32, #tpu.memory_space<vmem>>, vector<8x1xf32>
    %c0_3 = arith.constant 0 : index
    %c0_4 = arith.constant 0 : index
    %2 = vector.load %arg9[%c0_3, %c0_4] : memref<8x16xf32, #tpu.memory_space<vmem>>, vector<8x16xf32>
    %c0_5 = arith.constant 0 : index
    %c0_6 = arith.constant 0 : index
    %3 = vector.load %arg10[%c0_5, %c0_6] : memref<8x1xf32, #tpu.memory_space<vmem>>, vector<8x1xf32>
    %c0_7 = arith.constant 0 : index
    %c0_8 = arith.constant 0 : index
    %4 = vector.load %arg11[%c0_7, %c0_8] : memref<64x128xf32, #tpu.memory_space<vmem>>, vector<64x128xf32>
    %c0_9 = arith.constant 0 : index
    %c0_10 = arith.constant 0 : index
    %5 = vector.load %arg12[%c0_9, %c0_10] : memref<64x1xf32, #tpu.memory_space<vmem>>, vector<64x1xf32>
    %c0_11 = arith.constant 0 : index
    %c0_12 = arith.constant 0 : index
    %6 = vector.load %arg13[%c0_11, %c0_12] : memref<64x128xf32, #tpu.memory_space<vmem>>, vector<64x128xf32>
    %c0_13 = arith.constant 0 : index
    %c0_14 = arith.constant 0 : index
    %7 = vector.load %arg14[%c0_13, %c0_14] : memref<64x1xf32, #tpu.memory_space<vmem>>, vector<64x1xf32>
    %c0_15 = arith.constant 0 : index
    %c0_16 = arith.constant 0 : index
    %8 = vector.load %arg15[%c0_15, %c0_16] : memref<1x1024xf32, #tpu.memory_space<vmem>>, vector<1x1024xf32>
    %c0_17 = arith.constant 0 : index
    %c0_18 = arith.constant 0 : index
    %9 = vector.load %arg16[%c0_17, %c0_18] : memref<1x1xf32, #tpu.memory_space<vmem>>, vector<1x1xf32>
    %c0_19 = arith.constant 0 : index
    %c0_20 = arith.constant 0 : index
    %10 = vector.load %arg29[%c0_19, %c0_20] : memref<1x1xf32, #tpu.memory_space<vmem>>, vector<1x1xf32>
    %c0_21 = arith.constant 0 : index
    %c0_22 = arith.constant 0 : index
    %11 = vector.load %arg17[%c0_21, %c0_22] : memref<1x16xf32, #tpu.memory_space<vmem>>, vector<1x16xf32>
    %c0_23 = arith.constant 0 : index
    %c0_24 = arith.constant 0 : index
    %12 = vector.load %arg3[%c0_23, %c0_24] : memref<16x768xf32, #tpu.memory_space<vmem>>, vector<16x768xf32>
    %cst = arith.constant dense<0.000000e+00> : vector<1x768xf32>
    %13 = tpu.matmul %11, %12, %cst {dimension_numbers = #tpu.dot_dimension_numbers<[1], [0], [0], [1], [0, 0, 1, 1], [], []>} : vector<1x16xf32>, vector<16x768xf32>, vector<1x768xf32> -> vector<1x768xf32>
    %c0_25 = arith.constant 0 : index
    %c0_26 = arith.constant 0 : index
    %14 = vector.load %arg21[%c0_25, %c0_26] : memref<1x1xf32, #tpu.memory_space<vmem>>, vector<1x1xf32>
    %15 = vector.broadcast %14 : vector<1x1xf32> to vector<1x768xf32>
    %16 = arith.addf %13, %15 : vector<1x768xf32>
    %cst_27 = arith.constant 0.000000e+00 : f32
    %17 = vector.broadcast %cst_27 : f32 to vector<1x768xf32>
    %18 = arith.cmpf oge, %16, %17 : vector<1x768xf32>
    %cst_28 = arith.constant 3.300000e-01 : f32
    %19 = vector.broadcast %cst_28 : f32 to vector<1x768xf32>
    %20 = arith.mulf %19, %16 : vector<1x768xf32>
    %21 = arith.select %18, %16, %20 : vector<1x768xi1>, vector<1x768xf32>
    %c0_29 = arith.constant 0 : index
    %c0_30 = arith.constant 0 : index
    %22 = vector.load %arg18[%c0_29, %c0_30] : memref<1x16xf32, #tpu.memory_space<vmem>>, vector<1x16xf32>
    %c0_31 = arith.constant 0 : index
    %c0_32 = arith.constant 0 : index
    %23 = vector.load %arg4[%c0_31, %c0_32] : memref<16x512xf32, #tpu.memory_space<vmem>>, vector<16x512xf32>
    %cst_33 = arith.constant dense<0.000000e+00> : vector<1x512xf32>
    %24 = tpu.matmul %22, %23, %cst_33 {dimension_numbers = #tpu.dot_dimension_numbers<[1], [0], [0], [1], [0, 0, 1, 1], [], []>} : vector<1x16xf32>, vector<16x512xf32>, vector<1x512xf32> -> vector<1x512xf32>
    %c0_34 = arith.constant 0 : index
    %c0_35 = arith.constant 0 : index
    %25 = vector.load %arg22[%c0_34, %c0_35] : memref<1x1xf32, #tpu.memory_space<vmem>>, vector<1x1xf32>
    %26 = vector.broadcast %25 : vector<1x1xf32> to vector<1x512xf32>
    %27 = arith.addf %24, %26 : vector<1x512xf32>
    %cst_36 = arith.constant 0.000000e+00 : f32
    %28 = vector.broadcast %cst_36 : f32 to vector<1x512xf32>
    %29 = arith.cmpf oge, %27, %28 : vector<1x512xf32>
    %cst_37 = arith.constant 3.300000e-01 : f32
    %30 = vector.broadcast %cst_37 : f32 to vector<1x512xf32>
    %31 = arith.mulf %30, %27 : vector<1x512xf32>
    %32 = arith.select %29, %27, %31 : vector<1x512xi1>, vector<1x512xf32>
    %c0_38 = arith.constant 0 : index
    %c0_39 = arith.constant 0 : index
    %33 = vector.load %arg19[%c0_38, %c0_39] : memref<1x32xf32, #tpu.memory_space<vmem>>, vector<1x32xf32>
    %c0_40 = arith.constant 0 : index
    %c0_41 = arith.constant 0 : index
    %34 = vector.load %arg5[%c0_40, %c0_41] : memref<32x512xf32, #tpu.memory_space<vmem>>, vector<32x512xf32>
    %cst_42 = arith.constant dense<0.000000e+00> : vector<1x512xf32>
    %35 = tpu.matmul %33, %34, %cst_42 {dimension_numbers = #tpu.dot_dimension_numbers<[1], [0], [0], [1], [0, 0, 1, 1], [], []>} : vector<1x32xf32>, vector<32x512xf32>, vector<1x512xf32> -> vector<1x512xf32>
    %c0_43 = arith.constant 0 : index
    %c0_44 = arith.constant 0 : index
    %36 = vector.load %arg23[%c0_43, %c0_44] : memref<1x1xf32, #tpu.memory_space<vmem>>, vector<1x1xf32>
    %37 = vector.broadcast %36 : vector<1x1xf32> to vector<1x512xf32>
    %38 = arith.addf %35, %37 : vector<1x512xf32>
    %cst_45 = arith.constant 0.000000e+00 : f32
    %39 = vector.broadcast %cst_45 : f32 to vector<1x512xf32>
    %40 = arith.cmpf oge, %38, %39 : vector<1x512xf32>
    %cst_46 = arith.constant 3.300000e-01 : f32
    %41 = vector.broadcast %cst_46 : f32 to vector<1x512xf32>
    %42 = arith.mulf %41, %38 : vector<1x512xf32>
    %43 = arith.select %40, %38, %42 : vector<1x512xi1>, vector<1x512xf32>
    %c0_47 = arith.constant 0 : index
    %c0_48 = arith.constant 0 : index
    %44 = vector.load %arg20[%c0_47, %c0_48] : memref<1x40xf32, #tpu.memory_space<vmem>>, vector<1x40xf32>
    %c0_49 = arith.constant 0 : index
    %c0_50 = arith.constant 0 : index
    %45 = vector.load %arg6[%c0_49, %c0_50] : memref<40x512xf32, #tpu.memory_space<vmem>>, vector<40x512xf32>
    %cst_51 = arith.constant dense<0.000000e+00> : vector<1x512xf32>
    %46 = tpu.matmul %44, %45, %cst_51 {dimension_numbers = #tpu.dot_dimension_numbers<[1], [0], [0], [1], [0, 0, 1, 1], [], []>} : vector<1x40xf32>, vector<40x512xf32>, vector<1x512xf32> -> vector<1x512xf32>
    %c0_52 = arith.constant 0 : index
    %c0_53 = arith.constant 0 : index
    %47 = vector.load %arg24[%c0_52, %c0_53] : memref<1x1xf32, #tpu.memory_space<vmem>>, vector<1x1xf32>
    %48 = vector.broadcast %47 : vector<1x1xf32> to vector<1x512xf32>
    %49 = arith.addf %46, %48 : vector<1x512xf32>
    %cst_54 = arith.constant 0.000000e+00 : f32
    %50 = vector.broadcast %cst_54 : f32 to vector<1x512xf32>
    %51 = arith.cmpf oge, %49, %50 : vector<1x512xf32>
    %cst_55 = arith.constant 3.300000e-01 : f32
    %52 = vector.broadcast %cst_55 : f32 to vector<1x512xf32>
    %53 = arith.mulf %52, %49 : vector<1x512xf32>
    %54 = arith.select %51, %49, %53 : vector<1x512xi1>, vector<1x512xf32>
    %c0_56 = arith.constant 0 : index
    %c0_57 = arith.constant 0 : index
    %c0_58 = arith.constant 0 : index
    %55 = vector.load %arg1[%c0_56, %c0_57, %c0_58] : memref<1x16x16xf32, #tpu.memory_space<vmem>>, vector<1x16x16xf32>
    %56 = vector.shape_cast %55 : vector<1x16x16xf32> to vector<16x16xf32>
    %c0_59 = arith.constant 0 : index
    %c0_60 = arith.constant 0 : index
    %c0_61 = arith.constant 0 : index
    %57 = vector.load %arg2[%c0_59, %c0_60, %c0_61] : memref<1x16x16xf32, #tpu.memory_space<vmem>>, vector<1x16x16xf32>
    %58 = vector.shape_cast %57 : vector<1x16x16xf32> to vector<16x16xf32>
    %cst_62 = arith.constant dense<0.000000e+00> : vector<8x16xf32>
    %59 = tpu.matmul %0, %56, %cst_62 {dimension_numbers = #tpu.dot_dimension_numbers<[1], [0], [0], [1], [0, 0, 1, 1], [], []>} : vector<8x16xf32>, vector<16x16xf32>, vector<8x16xf32> -> vector<8x16xf32>
    %60 = vector.broadcast %1 : vector<8x1xf32> to vector<8x16xf32>
    %61 = arith.addf %59, %60 : vector<8x16xf32>
    %cst_63 = arith.constant dense<0.000000e+00> : vector<8x16xf32>
    %62 = tpu.matmul %2, %58, %cst_63 {dimension_numbers = #tpu.dot_dimension_numbers<[1], [0], [0], [1], [0, 0, 1, 1], [], []>} : vector<8x16xf32>, vector<16x16xf32>, vector<8x16xf32> -> vector<8x16xf32>
    %63 = vector.broadcast %3 : vector<8x1xf32> to vector<8x16xf32>
    %64 = arith.addf %62, %63 : vector<8x16xf32>
    %65 = vector.shape_cast %61 : vector<8x16xf32> to vector<8x1x16xf32>
    %66 = vector.shape_cast %64 : vector<8x16xf32> to vector<8x16x1xf32>
    %67 = vector.broadcast %65 : vector<8x1x16xf32> to vector<8x16x16xf32>
    %68 = vector.broadcast %66 : vector<8x16x1xf32> to vector<8x16x16xf32>
    %69 = arith.addf %67, %68 : vector<8x16x16xf32>
    %cst_64 = arith.constant 0.000000e+00 : f32
    %70 = vector.broadcast %cst_64 : f32 to vector<8x16x16xf32>
    %71 = arith.cmpf oge, %69, %70 : vector<8x16x16xf32>
    %cst_65 = arith.constant 3.300000e-01 : f32
    %72 = vector.broadcast %cst_65 : f32 to vector<8x16x16xf32>
    %73 = arith.mulf %72, %69 : vector<8x16x16xf32>
    %74 = arith.select %71, %69, %73 : vector<8x16x16xi1>, vector<8x16x16xf32>
    %75 = vector.shape_cast %74 : vector<8x16x16xf32> to vector<128x16xf32>
    %76 = vector.shape_cast %61 : vector<8x16xf32> to vector<8x16x1xf32>
    %77 = vector.shape_cast %64 : vector<8x16xf32> to vector<8x1x16xf32>
    %78 = vector.broadcast %76 : vector<8x16x1xf32> to vector<8x16x16xf32>
    %79 = vector.broadcast %77 : vector<8x1x16xf32> to vector<8x16x16xf32>
    %80 = arith.addf %78, %79 : vector<8x16x16xf32>
    %cst_66 = arith.constant 0.000000e+00 : f32
    %81 = vector.broadcast %cst_66 : f32 to vector<8x16x16xf32>
    %82 = arith.cmpf oge, %80, %81 : vector<8x16x16xf32>
    %cst_67 = arith.constant 3.300000e-01 : f32
    %83 = vector.broadcast %cst_67 : f32 to vector<8x16x16xf32>
    %84 = arith.mulf %83, %80 : vector<8x16x16xf32>
    %85 = arith.select %82, %80, %84 : vector<8x16x16xi1>, vector<8x16x16xf32>
    %86 = vector.shape_cast %85 : vector<8x16x16xf32> to vector<128x16xf32>
    %cst_68 = arith.constant dense<0.000000e+00> : vector<64x16xf32>
    %87 = tpu.matmul %4, %75, %cst_68 {dimension_numbers = #tpu.dot_dimension_numbers<[1], [0], [0], [1], [0, 0, 1, 1], [], []>} : vector<64x128xf32>, vector<128x16xf32>, vector<64x16xf32> -> vector<64x16xf32>
    %88 = vector.broadcast %5 : vector<64x1xf32> to vector<64x16xf32>
    %89 = arith.addf %87, %88 : vector<64x16xf32>
    %cst_69 = arith.constant dense<0.000000e+00> : vector<64x16xf32>
    %90 = tpu.matmul %6, %86, %cst_69 {dimension_numbers = #tpu.dot_dimension_numbers<[1], [0], [0], [1], [0, 0, 1, 1], [], []>} : vector<64x128xf32>, vector<128x16xf32>, vector<64x16xf32> -> vector<64x16xf32>
    %91 = vector.broadcast %7 : vector<64x1xf32> to vector<64x16xf32>
    %92 = arith.addf %90, %91 : vector<64x16xf32>
    %cst_70 = arith.constant 0.000000e+00 : f32
    %93 = vector.broadcast %cst_70 : f32 to vector<1x16xf32>
    %94 = vector.extract_strided_slice %89 {offsets = [0, 0], sizes = [16, 16], strides = [1, 1]} : vector<64x16xf32> to vector<16x16xf32>
    %95 = vector.shape_cast %94 : vector<16x16xf32> to vector<16x16x1xf32>
    %96 = vector.extract_strided_slice %92 {offsets = [0, 0], sizes = [16, 16], strides = [1, 1]} : vector<64x16xf32> to vector<16x16xf32>
    %97 = vector.shape_cast %96 : vector<16x16xf32> to vector<16x1x16xf32>
    %98 = vector.broadcast %95 : vector<16x16x1xf32> to vector<16x16x16xf32>
    %99 = vector.broadcast %97 : vector<16x1x16xf32> to vector<16x16x16xf32>
    %100 = arith.addf %98, %99 : vector<16x16x16xf32>
    %cst_71 = arith.constant 0.000000e+00 : f32
    %101 = vector.broadcast %cst_71 : f32 to vector<16x16x16xf32>
    %102 = arith.cmpf oge, %100, %101 : vector<16x16x16xf32>
    %cst_72 = arith.constant 3.300000e-01 : f32
    %103 = vector.broadcast %cst_72 : f32 to vector<16x16x16xf32>
    %104 = arith.mulf %103, %100 : vector<16x16x16xf32>
    %105 = arith.select %102, %100, %104 : vector<16x16x16xi1>, vector<16x16x16xf32>
    %106 = vector.extract_strided_slice %8 {offsets = [0, 0], sizes = [1, 256], strides = [1, 1]} : vector<1x1024xf32> to vector<1x256xf32>
    %107 = vector.shape_cast %105 : vector<16x16x16xf32> to vector<256x16xf32>
    %cst_73 = arith.constant dense<0.000000e+00> : vector<1x16xf32>
    %108 = tpu.matmul %106, %107, %cst_73 {dimension_numbers = #tpu.dot_dimension_numbers<[1], [0], [0], [1], [0, 0, 1, 1], [], []>} : vector<1x256xf32>, vector<256x16xf32>, vector<1x16xf32> -> vector<1x16xf32>
    %109 = arith.addf %93, %108 : vector<1x16xf32>
    %110 = vector.extract_strided_slice %89 {offsets = [16, 0], sizes = [16, 16], strides = [1, 1]} : vector<64x16xf32> to vector<16x16xf32>
    %111 = vector.shape_cast %110 : vector<16x16xf32> to vector<16x16x1xf32>
    %112 = vector.extract_strided_slice %92 {offsets = [16, 0], sizes = [16, 16], strides = [1, 1]} : vector<64x16xf32> to vector<16x16xf32>
    %113 = vector.shape_cast %112 : vector<16x16xf32> to vector<16x1x16xf32>
    %114 = vector.broadcast %111 : vector<16x16x1xf32> to vector<16x16x16xf32>
    %115 = vector.broadcast %113 : vector<16x1x16xf32> to vector<16x16x16xf32>
    %116 = arith.addf %114, %115 : vector<16x16x16xf32>
    %cst_74 = arith.constant 0.000000e+00 : f32
    %117 = vector.broadcast %cst_74 : f32 to vector<16x16x16xf32>
    %118 = arith.cmpf oge, %116, %117 : vector<16x16x16xf32>
    %cst_75 = arith.constant 3.300000e-01 : f32
    %119 = vector.broadcast %cst_75 : f32 to vector<16x16x16xf32>
    %120 = arith.mulf %119, %116 : vector<16x16x16xf32>
    %121 = arith.select %118, %116, %120 : vector<16x16x16xi1>, vector<16x16x16xf32>
    %122 = vector.extract_strided_slice %8 {offsets = [0, 256], sizes = [1, 256], strides = [1, 1]} : vector<1x1024xf32> to vector<1x256xf32>
    %123 = vector.shape_cast %121 : vector<16x16x16xf32> to vector<256x16xf32>
    %cst_76 = arith.constant dense<0.000000e+00> : vector<1x16xf32>
    %124 = tpu.matmul %122, %123, %cst_76 {dimension_numbers = #tpu.dot_dimension_numbers<[1], [0], [0], [1], [0, 0, 1, 1], [], []>} : vector<1x256xf32>, vector<256x16xf32>, vector<1x16xf32> -> vector<1x16xf32>
    %125 = arith.addf %109, %124 : vector<1x16xf32>
    %126 = vector.extract_strided_slice %89 {offsets = [32, 0], sizes = [16, 16], strides = [1, 1]} : vector<64x16xf32> to vector<16x16xf32>
    %127 = vector.shape_cast %126 : vector<16x16xf32> to vector<16x16x1xf32>
    %128 = vector.extract_strided_slice %92 {offsets = [32, 0], sizes = [16, 16], strides = [1, 1]} : vector<64x16xf32> to vector<16x16xf32>
    %129 = vector.shape_cast %128 : vector<16x16xf32> to vector<16x1x16xf32>
    %130 = vector.broadcast %127 : vector<16x16x1xf32> to vector<16x16x16xf32>
    %131 = vector.broadcast %129 : vector<16x1x16xf32> to vector<16x16x16xf32>
    %132 = arith.addf %130, %131 : vector<16x16x16xf32>
    %cst_77 = arith.constant 0.000000e+00 : f32
    %133 = vector.broadcast %cst_77 : f32 to vector<16x16x16xf32>
    %134 = arith.cmpf oge, %132, %133 : vector<16x16x16xf32>
    %cst_78 = arith.constant 3.300000e-01 : f32
    %135 = vector.broadcast %cst_78 : f32 to vector<16x16x16xf32>
    %136 = arith.mulf %135, %132 : vector<16x16x16xf32>
    %137 = arith.select %134, %132, %136 : vector<16x16x16xi1>, vector<16x16x16xf32>
    %138 = vector.extract_strided_slice %8 {offsets = [0, 512], sizes = [1, 256], strides = [1, 1]} : vector<1x1024xf32> to vector<1x256xf32>
    %139 = vector.shape_cast %137 : vector<16x16x16xf32> to vector<256x16xf32>
    %cst_79 = arith.constant dense<0.000000e+00> : vector<1x16xf32>
    %140 = tpu.matmul %138, %139, %cst_79 {dimension_numbers = #tpu.dot_dimension_numbers<[1], [0], [0], [1], [0, 0, 1, 1], [], []>} : vector<1x256xf32>, vector<256x16xf32>, vector<1x16xf32> -> vector<1x16xf32>
    %141 = arith.addf %125, %140 : vector<1x16xf32>
    %142 = vector.extract_strided_slice %89 {offsets = [48, 0], sizes = [16, 16], strides = [1, 1]} : vector<64x16xf32> to vector<16x16xf32>
    %143 = vector.shape_cast %142 : vector<16x16xf32> to vector<16x16x1xf32>
    %144 = vector.extract_strided_slice %92 {offsets = [48, 0], sizes = [16, 16], strides = [1, 1]} : vector<64x16xf32> to vector<16x16xf32>
    %145 = vector.shape_cast %144 : vector<16x16xf32> to vector<16x1x16xf32>
    %146 = vector.broadcast %143 : vector<16x16x1xf32> to vector<16x16x16xf32>
    %147 = vector.broadcast %145 : vector<16x1x16xf32> to vector<16x16x16xf32>
    %148 = arith.addf %146, %147 : vector<16x16x16xf32>
    %cst_80 = arith.constant 0.000000e+00 : f32
    %149 = vector.broadcast %cst_80 : f32 to vector<16x16x16xf32>
    %150 = arith.cmpf oge, %148, %149 : vector<16x16x16xf32>
    %cst_81 = arith.constant 3.300000e-01 : f32
    %151 = vector.broadcast %cst_81 : f32 to vector<16x16x16xf32>
    %152 = arith.mulf %151, %148 : vector<16x16x16xf32>
    %153 = arith.select %150, %148, %152 : vector<16x16x16xi1>, vector<16x16x16xf32>
    %154 = vector.extract_strided_slice %8 {offsets = [0, 768], sizes = [1, 256], strides = [1, 1]} : vector<1x1024xf32> to vector<1x256xf32>
    %155 = vector.shape_cast %153 : vector<16x16x16xf32> to vector<256x16xf32>
    %cst_82 = arith.constant dense<0.000000e+00> : vector<1x16xf32>
    %156 = tpu.matmul %154, %155, %cst_82 {dimension_numbers = #tpu.dot_dimension_numbers<[1], [0], [0], [1], [0, 0, 1, 1], [], []>} : vector<1x256xf32>, vector<256x16xf32>, vector<1x16xf32> -> vector<1x16xf32>
    %157 = arith.addf %141, %156 : vector<1x16xf32>
    %158 = vector.broadcast %9 : vector<1x1xf32> to vector<1x16xf32>
    %159 = arith.addf %157, %158 : vector<1x16xf32>
    %cst_83 = arith.constant 0.000000e+00 : f32
    %160 = vector.broadcast %cst_83 : f32 to vector<1x16xf32>
    %161 = arith.cmpf oge, %159, %160 : vector<1x16xf32>
    %cst_84 = arith.constant 3.300000e-01 : f32
    %162 = vector.broadcast %cst_84 : f32 to vector<1x16xf32>
    %163 = arith.mulf %162, %159 : vector<1x16xf32>
    %164 = arith.select %161, %159, %163 : vector<1x16xi1>, vector<1x16xf32>
    %cst_85 = arith.constant 0.000000e+00 : f32
    %165 = vector.broadcast %cst_85 : f32 to vector<1x16xf32>
    %c0_86 = arith.constant 0 : index
    %c0_87 = arith.constant 0 : index
    %c0_88 = arith.constant 0 : index
    %166 = vector.load %arg25[%c0_86, %c0_87, %c0_88] : memref<1x768x16xf32, #tpu.memory_space<vmem>>, vector<1x768x16xf32>
    %167 = vector.shape_cast %166 : vector<1x768x16xf32> to vector<768x16xf32>
    %cst_89 = arith.constant dense<0.000000e+00> : vector<1x16xf32>
    %168 = tpu.matmul %21, %167, %cst_89 {dimension_numbers = #tpu.dot_dimension_numbers<[1], [0], [0], [1], [0, 0, 1, 1], [], []>} : vector<1x768xf32>, vector<768x16xf32>, vector<1x16xf32> -> vector<1x16xf32>
    %169 = arith.addf %165, %168 : vector<1x16xf32>
    %c0_90 = arith.constant 0 : index
    %c0_91 = arith.constant 0 : index
    %c0_92 = arith.constant 0 : index
    %170 = vector.load %arg26[%c0_90, %c0_91, %c0_92] : memref<1x512x16xf32, #tpu.memory_space<vmem>>, vector<1x512x16xf32>
    %171 = vector.shape_cast %170 : vector<1x512x16xf32> to vector<512x16xf32>
    %cst_93 = arith.constant dense<0.000000e+00> : vector<1x16xf32>
    %172 = tpu.matmul %32, %171, %cst_93 {dimension_numbers = #tpu.dot_dimension_numbers<[1], [0], [0], [1], [0, 0, 1, 1], [], []>} : vector<1x512xf32>, vector<512x16xf32>, vector<1x16xf32> -> vector<1x16xf32>
    %173 = arith.addf %169, %172 : vector<1x16xf32>
    %c0_94 = arith.constant 0 : index
    %c0_95 = arith.constant 0 : index
    %c0_96 = arith.constant 0 : index
    %174 = vector.load %arg27[%c0_94, %c0_95, %c0_96] : memref<1x512x16xf32, #tpu.memory_space<vmem>>, vector<1x512x16xf32>
    %175 = vector.shape_cast %174 : vector<1x512x16xf32> to vector<512x16xf32>
    %cst_97 = arith.constant dense<0.000000e+00> : vector<1x16xf32>
    %176 = tpu.matmul %43, %175, %cst_97 {dimension_numbers = #tpu.dot_dimension_numbers<[1], [0], [0], [1], [0, 0, 1, 1], [], []>} : vector<1x512xf32>, vector<512x16xf32>, vector<1x16xf32> -> vector<1x16xf32>
    %177 = arith.addf %173, %176 : vector<1x16xf32>
    %c0_98 = arith.constant 0 : index
    %c0_99 = arith.constant 0 : index
    %c0_100 = arith.constant 0 : index
    %178 = vector.load %arg28[%c0_98, %c0_99, %c0_100] : memref<1x512x16xf32, #tpu.memory_space<vmem>>, vector<1x512x16xf32>
    %179 = vector.shape_cast %178 : vector<1x512x16xf32> to vector<512x16xf32>
    %cst_101 = arith.constant dense<0.000000e+00> : vector<1x16xf32>
    %180 = tpu.matmul %54, %179, %cst_101 {dimension_numbers = #tpu.dot_dimension_numbers<[1], [0], [0], [1], [0, 0, 1, 1], [], []>} : vector<1x512xf32>, vector<512x16xf32>, vector<1x16xf32> -> vector<1x16xf32>
    %181 = arith.addf %177, %180 : vector<1x16xf32>
    %182 = vector.broadcast %10 : vector<1x1xf32> to vector<1x16xf32>
    %183 = arith.addf %181, %182 : vector<1x16xf32>
    %cst_102 = arith.constant 0.000000e+00 : f32
    %184 = vector.broadcast %cst_102 : f32 to vector<1x16xf32>
    %185 = arith.cmpf oge, %183, %184 : vector<1x16xf32>
    %cst_103 = arith.constant 3.300000e-01 : f32
    %186 = vector.broadcast %cst_103 : f32 to vector<1x16xf32>
    %187 = arith.mulf %186, %183 : vector<1x16xf32>
    %188 = arith.select %185, %183, %187 : vector<1x16xi1>, vector<1x16xf32>
    %189 = arith.addf %164, %188 : vector<1x16xf32>
    %c0_104 = arith.constant 0 : index
    %c0_105 = arith.constant 0 : index
    %c0_106 = arith.constant 0 : index
    %190 = vector.load %arg30[%c0_104, %c0_105, %c0_106] : memref<1x1x16xf32, #tpu.memory_space<vmem>>, vector<1x1x16xf32>
    %191 = vector.shape_cast %190 : vector<1x1x16xf32> to vector<1x16xf32>
    %192 = vector.shape_cast %189 : vector<1x16xf32> to vector<1x1x16xf32>
    tpu.vector_store %arg30[%c0_104, %c0_105, %c0_106], %192 {strides = array<i32>} : memref<1x1x16xf32, #tpu.memory_space<vmem>>, vector<1x1x16xf32>,
    return
  }
  func.func @transform_0(%arg0: i32) -> (i32, i32, i32) {
    %c0_i32 = arith.constant 0 : i32
    %c0_i32_0 = arith.constant 0 : i32
    %c0_i32_1 = arith.constant 0 : i32
    return %arg0, %c0_i32, %c0_i32_0 : i32, i32, i32
  }
  func.func @transform_1(%arg0: i32) -> (i32, i32, i32) {
    %c0_i32 = arith.constant 0 : i32
    %c0_i32_0 = arith.constant 0 : i32
    %c0_i32_1 = arith.constant 0 : i32
    return %arg0, %c0_i32, %c0_i32_0 : i32, i32, i32
  }
  func.func @transform_2(%arg0: i32) -> (i32, i32) {
    %c0_i32 = arith.constant 0 : i32
    %c0_i32_0 = arith.constant 0 : i32
    return %c0_i32, %arg0 : i32, i32
  }
  func.func @transform_3(%arg0: i32) -> (i32, i32) {
    %c0_i32 = arith.constant 0 : i32
    %c0_i32_0 = arith.constant 0 : i32
    return %c0_i32, %arg0 : i32, i32
  }
  func.func @transform_4(%arg0: i32) -> (i32, i32) {
    %c0_i32 = arith.constant 0 : i32
    %c0_i32_0 = arith.constant 0 : i32
    return %c0_i32, %arg0 : i32, i32
  }
  func.func @transform_5(%arg0: i32) -> (i32, i32) {
    %c0_i32 = arith.constant 0 : i32
    %c0_i32_0 = arith.constant 0 : i32
    return %c0_i32, %arg0 : i32, i32
  }
  func.func @transform_6(%arg0: i32) -> (i32, i32) {
    %c0_i32 = arith.constant 0 : i32
    %c0_i32_0 = arith.constant 0 : i32
    %c0_i32_1 = arith.constant 0 : i32
    return %c0_i32, %c0_i32_0 : i32, i32
  }
  func.func @transform_7(%arg0: i32) -> (i32, i32) {
    %c0_i32 = arith.constant 0 : i32
    %c0_i32_0 = arith.constant 0 : i32
    %c0_i32_1 = arith.constant 0 : i32
    return %c0_i32, %c0_i32_0 : i32, i32
  }
  func.func @transform_8(%arg0: i32) -> (i32, i32) {
    %c0_i32 = arith.constant 0 : i32
    %c0_i32_0 = arith.constant 0 : i32
    %c0_i32_1 = arith.constant 0 : i32
    return %c0_i32, %c0_i32_0 : i32, i32
  }
  func.func @transform_9(%arg0: i32) -> (i32, i32) {
    %c0_i32 = arith.constant 0 : i32
    %c0_i32_0 = arith.constant 0 : i32
    %c0_i32_1 = arith.constant 0 : i32
    return %c0_i32, %c0_i32_0 : i32, i32
  }
  func.func @transform_10(%arg0: i32) -> (i32, i32) {
    %c0_i32 = arith.constant 0 : i32
    %c0_i32_0 = arith.constant 0 : i32
    %c0_i32_1 = arith.constant 0 : i32
    return %c0_i32, %c0_i32_0 : i32, i32
  }
  func.func @transform_11(%arg0: i32) -> (i32, i32) {
    %c0_i32 = arith.constant 0 : i32
    %c0_i32_0 = arith.constant 0 : i32
    %c0_i32_1 = arith.constant 0 : i32
    return %c0_i32, %c0_i32_0 : i32, i32
  }
  func.func @transform_12(%arg0: i32) -> (i32, i32) {
    %c0_i32 = arith.constant 0 : i32
    %c0_i32_0 = arith.constant 0 : i32
    %c0_i32_1 = arith.constant 0 : i32
    return %c0_i32, %c0_i32_0 : i32, i32
  }
  func.func @transform_13(%arg0: i32) -> (i32, i32) {
    %c0_i32 = arith.constant 0 : i32
    %c0_i32_0 = arith.constant 0 : i32
    %c0_i32_1 = arith.constant 0 : i32
    return %c0_i32, %c0_i32_0 : i32, i32
  }
  func.func @transform_14(%arg0: i32) -> (i32, i32) {
    %c0_i32 = arith.constant 0 : i32
    %c0_i32_0 = arith.constant 0 : i32
    %c0_i32_1 = arith.constant 0 : i32
    return %c0_i32, %c0_i32_0 : i32, i32
  }
  func.func @transform_15(%arg0: i32) -> (i32, i32) {
    %c0_i32 = arith.constant 0 : i32
    %c0_i32_0 = arith.constant 0 : i32
    %c0_i32_1 = arith.constant 0 : i32
    return %c0_i32, %c0_i32_0 : i32, i32
  }
  func.func @transform_16(%arg0: i32) -> (i32, i32) {
    %c0_i32 = arith.constant 0 : i32
    %c0_i32_0 = arith.constant 0 : i32
    %c0_i32_1 = arith.constant 0 : i32
    return %c0_i32, %c0_i32_0 : i32, i32
  }
  func.func @transform_17(%arg0: i32) -> (i32, i32) {
    %c0_i32 = arith.constant 0 : i32
    %c0_i32_0 = arith.constant 0 : i32
    %c0_i32_1 = arith.constant 0 : i32
    return %c0_i32, %c0_i32_0 : i32, i32
  }
  func.func @transform_18(%arg0: i32) -> (i32, i32) {
    %c0_i32 = arith.constant 0 : i32
    %c0_i32_0 = arith.constant 0 : i32
    %c0_i32_1 = arith.constant 0 : i32
    return %c0_i32, %c0_i32_0 : i32, i32
  }
  func.func @transform_19(%arg0: i32) -> (i32, i32) {
    %c0_i32 = arith.constant 0 : i32
    %c0_i32_0 = arith.constant 0 : i32
    %c0_i32_1 = arith.constant 0 : i32
    return %c0_i32, %c0_i32_0 : i32, i32
  }
  func.func @transform_20(%arg0: i32) -> (i32, i32) {
    %c0_i32 = arith.constant 0 : i32
    %c0_i32_0 = arith.constant 0 : i32
    %c0_i32_1 = arith.constant 0 : i32
    return %c0_i32, %c0_i32_0 : i32, i32
  }
  func.func @transform_21(%arg0: i32) -> (i32, i32) {
    %c0_i32 = arith.constant 0 : i32
    %c0_i32_0 = arith.constant 0 : i32
    %c0_i32_1 = arith.constant 0 : i32
    return %c0_i32, %c0_i32_0 : i32, i32
  }
  func.func @transform_22(%arg0: i32) -> (i32, i32) {
    %c0_i32 = arith.constant 0 : i32
    %c0_i32_0 = arith.constant 0 : i32
    %c0_i32_1 = arith.constant 0 : i32
    return %c0_i32, %c0_i32_0 : i32, i32
  }
  func.func @transform_23(%arg0: i32) -> (i32, i32) {
    %c0_i32 = arith.constant 0 : i32
    %c0_i32_0 = arith.constant 0 : i32
    %c0_i32_1 = arith.constant 0 : i32
    return %c0_i32, %c0_i32_0 : i32, i32
  }
  func.func @transform_24(%arg0: i32) -> (i32, i32, i32) {
    %c0_i32 = arith.constant 0 : i32
    %c0_i32_0 = arith.constant 0 : i32
    %c0_i32_1 = arith.constant 0 : i32
    %c0_i32_2 = arith.constant 0 : i32
    return %c0_i32, %c0_i32_0, %c0_i32_1 : i32, i32, i32
  }
  func.func @transform_25(%arg0: i32) -> (i32, i32, i32) {
    %c0_i32 = arith.constant 0 : i32
    %c0_i32_0 = arith.constant 0 : i32
    %c0_i32_1 = arith.constant 0 : i32
    %c0_i32_2 = arith.constant 0 : i32
    return %c0_i32, %c0_i32_0, %c0_i32_1 : i32, i32, i32
  }
  func.func @transform_26(%arg0: i32) -> (i32, i32, i32) {
    %c0_i32 = arith.constant 0 : i32
    %c0_i32_0 = arith.constant 0 : i32
    %c0_i32_1 = arith.constant 0 : i32
    %c0_i32_2 = arith.constant 0 : i32
    return %c0_i32, %c0_i32_0, %c0_i32_1 : i32, i32, i32
  }
  func.func @transform_27(%arg0: i32) -> (i32, i32, i32) {
    %c0_i32 = arith.constant 0 : i32
    %c0_i32_0 = arith.constant 0 : i32
    %c0_i32_1 = arith.constant 0 : i32
    %c0_i32_2 = arith.constant 0 : i32
    return %c0_i32, %c0_i32_0, %c0_i32_1 : i32, i32, i32
  }
  func.func @transform_28(%arg0: i32) -> (i32, i32) {
    %c0_i32 = arith.constant 0 : i32
    %c0_i32_0 = arith.constant 0 : i32
    %c0_i32_1 = arith.constant 0 : i32
    return %c0_i32, %c0_i32_0 : i32, i32
  }
  func.func @transform_29(%arg0: i32) -> (i32, i32, i32) {
    %c0_i32 = arith.constant 0 : i32
    %c0_i32_0 = arith.constant 0 : i32
    %c0_i32_1 = arith.constant 0 : i32
    return %arg0, %c0_i32, %c0_i32_0 : i32, i32, i32
  }
}

</mosaic_0001>

<bundles_post_ra>
// kernel: tpu_custom_call.1
= control target key start
LH: loop header
LB: loop body
LE: loop exit
PB: predicated region body
PF: predicated region fallthrough
CT: control target
= control target key end

     0   :  { %s5222_s6 = smov 1   ;;  %s5223_s10 = smov 2   ;;  %s6889_s0 = inlined_call_operand.smem [shape: u32[30], index: -1, kind: input, shape index: {}] }
   0x1   :  { %s5260_s5 = sld [smem:[%s6889_s0]]   ;;  %s5224_s14 = smov 3  }
   0x2   :  { %s5265_s9 = sld [smem:[%s6889_s0 + %s5222_s6]]   ;;  %s5225_s18 = smov 4  }
   0x3   :  { %s5270_s13 = sld [smem:[%s6889_s0 + %s5223_s10]]   ;;  %s5226_s22 = smov 5  }
   0x4   :  { %s5275_s17 = sld [smem:[%s6889_s0 + %s5224_s14]]   ;;  %s5227_s26 = smov 6  }
   0x5   :  { %s5280_s21 = sld [smem:[%s6889_s0 + %s5225_s18]]   ;;  %s5228_s30 = smov 7  }
   0x6   :  { %s5285_s25 = sld [smem:[%s6889_s0 + %s5226_s22]]   ;;  %s5229_s4 = smov 8  }
   0x7   :  { %6949 = sst [smem:[#allocation15_spill]] %s5260_s5  ;;  %s5230_s10 = smov 9  }
   0x8   :  { %6950 = sst [smem:[#allocation16_spill]] %s5265_s9  ;;  %s5231_s15 = smov 10  }
   0x9   :  { %6951 = sst [smem:[#allocation17_spill]] %s5270_s13  ;;  %s5232_s20 = smov 11  }
   0xa   :  { %s5290_s29 = sld [smem:[%s6889_s0 + %s5227_s26]]   ;;  %s5233_s26 = smov 12  }
   0xb   :  { %s5295_s3 = sld [smem:[%s6889_s0 + %s5228_s30]]   ;;  %s5234_s1 = smov 13  }
   0xc   :  { %s5300_s8 = sld [smem:[%s6889_s0 + %s5229_s4]]   ;;  %s5235_s7 = smov 14  }
   0xd   :  { %s5305_s14 = sld [smem:[%s6889_s0 + %s5230_s10]]   ;;  %s5237_s22 = smov 16  }
   0xe   :  { %s5310_s19 = sld [smem:[%s6889_s0 + %s5231_s15]]   ;;  %s5236_s15 = smov 15  }
   0xf   :  { %s5315_s24 = sld [smem:[%s6889_s0 + %s5232_s20]]   ;;  %s5238_s28 = smov 17  }
  0x10   :  { %6952 = sst [smem:[#allocation18_spill]] %s5290_s29  ;;  %s5239_s10 = smov 18  }
  0x11   :  { %6953 = sst [smem:[#allocation19_spill]] %s5295_s3  ;;  %s5240_s16 = smov 19  }
  0x12   :  { %6954 = sst [smem:[#allocation20_spill]] %s5300_s8  ;;  %s5245_s23 = smov 29  }
  0x13   :  { %s5320_s30 = sld [smem:[%s6889_s0 + %s5233_s26]]   ;;  %s5248_s29 = smov 22  }
  0x14   :  { %6955 = sst [smem:[#allocation21_spill]] %s5310_s19  ;;  %s5250_s26 = smov 28  }
  0x15   :  { %s5325_s6 = sld [smem:[%s6889_s0 + %s5234_s1]]  }
  0x16   :  { %s5330_s12 = sld [smem:[%s6889_s0 + %s5235_s7]]  }
  0x17   :  { %s4915_s20 = sld [smem:[%s6889_s0 + %s5236_s15]]  }
  0x18   :  { %s5338_s27 = sld [smem:[%s6889_s0 + %s5237_s22]]   ;;  %s5241_s22 = smov 24  }
  0x19   :  { %6956 = sst [smem:[#allocation22_spill]] %s5320_s30 }
  0x1a   :  { %s5343_s4 = sld [smem:[%s6889_s0 + %s5238_s28]]   ;;  %s5242_s28 = smov 25  }
  0x1b   :  { %6957 = sst [smem:[#allocation23_spill]] %s5325_s6 }
  0x1c   :  { %6958 = sst [smem:[#allocation24_spill]] %s5330_s12 }
  0x1d   :  { %s5348_s12 = sld [smem:[%s6889_s0 + %s5239_s10]]   ;;  %v64_v0 = vstv %s4915_s20  ;;  %s5243_s10 = smov 26  }
  0x1e   :  { %s5353_s30 = sld [smem:[%s6889_s0 + %s5240_s16]]   ;;  %65 = vst [vmem:[#allocation2] sm:$0x1] %v64_v0  ;;  %s5244_s16 = smov 27  }
  0x1f   :  { %s5358_s19 = sld [smem:[%s6889_s0 + %s5241_s22]]   ;;  %s5246_s20 = smov 20  }
  0x20   :  { %6959 = sst [smem:[#allocation25_spill]] %s5343_s4 }
  0x21   :  { %s5363_s6 = sld [smem:[%s6889_s0 + %s5242_s28]]  }
  0x22   :  { %s5368_s15 = sld [smem:[%s6889_s0 + %s5243_s10]]   ;;  %s5247_s10 = smov 21  }
  0x23   :  { %6960 = sst [smem:[#allocation26_spill]] %s5348_s12 }
  0x24   :  { %s5373_s22 = sld [smem:[%s6889_s0 + %s5244_s16]]  }
  0x25   :  { %6961 = sst [smem:[#allocation27_spill]] %s5358_s19 }
  0x26   :  { %s5378_s28 = sld [smem:[%s6889_s0 + %s5245_s23]]  }
  0x27   :  { %6962 = sst [smem:[#allocation28_spill]] %s5363_s6 }
  0x28   :  { %6963 = sst [smem:[#allocation29_spill]] %s5368_s15 }
  0x29   :  { %s4920_s7 = sld [smem:[%s6889_s0 + %s5246_s20]]  }
  0x2a   :  { %6964 = sst [smem:[#allocation30_spill]] %s5373_s22  ;;  %s5249_s22 = smov 23  }
  0x2b   :  { %s4921_s6 = sld [smem:[%s6889_s0 + %s5247_s10]]  }
  0x2c   :  { %6965 = sst [smem:[#allocation31_spill]] %s5378_s28 }
  0x2d   :  { %s4922_s18 = sld [smem:[%s6889_s0 + %s5248_s29]]  }
  0x2e   :  { %s4923_s23 = sld [smem:[%s6889_s0 + %s5249_s22]]  }
  0x2f   :  { %s4928_s20 = sld [smem:[%s6889_s0 + %s5250_s26]]   ;;  %v66_v1 = vstv %s4920_s7 }
  0x30   :  { %67 = vst [vmem:[#allocation3] sm:$0x1] %v66_v1 }
  0x31   :  { %v68_v2 = vstv %s4921_s6 }
  0x32   :  { %69 = vst [vmem:[#allocation4] sm:$0x1] %v68_v2 }
  0x33   :  { %v70_v3 = vstv %s4922_s18 }
  0x34   :  { %71 = vst [vmem:[#allocation5] sm:$0x1] %v70_v3  ;;  %v72_v4 = vstv %s4923_s23 }
  0x35   :  { %73 = vst [vmem:[#allocation6] sm:$0x1] %v72_v4  ;;  %v74_v5 = vstv %s4928_s20 }
  0x36   :  { %75 = vst [vmem:[#allocation7] sm:$0x1] %v74_v5 }
  0x37   :  { %76 = vsyncpa [#allocation13], 0 }
  0x38   :  { %78 = vsyncpa [#allocation13 + $0x1], 0  ;;  %s5395_s29 = smov 0   ;;  %s5397_s9 = smov 0  }
  0x39   :  { %s5399_s15 = smov 0   ;;  %s5401_s5 = smov 0  }
  0x3a LB: > { %s5416_s0 = sadd.s32 4294967295, %s5220_s5   ;;  %s4931_s6 = sadd.s32 4294967294, %s5220_s5   ;;  %s5220_s5 = sphi %s5401_s5, %s7078_s5   ;;  %s5216_s15 = sphi %s5399_s15, %s7077_s15   ;;  %s5212_s9 = sphi %s5397_s9, %s7076_s9   ;;  %s5208_s29 = sphi %s5395_s29, %s7075_s29  }
  0x3b   : > { %s5420_s22 = sadd.s32 1, %s5220_s5   ;;  %s143_s28 = sadd.s32 1, %s5216_s15 }
  0x3c   : > { %s140_s1 = ssub.s32 %s5220_s5, %s5420_s22  ;;  %p150_p0 = scmp.ne.s32.totalorder %s5216_s15, %s5212_s9 }
  0x3d   : > { %p141_p1 = scmp.eq.s32.totalorder %s140_s1, 0  ;;  %p151_p2 = scmp.eq.s32.totalorder %s5220_s5, 0 }
  0x3e   : > { %p741_p3 = scmp.eq.s32.totalorder %s5416_s0, 1  ;;  %p746_p4 = scmp.ne.s32.totalorder %s5212_s9, %s5208_s29 }
  0x3f   : > { %s5432_s2 = scalar_select %p141_p1, %s5216_s15, %s143_s28  }
  0x40   : > { %p5434_p5 = por %p151_p2, %p150_p0  ;;  %p5438_p6 = por %p741_p3, %p150_p0 }
  0x41   : > { %p747_p7 = scmp.eq.s32.totalorder %s4931_s6, 1  ;;  %p4933_p9 = scmp.ge.s32.totalorder %s5220_s5, 2 }
  0x43   : > { %p5442_p8 = por %p747_p7, %p746_p4  ;;  %832 = sbr.rel (%p4933_p9) target bundleno = 148 (0x94), region = 108 }
  0x48   : > { %851 = sbr.rel (!%p5434_p5) target bundleno = 92 (0x5c), region = 120  ;;  %s6969_s13 = sld [smem:[#allocation17_spill]] (%p5434_p5) }
  0x49   : > { %s853_s8 = sand.u32 (%p5434_p5), 1, %s5216_s15   ;;  %s4972_s16 = smul.u32 (%p5434_p5), 48, %s5220_s5 }
  0x4a   : > { %s4978_s18 = smul.u32 (%p5434_p5), 96, %s853_s8 }
  0x4c   : > { %s855_s23 = scalar_lea.vmem (%p5434_p5), [#allocation8], %s4978_s18 }
  0x4e   : > { %s858_s19 = scalar_lea.vmem %s6969_s13, %s4972_s16 }
  0x4f   : > { %v871_v6 = vld [vmem:[%s858_s19] sm:$0xff]  ;;  %v873_v7 = vld [vmem:[%s858_s19 + $0x8] sm:$0xff]  ;;  %v875_v8 = vld [vmem:[%s858_s19 + $0x10] sm:$0xff] }
  0x50   : > { %872 = vst [vmem:[%s855_s23] sm:$0xff] %v871_v6  ;;  %v877_v9 = vld [vmem:[%s858_s19 + $0x18] sm:$0xff]  ;;  %v879_v10 = vld [vmem:[%s858_s19 + $0x20] sm:$0xff]  ;;  %v881_v11 = vld [vmem:[%s858_s19 + $0x28] sm:$0xff] }
  0x51   : > { %874 = vst [vmem:[%s855_s23 + $0x8] sm:$0xff] %v873_v7  ;;  %v883_v12 = vld [vmem:[%s858_s19 + $0x60] sm:$0xff]  ;;  %v885_v13 = vld [vmem:[%s858_s19 + $0x68] sm:$0xff]  ;;  %v887_v14 = vld [vmem:[%s858_s19 + $0x70] sm:$0xff] }
  0x52   : > { %876 = vst [vmem:[%s855_s23 + $0x10] sm:$0xff] %v875_v8  ;;  %v889_v15 = vld [vmem:[%s858_s19 + $0x78] sm:$0xff]  ;;  %v891_v16 = vld [vmem:[%s858_s19 + $0x80] sm:$0xff]  ;;  %v893_v17 = vld [vmem:[%s858_s19 + $0x88] sm:$0xff] }
  0x53   : > { %878 = vst [vmem:[%s855_s23 + $0x18] sm:$0xff] %v877_v9 }
  0x54   : > { %880 = vst [vmem:[%s855_s23 + $0x20] sm:$0xff] %v879_v10 }
  0x55   : > { %882 = vst [vmem:[%s855_s23 + $0x28] sm:$0xff] %v881_v11 }
  0x56   : > { %884 = vst [vmem:[%s855_s23 + $0x30] sm:$0xff] %v883_v12 }
  0x57   : > { %886 = vst [vmem:[%s855_s23 + $0x38] sm:$0xff] %v885_v13 }
  0x58   : > { %888 = vst [vmem:[%s855_s23 + $0x40] sm:$0xff] %v887_v14 }
  0x59   : > { %890 = vst [vmem:[%s855_s23 + $0x48] sm:$0xff] %v889_v15 }
  0x5a   : > { %892 = vst [vmem:[%s855_s23 + $0x50] sm:$0xff] %v891_v16 }
  0x5b   : > { %894 = vst [vmem:[%s855_s23 + $0x58] sm:$0xff] %v893_v17 }
  0x5c PF: > { %900 = sbr.rel (!%p5434_p5) target bundleno = 104 (0x68), region = 143  ;;  %s902_s26 = sand.u32 (%p5434_p5), 1, %s5216_s15  }
  0x5d   : > { %s4973_s20 = sshll.u32 (%p5434_p5), %s5220_s5, 5  ;;  %s4935_s6 = sshll.u32 (%p5434_p5), %s902_s26, 6 }
  0x5e   : > { %s907_s28 = scalar_lea.vmem (%p5434_p5), %s5275_s17, %s4973_s20  ;;  %s904_s1 = scalar_lea.vmem (%p5434_p5), [#allocation9], %s4935_s6 }
  0x5f   : > { %v920_v18 = vld [vmem:[%s907_s28] sm:$0xff] (%p5434_p5)  ;;  %v922_v19 = vld [vmem:[%s907_s28 + $0x8] sm:$0xff] (%p5434_p5)  ;;  %v924_v20 = vld [vmem:[%s907_s28 + $0x10] sm:$0xff] (%p5434_p5) }
  0x60   : > { %921 = vst [vmem:[%s904_s1] sm:$0xff] (%p5434_p5), %v920_v18  ;;  %v926_v21 = vld [vmem:[%s907_s28 + $0x18] sm:$0xff] (%p5434_p5)  ;;  %v928_v22 = vld [vmem:[%s907_s28 + $0x40] sm:$0xff] (%p5434_p5)  ;;  %v930_v23 = vld [vmem:[%s907_s28 + $0x48] sm:$0xff] (%p5434_p5) }
  0x61   : > { %923 = vst [vmem:[%s904_s1 + $0x8] sm:$0xff] %v922_v19  ;;  %v932_v24 = vld [vmem:[%s907_s28 + $0x50] sm:$0xff]  ;;  %v934_v25 = vld [vmem:[%s907_s28 + $0x58] sm:$0xff] }
  0x62   : > { %925 = vst [vmem:[%s904_s1 + $0x10] sm:$0xff] %v924_v20 }
  0x63   : > { %927 = vst [vmem:[%s904_s1 + $0x18] sm:$0xff] %v926_v21 }
  0x64   : > { %929 = vst [vmem:[%s904_s1 + $0x20] sm:$0xff] %v928_v22 }
  0x65   : > { %931 = vst [vmem:[%s904_s1 + $0x28] sm:$0xff] %v930_v23 }
  0x66   : > { %933 = vst [vmem:[%s904_s1 + $0x30] sm:$0xff] %v932_v24 }
  0x67   : > { %935 = vst [vmem:[%s904_s1 + $0x38] sm:$0xff] %v934_v25 }
  0x68 PF: > { %941 = sbr.rel (!%p5434_p5) target bundleno = 124 (0x7c), region = 166  ;;  %s943_s8 = sand.u32 (%p5434_p5), 1, %s5216_s15  }
  0x69   : > { %s4974_s16 = sshll.u32 (%p5434_p5), %s5220_s5, 5  ;;  %s4938_s18 = sshll.u32 (%p5434_p5), %s943_s8, 7 }
  0x6a   : > { %s5464_s19 = scalar_lea.vmem (%p5434_p5), %s5280_s21, %s4974_s16  ;;  %s945_s23 = scalar_lea.vmem (%p5434_p5), [#allocation10], %s4938_s18 }
  0x6b   : > { %v961_v26 = vld [vmem:[%s5464_s19] sm:$0xff] (%p5434_p5)  ;;  %v963_v27 = vld [vmem:[%s5464_s19 + $0x8] sm:$0xff] (%p5434_p5)  ;;  %v965_v28 = vld [vmem:[%s5464_s19 + $0x10] sm:$0xff] (%p5434_p5) }
  0x6c   : > { %962 = vst [vmem:[%s945_s23] sm:$0xff] (%p5434_p5), %v961_v26  ;;  %v967_v29 = vld [vmem:[%s5464_s19 + $0x18] sm:$0xff] (%p5434_p5)  ;;  %v969_v30 = vld [vmem:[%s5464_s19 + $0x40] sm:$0xff] (%p5434_p5)  ;;  %v971_v31 = vld [vmem:[%s5464_s19 + $0x48] sm:$0xff] (%p5434_p5) }
  0x6d   : > { %964 = vst [vmem:[%s945_s23 + $0x8] sm:$0xff] %v963_v27  ;;  %v973_v32 = vld [vmem:[%s5464_s19 + $0x50] sm:$0xff]  ;;  %v975_v33 = vld [vmem:[%s5464_s19 + $0x58] sm:$0xff]  ;;  %v977_v34 = vld [vmem:[%s5464_s19 + $0x80] sm:$0xff] }
  0x6e   : > { %966 = vst [vmem:[%s945_s23 + $0x10] sm:$0xff] %v965_v28  ;;  %v979_v35 = vld [vmem:[%s5464_s19 + $0x88] sm:$0xff]  ;;  %v981_v36 = vld [vmem:[%s5464_s19 + $0x90] sm:$0xff]  ;;  %v983_v37 = vld [vmem:[%s5464_s19 + $0x98] sm:$0xff] }
  0x6f   : > { %968 = vst [vmem:[%s945_s23 + $0x18] sm:$0xff] %v967_v29  ;;  %v985_v38 = vld [vmem:[%s5464_s19 + $0xc0] sm:$0xff]  ;;  %v987_v39 = vld [vmem:[%s5464_s19 + $0xc8] sm:$0xff]  ;;  %v989_v40 = vld [vmem:[%s5464_s19 + $0xd0] sm:$0xff] }
  0x70   : > { %970 = vst [vmem:[%s945_s23 + $0x20] sm:$0xff] %v969_v30  ;;  %v991_v41 = vld [vmem:[%s5464_s19 + $0xd8] sm:$0xff] }
  0x71   : > { %972 = vst [vmem:[%s945_s23 + $0x28] sm:$0xff] %v971_v31 }
  0x72   : > { %974 = vst [vmem:[%s945_s23 + $0x30] sm:$0xff] %v973_v32 }
  0x73   : > { %976 = vst [vmem:[%s945_s23 + $0x38] sm:$0xff] %v975_v33 }
  0x74   : > { %978 = vst [vmem:[%s945_s23 + $0x40] sm:$0xff] %v977_v34 }
  0x75   : > { %980 = vst [vmem:[%s945_s23 + $0x48] sm:$0xff] %v979_v35 }
  0x76   : > { %982 = vst [vmem:[%s945_s23 + $0x50] sm:$0xff] %v981_v36 }
  0x77   : > { %984 = vst [vmem:[%s945_s23 + $0x58] sm:$0xff] %v983_v37 }
  0x78   : > { %986 = vst [vmem:[%s945_s23 + $0x60] sm:$0xff] %v985_v38 }
  0x79   : > { %988 = vst [vmem:[%s945_s23 + $0x68] sm:$0xff] %v987_v39 }
  0x7a   : > { %990 = vst [vmem:[%s945_s23 + $0x70] sm:$0xff] %v989_v40 }
  0x7b   : > { %992 = vst [vmem:[%s945_s23 + $0x78] sm:$0xff] %v991_v41 }
  0x7c PF: > { %998 = sbr.rel (!%p5434_p5) target bundleno = 148 (0x94), region = 189  ;;  %s1000_s26 = sand.u32 (%p5434_p5), 1, %s5216_s15  }
  0x7d   : > { %s4975_s20 = sshll.u32 (%p5434_p5), %s5220_s5, 5  ;;  %s4979_s6 = smul.u32 (%p5434_p5), 160, %s1000_s26 }
  0x7e   : > { %s5487_s28 = scalar_lea.vmem (%p5434_p5), %s5285_s25, %s4975_s20 }
  0x7f   : > { %v1018_v42 = vld [vmem:[%s5487_s28] sm:$0xff] (%p5434_p5)  ;;  %v1020_v43 = vld [vmem:[%s5487_s28 + $0x8] sm:$0xff] (%p5434_p5)  ;;  %v1022_v44 = vld [vmem:[%s5487_s28 + $0x10] sm:$0xff] (%p5434_p5)  ;;  %s5492_s7 = scalar_lea.vmem (%p5434_p5), [#allocation11], %s4979_s6 }
  0x80   : > { %1019 = vst [vmem:[%s5492_s7] sm:$0xff] (%p5434_p5), %v1018_v42  ;;  %v1024_v45 = vld [vmem:[%s5487_s28 + $0x18] sm:$0xff] (%p5434_p5)  ;;  %v1026_v46 = vld [vmem:[%s5487_s28 + $0x40] sm:$0xff] (%p5434_p5)  ;;  %v1028_v47 = vld [vmem:[%s5487_s28 + $0x48] sm:$0xff] (%p5434_p5) }
  0x81   : > { %1021 = vst [vmem:[%s5492_s7 + $0x8] sm:$0xff] %v1020_v43  ;;  %v1030_v48 = vld [vmem:[%s5487_s28 + $0x50] sm:$0xff]  ;;  %v1032_v49 = vld [vmem:[%s5487_s28 + $0x58] sm:$0xff]  ;;  %v1034_v50 = vld [vmem:[%s5487_s28 + $0x80] sm:$0xff] }
  0x82   : > { %1023 = vst [vmem:[%s5492_s7 + $0x10] sm:$0xff] %v1022_v44  ;;  %v1036_v51 = vld [vmem:[%s5487_s28 + $0x88] sm:$0xff]  ;;  %v1038_v52 = vld [vmem:[%s5487_s28 + $0x90] sm:$0xff]  ;;  %v1040_v53 = vld [vmem:[%s5487_s28 + $0x98] sm:$0xff] }
  0x83   : > { %1025 = vst [vmem:[%s5492_s7 + $0x18] sm:$0xff] %v1024_v45  ;;  %v1042_v54 = vld [vmem:[%s5487_s28 + $0xc0] sm:$0xff]  ;;  %v1044_v55 = vld [vmem:[%s5487_s28 + $0xc8] sm:$0xff]  ;;  %v1046_v56 = vld [vmem:[%s5487_s28 + $0xd0] sm:$0xff] }
  0x84   : > { %1027 = vst [vmem:[%s5492_s7 + $0x20] sm:$0xff] %v1026_v46  ;;  %v1048_v57 = vld [vmem:[%s5487_s28 + $0xd8] sm:$0xff]  ;;  %v1050_v58 = vld [vmem:[%s5487_s28 + $0x100] sm:$0xff]  ;;  %v1052_v59 = vld [vmem:[%s5487_s28 + $0x108] sm:$0xff] }
  0x85   : > { %1029 = vst [vmem:[%s5492_s7 + $0x28] sm:$0xff] %v1028_v47  ;;  %v1054_v60 = vld [vmem:[%s5487_s28 + $0x110] sm:$0xff]  ;;  %v1056_v61 = vld [vmem:[%s5487_s28 + $0x118] sm:$0xff] }
  0x86   : > { %1031 = vst [vmem:[%s5492_s7 + $0x30] sm:$0xff] %v1030_v48 }
  0x87   : > { %1033 = vst [vmem:[%s5492_s7 + $0x38] sm:$0xff] %v1032_v49 }
  0x88   : > { %1035 = vst [vmem:[%s5492_s7 + $0x40] sm:$0xff] %v1034_v50 }
  0x89   : > { %1037 = vst [vmem:[%s5492_s7 + $0x48] sm:$0xff] %v1036_v51 }
  0x8a   : > { %1039 = vst [vmem:[%s5492_s7 + $0x50] sm:$0xff] %v1038_v52 }
  0x8b   : > { %1041 = vst [vmem:[%s5492_s7 + $0x58] sm:$0xff] %v1040_v53 }
  0x8c   : > { %1043 = vst [vmem:[%s5492_s7 + $0x60] sm:$0xff] %v1042_v54 }
  0x8d   : > { %1045 = vst [vmem:[%s5492_s7 + $0x68] sm:$0xff] %v1044_v55 }
  0x8e   : > { %1047 = vst [vmem:[%s5492_s7 + $0x70] sm:$0xff] %v1046_v56 }
  0x8f   : > { %1049 = vst [vmem:[%s5492_s7 + $0x78] sm:$0xff] %v1048_v57 }
  0x90   : > { %1051 = vst [vmem:[%s5492_s7 + $0x80] sm:$0xff] %v1050_v58 }
  0x91   : > { %1053 = vst [vmem:[%s5492_s7 + $0x88] sm:$0xff] %v1052_v59 }
  0x92   : > { %1055 = vst [vmem:[%s5492_s7 + $0x90] sm:$0xff] %v1054_v60 }
  0x93   : > { %1057 = vst [vmem:[%s5492_s7 + $0x98] sm:$0xff] %v1056_v61 }
  0x94 PF: > { %p4943_p10 = scmp.ge.s32.totalorder %s5220_s5, 1  ;;  %p1062_p11 = scmp.lt.s32.totalorder %s5220_s5, 3 }
  0x96   : > { %p1063_p12 = pnand %p4943_p10, %p1062_p11 }
  0x98   : > { %1066 = sbr.rel (%p1063_p12) target bundleno = 1706 (0x6aa), region = 212 }
  0x9d   : > { %s6970_s3 = sld [smem:[#allocation19_spill]]  ;;  %s5534_s1 = sand.u32 1, %s5212_s9   ;;  %v6899_v62 = vmov 0   ;;  %v1252_v63 = vld [vmem:[#allocation3] sm:$0x1]  ;;  %vm1259_vm0 = vcmask 130048  }
  0x9e   : > { %s4980_s8 = smul.u32 96, %s5534_s1  ;;  %5051 = vset.pattern.permute.xlu0 %v6899_v62  ;;  %5053 = vset.pattern.permute.xlu2 %v6899_v62  ;;  %s4944_s16 = sshll.u32 %s5534_s1, 6  ;;  %v5549_v5 = vld [vmem:[%s5338_s27] sm:$0x1]  ;;  %v1410_v14 = vld [vmem:[#allocation4] sm:$0x1] }
  0x9f   : > { %1255 = vperm.xlu0 %5051, %v1252_v63   ;;  %5052 = vset.pattern.permute.xlu1 %v6899_v62  ;;  %s4945_s19 = sshll.u32 %s5534_s1, 7  ;;  %s5560_s23 = scalar_lea.vmem [#allocation9], %s4944_s16  ;;  %v1203_v17 = vld [vmem:[%s5305_s14] sm:$0xff]  ;;  %vm1536_vm1 = vcmask 261120   ;;  %v1214_v41 = vld [vmem:[%s5315_s24 + $0x10] sm:$0xff]  ;;  %v1213_v42 = vld [vmem:[%s5315_s24 + $0x8] sm:$0xff] }
  0xa0   : > { %s5542_s18 = scalar_lea.vmem [#allocation8], %s4980_s8  ;;  %v1406_v10 = vld [vmem:[%s5560_s23 + $0x20] sm:$0xff]  ;;  %v1407_v11 = vld [vmem:[%s5560_s23 + $0x28] sm:$0xff]  ;;  %s5566_s26 = scalar_lea.vmem [#allocation10], %s4945_s19  ;;  %v1529_v20 = vld [vmem:[#allocation5] sm:$0x1] }
  0xa1   : > { %v1246_v1 = vld [vmem:[%s5542_s18 + $0x30] sm:$0xff]  ;;  %v1247_v2 = vld [vmem:[%s5542_s18 + $0x38] sm:$0xff]  ;;  %v1240_v3 = vld [vmem:[%s5542_s18] sm:$0xff]  ;;  %s4981_s20 = smul.u32 160, %s5534_s1  ;;  %s6971_s4 = sld [smem:[#allocation25_spill]]  ;;  %1532 = vperm.xlu1 %5052, %v1529_v20   ;;  %vm1660_vm2 = vcmask 326656  }
  0xa2   : > { %1277 = vmatpush.msra.mxu2 %v1246_v1  ;;  %1297 = vmatpush.msra.mxu3 %v1247_v2  ;;  %v1241_v4 = vld [vmem:[%s5542_s18 + $0x8] sm:$0xff]  ;;  %v1248_v6 = vld [vmem:[%s5542_s18 + $0x40] sm:$0xff]  ;;  %v1242_v8 = vld [vmem:[%s5542_s18 + $0x10] sm:$0xff]  ;;  %s6972_s12 = sld [smem:[#allocation26_spill]]  ;;  %p1186_p13 = scmp.lt.s32.totalorder %s5416_s0, 1 }
  0xa3   : > { %v1201_v0 = vld [vmem:[%s6970_s3] sm:$0xff]  ;;  %v1249_v7 = vld [vmem:[%s5542_s18 + $0x48] sm:$0xff]  ;;  %s5585_s6 = scalar_lea.vmem [#allocation11], %s4981_s20  ;;  %s6973_s7 = sld [smem:[#allocation15_spill]]  ;;  %v1250_v48 = vld [vmem:[%s5542_s18 + $0x50] sm:$0xff] }
  0xa4   : > { %1762 = vperm.xlu2 %5053, %v1201_v0   ;;  %1278 = vmatpush.msra.mxu2 %v1240_v3  ;;  %v1243_v9 = vld [vmem:[%s5542_s18 + $0x18] sm:$0xff]  ;;  %v1402_v12 = vld [vmem:[%s5560_s23] sm:$0xff]  ;;  %v1403_v13 = vld [vmem:[%s5560_s23 + $0x8] sm:$0xff]  ;;  %s1187_s28 = scalar_select %p1186_p13, %s5416_s0, 1 }
  0xa5   : > { %1298 = vmatpush.msra.mxu3 %v1241_v4  ;;  %4950 = vmatmul.msk.f32.vlgmr.msra.gmra.mxu2 %vm1259_vm0, %v5549_v5  ;;  %v1525_v15 = vld [vmem:[%s5566_s26 + $0x60] sm:$0xff]  ;;  %v1526_v16 = vld [vmem:[%s5566_s26 + $0x68] sm:$0xff]  ;;  %v1653_v29 = vld [vmem:[#allocation6] sm:$0x1]  ;;  %s6974_s8 = sld [smem:[#allocation16_spill]]  ;;  %s1185_s3 = scalar_lea.vmem [#allocation12], %s5534_s1 }
  0xa6   : > { %4951 = vmatmul.msk.f32.vlgmr.msra.gmra.mxu3 %vm1259_vm0, %v5549_v5  ;;  %1317 = vmatpush.msrb.mxu2 %v1248_v6  ;;  %v1521_v18 = vld [vmem:[%s5566_s26 + $0x40] sm:$0xff]  ;;  %v1522_v19 = vld [vmem:[%s5566_s26 + $0x48] sm:$0xff]  ;;  %v1651_v39 = vld [vmem:[%s5585_s6 + $0x90] sm:$0xff]  ;;  %s4976_s16 = sshll.u32 %s1187_s28, 4  ;;  %s6977_s28 = sld [smem:[#allocation23_spill]] }
  0xa7   : > { %1337 = vmatpush.msrb.mxu3 %v1249_v7  ;;  %1413 = vperm.xlu0 %5051, %v1410_v14   ;;  %v1517_v21 = vld [vmem:[%s5566_s26 + $0x20] sm:$0xff]  ;;  %v1518_v22 = vld [vmem:[%s5566_s26 + $0x28] sm:$0xff]  ;;  %v5583_v25 = vld [vmem:[%s6971_s4] sm:$0x1]  ;;  %s4761_s4 = sshll.u32 %s1185_s3, 4  ;;  %s4762_s4 = int_to_ptr.vmem [resolvable:$true] %s4761_s4 }
  0xa8   : > { %1318 = vmatpush.msrb.mxu2 %v1242_v8  ;;  %v1513_v23 = vld [vmem:[%s5566_s26] sm:$0xff]  ;;  %v1514_v24 = vld [vmem:[%s5566_s26 + $0x8] sm:$0xff]  ;;  %v5602_v36 = vld [vmem:[%s6972_s12] sm:$0x1]  ;;  %1357 = vmatpush.msra.mxu0 %v1250_v48 }
  0xa9   : > { %1338 = vmatpush.msrb.mxu3 %v1243_v9  ;;  %v1649_v26 = vld [vmem:[%s5585_s6 + $0x80] sm:$0xff]  ;;  %v1650_v27 = vld [vmem:[%s5585_s6 + $0x88] sm:$0xff]  ;;  %1656 = vperm.xlu1 %5052, %v1653_v29   ;;  %v1652_v40 = vld [vmem:[%s5585_s6 + $0x98] sm:$0xff]  ;;  %s1190_s19 = scalar_lea.vmem %s6973_s7, %s4976_s16  ;;  %s7046_s7 = sld [smem:[#allocation24_spill]] }
  0xaa   : > { %1434 = vmatpush.msra.mxu2 %v1406_v10  ;;  %v1212_v28 = vld [vmem:[%s5315_s24] sm:$0xff]  ;;  %v1646_v31 = vld [vmem:[%s5585_s6 + $0x68] sm:$0xff]  ;;  %v1647_v43 = vld [vmem:[%s5585_s6 + $0x70] sm:$0xff] }
  0xab   : > { %1454 = vmatpush.msra.mxu3 %v1407_v11  ;;  %v1645_v30 = vld [vmem:[%s5585_s6 + $0x60] sm:$0xff]  ;;  %v1642_v33 = vld [vmem:[%s5585_s6 + $0x48] sm:$0xff]  ;;  %v1648_v44 = vld [vmem:[%s5585_s6 + $0x78] sm:$0xff]  ;;  %s1195_s20 = scalar_lea.vmem %s6974_s8, %s4976_s16  ;;  %s7047_s8 = sld [smem:[#allocation28_spill]] }
  0xac   : > { %1435 = vmatpush.msra.mxu2 %v1402_v12  ;;  %1790 = vperm.xlu2 %5053, %v1203_v17   ;;  %v1641_v32 = vld [vmem:[%s5585_s6 + $0x40] sm:$0xff]  ;;  %v1638_v35 = vld [vmem:[%s5585_s6 + $0x28] sm:$0xff]  ;;  %v1643_v45 = vld [vmem:[%s5585_s6 + $0x50] sm:$0xff]  ;;  %s7049_s16 = sld [smem:[#allocation27_spill]] }
  0xad   : > { %1455 = vmatpush.msra.mxu3 %v1403_v13  ;;  %4952 = vmatmul.msk.f32.vlgmr.msrb.gmra.mxu2 %vm1259_vm0, %v5549_v5  ;;  %v1637_v34 = vld [vmem:[%s5585_s6 + $0x20] sm:$0xff]  ;;  %v1634_v38 = vld [vmem:[%s5585_s6 + $0x8] sm:$0xff]  ;;  %v1644_v46 = vld [vmem:[%s5585_s6 + $0x58] sm:$0xff] }
  0xae   : > { %4953 = vmatmul.msk.f32.vlgmr.msrb.gmra.mxu3 %vm1259_vm0, %v5549_v5  ;;  %1552 = vmatpush.msrb.mxu2 %v1525_v15  ;;  %v1633_v37 = vld [vmem:[%s5585_s6] sm:$0xff]  ;;  %v1632_v47 = vld [vmem:[%s5353_s30] sm:$0x1]  ;;  %v1639_v50 = vld [vmem:[%s5585_s6 + $0x30] sm:$0xff] }
  0xaf   : > { %1572 = vmatpush.msrb.mxu3 %v1526_v16  ;;  %v1251_v49 = vld [vmem:[%s5542_s18 + $0x58] sm:$0xff]  ;;  %v1244_v52 = vld [vmem:[%s5542_s18 + $0x20] sm:$0xff]  ;;  %v1245_v53 = vld [vmem:[%s5542_s18 + $0x28] sm:$0xff]  ;;  %s6975_s18 = sld [smem:[#allocation18_spill]] }
  0xb0   : > { %1553 = vmatpush.msrb.mxu2 %v1521_v18  ;;  %v1640_v51 = vld [vmem:[%s5585_s6 + $0x38] sm:$0xff]  ;;  %1377 = vmatpush.msra.mxu1 %v1251_v49  ;;  %v1635_v54 = vld [vmem:[%s5585_s6 + $0x10] sm:$0xff]  ;;  %v1757_v56 = vld [vmem:[%s1190_s19 + $0x8] sm:$0xff] }
  0xb1   : > { %1573 = vmatpush.msrb.mxu3 %v1522_v19  ;;  %2207 = vperm.xlu1 %5052, %v1213_v42   ;;  %v1636_v55 = vld [vmem:[%s5585_s6 + $0x18] sm:$0xff]  ;;  %v1759_v57 = vld [vmem:[%s1195_s20 + $0x8] sm:$0xff]  ;;  %v1408_v63 = vld [vmem:[%s5560_s23 + $0x30] sm:$0xff]  ;;  %s6976_s6 = sld [smem:[#allocation20_spill]] }
  0xb2   : > { %1554 = vmatpush.msrb.mxu2 %v1517_v21  ;;  %v1217_v58 = vld [vmem:[%s5315_s24 + $0x28] sm:$0xff]  ;;  %v1216_v59 = vld [vmem:[%s5315_s24 + $0x20] sm:$0xff]  ;;  %1358 = vmatpush.msra.mxu0 %v1244_v52  ;;  %v1215_v1 = vld [vmem:[%s5315_s24 + $0x18] sm:$0xff] }
  0xb3   : > { %1574 = vmatpush.msrb.mxu3 %v1518_v22  ;;  %1378 = vmatpush.msra.mxu1 %v1245_v53  ;;  %v1756_v60 = vld [vmem:[%s1190_s19] sm:$0xff]  ;;  %v1404_v2 = vld [vmem:[%s5560_s23 + $0x10] sm:$0xff]  ;;  %v1229_v17 = vld [vmem:[%s6977_s28 + $0x8] sm:$0xff]  ;;  %s7055_s19 = sld [smem:[#allocation29_spill]] }
  0xb4   : > { %1555 = vmatpush.msrb.mxu2 %v1513_v23  ;;  %2202 = vperm.xlu2 %5053, %v1212_v28   ;;  %v1758_v61 = vld [vmem:[%s1195_s20] sm:$0xff]  ;;  %v1527_v4 = vld [vmem:[%s5566_s26 + $0x70] sm:$0xff]  ;;  %v1233_v19 = vld [vmem:[%s6977_s28 + $0x28] sm:$0xff]  ;;  %s7058_s20 = sld [smem:[#allocation30_spill]] }
  0xb5   : > { %1575 = vmatpush.msrb.mxu3 %v1514_v24  ;;  %4956 = vmatmul.msk.f32.vlgmr.msra.gmra.mxu2 %vm1259_vm0, %v5583_v25  ;;  %v1409_v0 = vld [vmem:[%s5560_s23 + $0x38] sm:$0xff]  ;;  %v1218_v8 = vld [vmem:[%s5315_s24 + $0x30] sm:$0xff] }
  0xb6   : > { %4957 = vmatmul.msk.f32.vlgmr.msra.gmra.mxu3 %vm1259_vm0, %v5583_v25  ;;  %1675 = vmatpush.msra.mxu2 %v1649_v26  ;;  %v1405_v3 = vld [vmem:[%s5560_s23 + $0x18] sm:$0xff]  ;;  %v1519_v12 = vld [vmem:[%s5566_s26 + $0x30] sm:$0xff]  ;;  %s6999_s23 = sld [smem:[#allocation21_spill]] }
  0xb7   : > { %1695 = vmatpush.msra.mxu3 %v1650_v27  ;;  %4954 = vmatmul.msk.f32.vlgmr.msra.gmra.mxu0 %vm1259_vm0, %v5549_v5  ;;  %v1528_v6 = vld [vmem:[%s5566_s26 + $0x78] sm:$0xff]  ;;  %v1515_v14 = vld [vmem:[%s5566_s26 + $0x10] sm:$0xff] }
  0xb8   : > { %1676 = vmatpush.msra.mxu2 %v1645_v30  ;;  %4955 = vmatmul.msk.f32.vlgmr.msra.gmra.mxu1 %vm1259_vm0, %v5549_v5  ;;  %v1219_v7 = vld [vmem:[%s5315_s24 + $0x38] sm:$0xff]  ;;  %v1200_v10 = vld [vmem:[%s6975_s18] sm:$0xff]  ;;  %v1230_v16 = vld [vmem:[%s6977_s28 + $0x10] sm:$0xff]  ;;  %v1825_v30 = vlaneseq  ;;  %s7074_s18 = sld [smem:[#allocation31_spill]] }
  0xb9   : > { %1696 = vmatpush.msra.mxu3 %v1646_v31  ;;  %2222 = vperm.xlu1 %5052, %v1216_v59   ;;  %v1523_v5 = vld [vmem:[%s5566_s26 + $0x50] sm:$0xff]  ;;  %v1524_v9 = vld [vmem:[%s5566_s26 + $0x58] sm:$0xff] }
  0xba   : > { %1677 = vmatpush.msra.mxu2 %v1641_v32  ;;  %1474 = vmatpush.msrb.mxu0 %v1408_v63  ;;  %v1202_v11 = vld [vmem:[%s6976_s6] sm:$0xff]  ;;  %v1231_v21 = vld [vmem:[%s6977_s28 + $0x18] sm:$0xff]  ;;  %v1234_v23 = vld [vmem:[%s6977_s28 + $0x30] sm:$0xff] }
  0xbb   : > { %1697 = vmatpush.msra.mxu3 %v1642_v33  ;;  %1494 = vmatpush.msrb.mxu1 %v1409_v0  ;;  %v1520_v13 = vld [vmem:[%s5566_s26 + $0x38] sm:$0xff] }
  0xbc   : > { %1678 = vmatpush.msra.mxu2 %v1637_v34  ;;  %2212 = vperm.xlu2 %5053, %v1214_v41   ;;  %v1516_v15 = vld [vmem:[%s5566_s26 + $0x18] sm:$0xff]  ;;  %s7000_s26 = sld [smem:[#allocation22_spill]] }
  0xbd   : > { %1698 = vmatpush.msra.mxu3 %v1638_v35  ;;  %4960 = vmatmul.msk.f32.vlgmr.msrb.gmra.mxu2 %vm1536_vm1, %v5602_v36  ;;  %v1228_v18 = vld [vmem:[%s6977_s28] sm:$0xff]  ;;  %v1235_v22 = vld [vmem:[%s6977_s28 + $0x38] sm:$0xff]  ;;  %v5683_v35 = vshrl.u32 %v1825_v30, 7 }
  0xbe   : > { %4961 = vmatmul.msk.f32.vlgmr.msrb.gmra.mxu3 %vm1536_vm1, %v5602_v36  ;;  %1679 = vmatpush.msra.mxu2 %v1633_v37  ;;  %v1232_v20 = vld [vmem:[%s6977_s28 + $0x20] sm:$0xff]  ;;  %s4759_s6 = scalar_lea.hbm %s7074_s18, %s5416_s0  ;;  %s4751_s0 = scalar_lea.sflag [#allocation13], %s5534_s1 }
  0xbf   : > { %1699 = vmatpush.msra.mxu3 %v1634_v38  ;;  %2217 = vperm.xlu0 %5051, %v1215_v1   ;;  %v5688_v37 = vadd.s32 8, %v5683_v35  ;;  %s5178_s13 = scalar_lea.hbm %s7074_s18, 2 }
  0xc0   : > { %1715 = vmatpush.msrb.mxu2 %v1651_v39  ;;  %1475 = vmatpush.msrb.mxu0 %v1404_v2 }
  0xc1   : > { %1735 = vmatpush.msrb.mxu3 %v1652_v40  ;;  %1495 = vmatpush.msrb.mxu1 %v1405_v3 }
  0xc2   : > { %1716 = vmatpush.msrb.mxu2 %v1647_v43  ;;  %1592 = vmatpush.msra.mxu0 %v1527_v4 }
  0xc3   : > { %1736 = vmatpush.msrb.mxu3 %v1648_v44  ;;  %1612 = vmatpush.msra.mxu1 %v1528_v6 }
  0xc4   : > { %1717 = vmatpush.msrb.mxu2 %v1643_v45  ;;  %2227 = vperm.xlu2 %5053, %v1217_v58  }
  0xc5   : > { %1737 = vmatpush.msrb.mxu3 %v1644_v46  ;;  %4964 = vmatmul.msk.f32.vlgmr.msra.gmra.mxu2 %vm1660_vm2, %v1632_v47 }
  0xc6   : > { %4965 = vmatmul.msk.f32.vlgmr.msra.gmra.mxu3 %vm1660_vm2, %v1632_v47  ;;  %1718 = vmatpush.msrb.mxu2 %v1639_v50 }
  0xc7   : > { %1738 = vmatpush.msrb.mxu3 %v1640_v51  ;;  %2232 = vperm.xlu1 %5052, %v1218_v8  }
  0xc8   : > { %1719 = vmatpush.msrb.mxu2 %v1635_v54  ;;  %1593 = vmatpush.msra.mxu0 %v1523_v5 }
  0xc9   : > { %1739 = vmatpush.msrb.mxu3 %v1636_v55  ;;  %1613 = vmatpush.msra.mxu1 %v1524_v9 }
  0xca   : > { %1782 = vmatpush.msra.mxu2 %v1757_v56  ;;  %4958 = vmatmul.msk.f32.vlgmr.msrb.gmra.mxu0 %vm1259_vm0, %v5583_v25 }
  0xcb   : > { %1810 = vmatpush.msra.mxu3 %v1759_v57  ;;  %4959 = vmatmul.msk.f32.vlgmr.msrb.gmra.mxu1 %vm1259_vm0, %v5583_v25 }
  0xcc   : > { %1783 = vmatpush.msra.mxu2 %v1756_v60  ;;  %2237 = vperm.xlu2 %5053, %v1219_v7  }
  0xcd   : > { %1811 = vmatpush.msra.mxu3 %v1758_v61  ;;  %4966 = vmatmul.msk.f32.vlgmr.msrb.gmra.mxu2 %vm1660_vm2, %v1632_v47 }
  0xce   : > { %4967 = vmatmul.msk.f32.vlgmr.msrb.gmra.mxu3 %vm1660_vm2, %v1632_v47  ;;  %1594 = vmatpush.msra.mxu0 %v1519_v12 }
  0xcf   : > { %1614 = vmatpush.msra.mxu1 %v1520_v13  ;;  %2288 = vperm.xlu1 %5052, %v1229_v17  }
  0xd0   : > { %1595 = vmatpush.msra.mxu0 %v1515_v14  ;;  %2283 = vperm.xlu0 %5051, %v1228_v18  }
  0xd1   : > { %1615 = vmatpush.msra.mxu1 %v1516_v15 }
  0xd2   : > { %4962 = vmatmul.msk.f32.vlgmr.msra.gmra.mxu0 %vm1536_vm1, %v5602_v36 }
  0xd3   : > { %4963 = vmatmul.msk.f32.vlgmr.msra.gmra.mxu1 %vm1536_vm1, %v5602_v36 }
  0xd4   : > { %2293 = vperm.xlu2 %5053, %v1230_v16  }
  0xd5   : > { %4968 = vmatmul.msk.f32.vlgmr.msra.gmra.mxu2 %vm1259_vm0, %v1200_v10 }
  0xd6   : > { %4969 = vmatmul.msk.f32.vlgmr.msra.gmra.mxu3 %vm1259_vm0, %v1202_v11 }
  0xd7   : > { %2303 = vperm.xlu1 %5052, %v1232_v20  }
  0xd8   : > { %2298 = vperm.xlu0 %5051, %v1231_v21  }
  0xdc   : > { %2308 = vperm.xlu2 %5053, %v1233_v19  }
  0xdf   : > { %2318 = vperm.xlu1 %5052, %v1235_v22  }
  0xe0   : > { %2313 = vperm.xlu0 %5051, %v1234_v23  }
  0xe4   : > { %5056 = vset.pattern.permute.xlu2 %v5683_v35 }
  0xe7   : > { %5055 = vset.pattern.permute.xlu1 %v5688_v37 }
  0xe8   : > { %5054 = vset.pattern.permute.xlu0 %v5683_v35 }
  0xfe   : > { %v1763_v55 = vpop.permute.xlu2 %1762 }
 0x106   : > { %v1791_v61 = vpop.permute.xlu2 %1790 }
 0x10e   : > { %v5745_v15 = vpop.permute.xlu2 %2202 }
 0x111   : > { %v1256_v24 = vpop.permute.xlu0 %1255 }
 0x112   : > { %v1258_v25 = vperm.slane %v1256_v24, 0 }
 0x113   : > { %v1533_v39 = vpop.permute.xlu1 %1532 }
 0x114   : > { %v5695_v44 = vperm.slane %v1533_v39, 0 }
 0x116   : > { %6984 = vst [vmem:[#allocation38_spill] sm:$0xff] %v5695_v44  ;;  %v5753_v19 = vpop.permute.xlu2 %2212 }
 0x119   : > { %v1414_v36 = vpop.permute.xlu0 %1413 }
 0x11a   : > { %v1416_v38 = vperm.slane %v1414_v36, 0 }
 0x11b   : > { %v1657_v49 = vpop.permute.xlu1 %1656 }
 0x11c   : > { %v5703_v50 = vperm.slane %v1657_v49, 0 }
 0x11e   : > { %6987 = vst [vmem:[#allocation41_spill] sm:$0xff] %v5703_v50  ;;  %v5763_v22 = vpop.permute.xlu2 %2227 }
 0x123   : > { %v5755_v20 = vpop.permute.xlu1 %2207 }
 0x128   : > { %v1280_v26 = vpop.f32.mrf.mxu2 }
 0x129   : > { %v1300_v27 = vpop.f32.mrf.mxu3  ;;  %v5675_v28 = vadd.f32 %v1280_v26, %v1258_v25  ;;  %v5769_v26 = vpop.permute.xlu2 %2237 }
 0x12a   : > { %v5677_v29 = vadd.f32 %v1300_v27, %v1258_v25 }
 0x12b   : > { %6978 = vst [vmem:[#allocation32_spill] sm:$0xff] %v5675_v28  ;;  %v5765_v23 = vpop.permute.xlu1 %2222 }
 0x12c   : > { %6979 = vst [vmem:[#allocation33_spill] sm:$0xff] %v5677_v29 }
 0x130   : > { %v1320_v31 = vpop.f32.mrf.mxu2 }
 0x131   : > { %v1340_v32 = vpop.f32.mrf.mxu3  ;;  %v5679_v33 = vadd.f32 %v1320_v31, %v1258_v25  ;;  %v5777_v31 = vpop.permute.xlu2 %2293 }
 0x132   : > { %v5681_v34 = vadd.f32 %v1340_v32, %v1258_v25 }
 0x133   : > { %6980 = vst [vmem:[#allocation34_spill] sm:$0xff] %v5679_v33 }
 0x134   : > { %6981 = vst [vmem:[#allocation35_spill] sm:$0xff] %v5681_v34  ;;  %v1360_v58 = vpop.f32.mrf.mxu0 }
 0x135   : > { %v5714_v59 = vadd.f32 %v1360_v58, %v1258_v25  ;;  %v1380_v60 = vpop.f32.mrf.mxu1 }
 0x136   : > { %v5716_v0 = vadd.f32 %v1380_v60, %v1258_v25 }
 0x137   : > { %6991 = vst [vmem:[#allocation45_spill] sm:$0xff] %v5714_v59 }
 0x138   : > { %v1437_v40 = vpop.f32.mrf.mxu2  ;;  %6992 = vst [vmem:[#allocation46_spill] sm:$0xff] %v5716_v0 }
 0x139   : > { %v1457_v41 = vpop.f32.mrf.mxu3  ;;  %v5691_v42 = vadd.f32 %v1437_v40, %v1416_v38  ;;  %v5771_v27 = vpop.permute.xlu1 %2232 }
 0x13a   : > { %v5693_v43 = vadd.f32 %v1457_v41, %v1416_v38  ;;  %v5784_v39 = vpop.permute.xlu2 %2308 }
 0x13b   : > { %6982 = vst [vmem:[#allocation36_spill] sm:$0xff] %v5691_v42 }
 0x13c   : > { %6983 = vst [vmem:[#allocation37_spill] sm:$0xff] %v5693_v43 }
 0x140   : > { %v1557_v45 = vpop.f32.mrf.mxu2 }
 0x141   : > { %v1577_v46 = vpop.f32.mrf.mxu3  ;;  %v5698_v47 = vadd.f32 %v1557_v45, %v5695_v44  ;;  %v5780_v36 = vpop.permute.xlu1 %2288 }
 0x142   : > { %v5701_v48 = vadd.f32 %v1577_v46, %v5695_v44 }
 0x143   : > { %6985 = vst [vmem:[#allocation39_spill] sm:$0xff] %v5698_v47 }
 0x144   : > { %6986 = vst [vmem:[#allocation40_spill] sm:$0xff] %v5701_v48 }
 0x147   : > { %v1477_v4 = vpop.f32.mrf.mxu0 }
 0x148   : > { %v1681_v51 = vpop.f32.mrf.mxu2  ;;  %v5726_v6 = vadd.f32 %v1477_v4, %v1416_v38  ;;  %v1497_v7 = vpop.f32.mrf.mxu1 }
 0x149   : > { %v1701_v52 = vpop.f32.mrf.mxu3  ;;  %v5706_v53 = vadd.f32 %v1681_v51, %v5703_v50  ;;  %v5728_v8 = vadd.f32 %v1497_v7, %v1416_v38  ;;  %v5782_v38 = vpop.permute.xlu0 %2217 }
 0x14a   : > { %v5709_v54 = vadd.f32 %v1701_v52, %v5703_v50  ;;  %6993 = vst [vmem:[#allocation47_spill] sm:$0xff] %v5726_v6  ;;  %v5787_v40 = vpop.permute.xlu1 %2303 }
 0x14b   : > { %6988 = vst [vmem:[#allocation42_spill] sm:$0xff] %v5706_v53 }
 0x14c   : > { %6989 = vst [vmem:[#allocation43_spill] sm:$0xff] %v5709_v54 }
 0x14d   : > { %6994 = vst [vmem:[#allocation48_spill] sm:$0xff] %v5728_v8 }
 0x14e   : > { %6996 = vst [vmem:[#allocation50_spill] sm:$0xff] %v5787_v40 }
 0x150   : > { %v5741_v12 = vpop.f32.mrf.mxu2 }
 0x151   : > { %v1741_v56 = vpop.f32.mrf.mxu3  ;;  %6995 = vst [vmem:[#allocation49_spill] sm:$0xff] %v5741_v12  ;;  %v5789_v41 = vpop.permute.xlu0 %2283 }
 0x152   : > { %v5712_v57 = vadd.f32 %v1741_v56, %v5703_v50  ;;  %v5795_v46 = vpop.permute.xlu1 %2318 }
 0x153   : > { %6997 = vst [vmem:[#allocation51_spill] sm:$0xff] %v5795_v46 }
 0x154   : > { %6990 = vst [vmem:[#allocation44_spill] sm:$0xff] %v5712_v57 }
 0x158   : > { %v1785_v16 = vpop.f32.mrf.mxu2 }
 0x159   : > { %v1813_v63 = vpop.f32.mrf.mxu3  ;;  %v5748_v17 = vadd.f32 %v1785_v16, %v1763_v55  ;;  %v5798_v51 = vpop.permute.xlu0 %2298 }
 0x15a   : > { %v5718_v1 = vadd.f32 %v1813_v63, %v1791_v61 }
 0x15b   : > { %v2034_v18 = vperm.slane %v5748_v17, 2  ;;  %v5758_v21 = vperm.slane %v5748_v17, 0  ;;  %v2021_v24 = vperm.slane %v5748_v17, 1  ;;  %v2060_v25 = vperm.slane %v5748_v17, 4 }
 0x15c   : > { %v1837_v2 = vperm.slane %v5718_v1, 1  ;;  %v5722_v3 = vperm.slane %v5718_v1, 0  ;;  %v1850_v5 = vperm.slane %v5718_v1, 2  ;;  %v1863_v9 = vperm.slane %v5718_v1, 3 }
 0x15d   : > { %v1876_v10 = vperm.slane %v5718_v1, 4  ;;  %v1889_v11 = vperm.slane %v5718_v1, 5  ;;  %v1902_v13 = vperm.slane %v5718_v1, 6  ;;  %v1915_v14 = vperm.slane %v5718_v1, 7 }
 0x15e   : > { %1842 = vperm.xlu2 %5056, %v1837_v2   ;;  %1835 = vperm.xlu1 %5055, %v5722_v3   ;;  %v2047_v30 = vperm.slane %v5748_v17, 3  ;;  %v2099_v32 = vperm.slane %v5748_v17, 7  ;;  %v2073_v49 = vperm.slane %v5748_v17, 5  ;;  %v2086_v56 = vperm.slane %v5748_v17, 6 }
 0x15f   : > { %1829 = vperm.xlu0 %5054, %v5722_v3   ;;  %v1820_v57 = vrot.slane %v5748_v17, 4 }
 0x161   : > { %v5805_v58 = vpop.permute.xlu0 %2313 }
 0x162   : > { %6998 = vst [vmem:[#allocation52_spill] sm:$0xff] %v5805_v58 }
 0x166   : > { %1855 = vperm.xlu2 %5056, %v1850_v5   ;;  %1848 = vperm.xlu1 %5055, %v1837_v2  }
 0x167   : > { %5057 = vset.pattern.permute.xlu0 %v5688_v37 }
 0x16e   : > { %5059 = vset.pattern.permute.xlu2 %v5688_v37  ;;  %5058 = vset.pattern.permute.xlu1 %v5683_v35 }
 0x16f   : > { %1861 = vperm.xlu0 %5057, %v1850_v5  }
 0x176   : > { %1874 = vperm.xlu2 %5059, %v1863_v9   ;;  %1868 = vperm.xlu1 %5058, %v1863_v9  }
 0x177   : > { %5060 = vset.pattern.permute.xlu0 %v5683_v35 }
 0x17e   : > { %1887 = vperm.xlu2 %5059, %v1876_v10   ;;  %1881 = vperm.xlu1 %5058, %v1876_v10  }
 0x17f   : > { %1894 = vperm.xlu0 %5060, %v1889_v11  }
 0x186   : > { %5062 = vset.pattern.permute.xlu2 %v5683_v35  ;;  %5061 = vset.pattern.permute.xlu1 %v5688_v37 }
 0x187   : > { %5063 = vset.pattern.permute.xlu0 %v5688_v37 }
 0x18e   : > { %1907 = vperm.xlu2 %5062, %v1902_v13   ;;  %1900 = vperm.xlu1 %5061, %v1889_v11   ;;  %v1823_v11 = vrot.slane %v5748_v17, 7 }
 0x18f   : > { %1926 = vperm.xlu0 %5063, %v1915_v14  }
 0x196   : > { %1920 = vperm.xlu2 %5062, %v1915_v14   ;;  %1913 = vperm.xlu1 %5061, %v1902_v13   ;;  %v1935_v14 = vperm.slane %v1823_v11, 0 }
 0x197   : > { %5066 = vset.pattern.permute.xlu0 %v5683_v35 }
 0x19e   : > { %5065 = vset.pattern.permute.xlu2 %v5688_v37  ;;  %5064 = vset.pattern.permute.xlu1 %v5683_v35 }
 0x19f   : > { %2039 = vperm.xlu0 %5066, %v2034_v18  }
 0x1a6   : > { %2019 = vperm.xlu2 %5065, %v5758_v21   ;;  %2013 = vperm.xlu1 %5064, %v5758_v21  }
 0x1a7   : > { %5069 = vset.pattern.permute.xlu0 %v5688_v37 }
 0x1ae   : > { %2032 = vperm.xlu2 %5065, %v2021_v24   ;;  %2026 = vperm.xlu1 %5064, %v2021_v24   ;;  %v1822_v24 = vrot.slane %v5748_v17, 6 }
 0x1af   : > { %2071 = vperm.xlu0 %5069, %v2060_v25  }
 0x1b0   : > { %v1934_v62 = vperm.slane %v1822_v24, 0 }
 0x1b6   : > { %5068 = vset.pattern.permute.xlu2 %v5683_v35  ;;  %5067 = vset.pattern.permute.xlu1 %v5688_v37 }
 0x1b7   : > { %5072 = vset.pattern.permute.xlu0 %v5683_v35 }
 0x1b8   : > { %v5793_v45 = vpop.permute.xlu2 %1842 }
 0x1be   : > { %2052 = vperm.xlu2 %5068, %v2047_v30   ;;  %2045 = vperm.xlu1 %5067, %v2034_v18  }
 0x1bf   : > { %2104 = vperm.xlu0 %5072, %v2099_v32  }
 0x1c0   : > { %v5800_v52 = vpop.permute.xlu2 %1855 }
 0x1c6   : > { %2065 = vperm.xlu2 %5068, %v2060_v25   ;;  %2058 = vperm.xlu1 %5067, %v2047_v30  }
 0x1c7   : > { %5075 = vset.pattern.permute.xlu0 %v5688_v37 }
 0x1ce   : > { %5071 = vset.pattern.permute.xlu2 %v5688_v37  ;;  %5070 = vset.pattern.permute.xlu1 %v5683_v35 }
 0x1d0   : > { %v5802_v55 = vpop.permute.xlu1 %1835  ;;  %v1875_v60 = vpop.permute.xlu2 %1874 }
 0x1d1   : > { %v5811_v63 = vpop.permute.xlu0 %1829 }
 0x1d6   : > { %2084 = vperm.xlu2 %5071, %v2073_v49   ;;  %2078 = vperm.xlu1 %5070, %v2073_v49   ;;  %v1821_v49 = vrot.slane %v5748_v17, 5 }
 0x1d8   : > { %v5807_v61 = vpop.permute.xlu1 %1848  ;;  %v1888_v2 = vpop.permute.xlu2 %1887  ;;  %v1933_v48 = vperm.slane %v1821_v49, 0 }
 0x1de   : > { %2097 = vperm.xlu2 %5071, %v2086_v56   ;;  %2091 = vperm.xlu1 %5070, %v2086_v56  }
 0x1e1   : > { %v1862_v7 = vpop.permute.xlu0 %1861 }
 0x1e6   : > { %5073 = vset.pattern.permute.xlu1 %v5688_v37  ;;  %5074 = vset.pattern.permute.xlu2 %v5683_v35 }
 0x1e8   : > { %v1869_v4 = vpop.permute.xlu1 %1868  ;;  %v1908_v5 = vpop.permute.xlu2 %1907 }
 0x1e9   : > { %v1956_v53 = vadd.f32 %v1934_v62, %v1908_v5  ;;  %v1818_v5 = vrot.slane %v5748_v17, 2 }
 0x1eb   : > { %v1988_v29 = vmul.f32 0.33, %v1956_v53  ;;  %vm1972_vm6 = vcmp.ge.f32.partialorder %v1956_v53, 0.0 }
 0x1ee   : > { %2110 = vperm.xlu1 %5073, %v2099_v32  }
 0x1f0   : > { %v1882_v9 = vpop.permute.xlu1 %1881  ;;  %v1921_v13 = vpop.permute.xlu2 %1920 }
 0x1f1   : > { %v1895_v10 = vpop.permute.xlu0 %1894  ;;  %v1958_v16 = vadd.f32 %v1935_v14, %v1921_v13 }
 0x1f2   : > { %v1954_v34 = vadd.f32 %v1933_v48, %v1895_v10  ;;  %v1817_v10 = vrot.slane %v5748_v17, 1 }
 0x1f3   : > { %v1990_v56 = vmul.f32 0.33, %v1958_v16  ;;  %vm1974_vm4 = vcmp.ge.f32.partialorder %v1958_v16, 0.0 }
 0x1f4   : > { %vm1970_vm8 = vcmp.ge.f32.partialorder %v1954_v34, 0.0 }
 0x1f5   : > { %v2006_v13 = vsel %vm1974_vm4, %v1958_v16, %v1990_v56 }
 0x1f6   : > { %5076 = vset.pattern.permute.xlu1 %v5683_v35 }
 0x200   : > { %v1901_v18 = vpop.permute.xlu1 %1900 }
 0x201   : > { %v1927_v25 = vpop.permute.xlu0 %1926  ;;  %v1955_v47 = vadd.f32 %v1933_v48, %v1901_v18  ;;  %v1986_v18 = vmul.f32 0.33, %v1954_v34 }
 0x202   : > { %v1959_v30 = vadd.f32 %v1935_v14, %v1927_v25  ;;  %v1819_v14 = vrot.slane %v5748_v17, 3  ;;  %v1932_v25 = vperm.slane %v1820_v57, 0 }
 0x203   : > { %v1987_v6 = vmul.f32 0.33, %v1955_v47  ;;  %vm1971_vm7 = vcmp.ge.f32.partialorder %v1955_v47, 0.0 }
 0x204   : > { %vm1975_vm3 = vcmp.ge.f32.partialorder %v1959_v30, 0.0  ;;  %v1991_v32 = vmul.f32 0.33, %v1959_v30  ;;  %v1953_v24 = vadd.f32 %v1932_v25, %v1888_v2  ;;  %v1952_v16 = vadd.f32 %v1932_v25, %v1882_v9 }
 0x205   : > { %v2003_v57 = vsel %vm1971_vm7, %v1955_v47, %v1987_v6  ;;  %v1930_v2 = vperm.slane %v1818_v5, 0 }
 0x206   : > { %v2007_v54 = vsel %vm1975_vm3, %v1959_v30, %v1991_v32  ;;  %v1985_v48 = vmul.f32 0.33, %v1953_v24  ;;  %vm1969_vm9 = vcmp.ge.f32.partialorder %v1953_v24, 0.0  ;;  %v1984_v49 = vmul.f32 0.33, %v1952_v16 }
 0x207   : > { %2240 = vmatpush.msrb.mxu0 %v2007_v54  ;;  %v1931_v54 = vperm.slane %v1819_v14, 0  ;;  %vm1968_vm10 = vcmp.ge.f32.partialorder %v1952_v16, 0.0 }
 0x208   : > { %v1914_v11 = vpop.permute.xlu1 %1913  ;;  %v2001_v32 = vsel %vm1969_vm9, %v1953_v24, %v1985_v48  ;;  %v2000_v47 = vsel %vm1968_vm10, %v1952_v16, %v1984_v49  ;;  %v1204_v16 = vld [vmem:[%s6999_s23] sm:$0xff] }
 0x209   : > { %v1957_v0 = vadd.f32 %v1934_v62, %v1914_v11  ;;  %2241 = vmatpush.msrb.mxu0 %v2006_v13  ;;  %v2004_v62 = vsel %vm1972_vm6, %v1956_v53, %v1988_v29  ;;  %v1951_v30 = vadd.f32 %v1931_v54, %v1875_v60  ;;  %v1929_v29 = vperm.slane %v1817_v10, 0  ;;  %v1208_v49 = vld [vmem:[%s6999_s23 + $0x20] sm:$0xff] }
 0x20a   : > { %v1948_v53 = vadd.f32 %v1930_v2, %v5800_v52  ;;  %v1945_v11 = vadd.f32 %v5758_v21, %v5802_v55 }
 0x20b   : > { %vm1973_vm5 = vcmp.ge.f32.partialorder %v1957_v0, 0.0  ;;  %v1989_v33 = vmul.f32 0.33, %v1957_v0  ;;  %v1983_v9 = vmul.f32 0.33, %v1951_v30  ;;  %vm1967_vm11 = vcmp.ge.f32.partialorder %v1951_v30, 0.0 }
 0x20c   : > { %v1947_v17 = vadd.f32 %v1929_v29, %v5807_v61  ;;  %v1980_v56 = vmul.f32 0.33, %v1948_v53  ;;  %vm1964_vm14 = vcmp.ge.f32.partialorder %v1948_v53, 0.0  ;;  %v1944_v61 = vadd.f32 %v5758_v21, %v5811_v63  ;;  %v1205_v63 = vld [vmem:[%s6999_s23 + $0x8] sm:$0xff] }
 0x20d   : > { %v2005_v8 = vsel %vm1973_vm5, %v1957_v0, %v1989_v33  ;;  %v1950_v33 = vadd.f32 %v1931_v54, %v1869_v4  ;;  %v2002_v0 = vsel %vm1970_vm8, %v1954_v34, %v1986_v18  ;;  %v1999_v4 = vsel %vm1967_vm11, %v1951_v30, %v1983_v9 }
 0x20e   : > { %2242 = vmatpush.msrb.mxu0 %v2005_v8  ;;  %v1949_v8 = vadd.f32 %v1930_v2, %v1862_v7  ;;  %v1946_v34 = vadd.f32 %v1929_v29, %v5793_v45  ;;  %v1979_v13 = vmul.f32 0.33, %v1947_v17  ;;  %vm1963_vm15 = vcmp.ge.f32.partialorder %v1947_v17, 0.0  ;;  %v1207_v2 = vld [vmem:[%s6999_s23 + $0x18] sm:$0xff]  ;;  %v1209_v29 = vld [vmem:[%s6999_s23 + $0x28] sm:$0xff] }
 0x20f   : > { %v1982_v6 = vmul.f32 0.33, %v1950_v33  ;;  %vm1966_vm12 = vcmp.ge.f32.partialorder %v1950_v33, 0.0  ;;  %v1996_v14 = vsel %vm1964_vm14, %v1948_v53, %v1980_v56  ;;  %v1977_v24 = vmul.f32 0.33, %v1945_v11 }
 0x210   : > { %2243 = vmatpush.msrb.mxu0 %v2004_v62  ;;  %v1981_v60 = vmul.f32 0.33, %v1949_v8  ;;  %vm1965_vm13 = vcmp.ge.f32.partialorder %v1949_v8, 0.0  ;;  %v1978_v25 = vmul.f32 0.33, %v1946_v34  ;;  %vm1962_vm0 = vcmp.ge.f32.partialorder %v1946_v34, 0.0  ;;  %v5832_v62 = vpop.permute.xlu2 %2019 }
 0x211   : > { %v1998_v7 = vsel %vm1966_vm12, %v1950_v33, %v1982_v6  ;;  %v1995_v45 = vsel %vm1963_vm15, %v1947_v17, %v1979_v13  ;;  %vm1961_vm1 = vcmp.ge.f32.partialorder %v1945_v11, 0.0  ;;  %v1976_v5 = vmul.f32 0.33, %v1944_v61  ;;  %v1210_v6 = vld [vmem:[%s6999_s23 + $0x30] sm:$0xff] }
 0x212   : > { %2244 = vmatpush.msrb.mxu0 %v2003_v57  ;;  %v1997_v52 = vsel %vm1965_vm13, %v1949_v8, %v1981_v60  ;;  %v1994_v55 = vsel %vm1962_vm0, %v1946_v34, %v1978_v25  ;;  %vm1960_vm2 = vcmp.ge.f32.partialorder %v1944_v61, 0.0  ;;  %v1993_v54 = vsel %vm1961_vm1, %v1945_v11, %v1977_v24  ;;  %v1206_v57 = vld [vmem:[%s6999_s23 + $0x10] sm:$0xff]  ;;  %v5845_v8 = vpop.permute.xlu0 %2039 }
 0x213   : > { %v1992_v18 = vsel %vm1960_vm2, %v1944_v61, %v1976_v5  ;;  %v2119_v60 = vrot.slane %v5718_v1, 7  ;;  %v2117_v56 = vrot.slane %v5718_v1, 5  ;;  %v2116_v24 = vrot.slane %v5718_v1, 4 }
 0x214   : > { %2245 = vmatpush.msrb.mxu0 %v2002_v0 }
 0x215   : > { %v2125_v5 = vperm.slane %v2117_v56, 0 }
 0x216   : > { %2246 = vmatpush.msrb.mxu0 %v2001_v32 }
 0x218   : > { %2247 = vmatpush.msrb.mxu0 %v2000_v47  ;;  %v5829_v21 = vpop.permute.xlu1 %2013  ;;  %v5837_v48 = vpop.permute.xlu2 %2032 }
 0x21a   : > { %2248 = vmatpush.msrb.mxu0 %v1999_v4  ;;  %v2118_v4 = vrot.slane %v5718_v1, 6 }
 0x21c   : > { %2249 = vmatpush.msrb.mxu0 %v1998_v7  ;;  %v2127_v7 = vperm.slane %v2119_v60, 0  ;;  %v2126_v61 = vperm.slane %v2118_v4, 0 }
 0x21e   : > { %2250 = vmatpush.msrb.mxu0 %v1997_v52  ;;  %v1211_v52 = vld [vmem:[%s6999_s23 + $0x38] sm:$0xff] }
 0x220   : > { %2251 = vmatpush.msrb.mxu0 %v1996_v14  ;;  %v5834_v30 = vpop.permute.xlu1 %2026  ;;  %v5842_v33 = vpop.permute.xlu2 %2052 }
 0x221   : > { %v2072_v53 = vpop.permute.xlu0 %2071 }
 0x222   : > { %2252 = vmatpush.msrb.mxu0 %v1995_v45 }
 0x224   : > { %2253 = vmatpush.msrb.mxu0 %v1994_v55 }
 0x226   : > { %2254 = vmatpush.msrb.mxu0 %v1993_v54 }
 0x228   : > { %2255 = vmatpush.msrb.mxu0 %v1992_v18  ;;  %v2066_v32 = vpop.permute.xlu2 %2065 }
 0x229   : > { %2256 = vmatmul.f32.vlgmr.msrb.gmra.mxu0 %v1204_v16 }
 0x230   : > { %v5839_v10 = vpop.permute.xlu1 %2045  ;;  %v2085_v47 = vpop.permute.xlu2 %2084 }
 0x231   : > { %2259 = vmatmul.f32.gmra.mxu0 %v1205_v63  ;;  %v2105_v34 = vpop.permute.xlu0 %2104  ;;  %v2147_v18 = vadd.f32 %v2125_v5, %v2085_v47 }
 0x232   : > { %v2150_v13 = vadd.f32 %v2127_v7, %v2105_v34 }
 0x233   : > { %vm2163_vm7 = vcmp.ge.f32.partialorder %v2147_v18, 0.0 }
 0x234   : > { %v2182_v55 = vmul.f32 0.33, %v2150_v13  ;;  %vm2166_vm4 = vcmp.ge.f32.partialorder %v2150_v13, 0.0 }
 0x238   : > { %v2059_v0 = vpop.permute.xlu1 %2058  ;;  %v2098_v11 = vpop.permute.xlu2 %2097 }
 0x239   : > { %2262 = vmatmul.f32.gmra.mxu0 %v1206_v57  ;;  %v2149_v25 = vadd.f32 %v2126_v61, %v2098_v11 }
 0x23b   : > { %v2181_v57 = vmul.f32 0.33, %v2149_v25  ;;  %vm2165_vm5 = vcmp.ge.f32.partialorder %v2149_v25, 0.0 }
 0x23d   : > { %v2197_v34 = vsel %vm2165_vm5, %v2149_v25, %v2181_v57 }
 0x241   : > { %2265 = vmatmul.f32.gmra.mxu0 %v1207_v2  ;;  %v2115_v2 = vrot.slane %v5718_v1, 3 }
 0x243   : > { %v2123_v47 = vperm.slane %v2115_v2, 0 }
 0x245   : > { %v2142_v25 = vadd.f32 %v2123_v47, %v5842_v33 }
 0x247   : > { %vm2158_vm12 = vcmp.ge.f32.partialorder %v2142_v25, 0.0 }
 0x248   : > { %v2079_v9 = vpop.permute.xlu1 %2078 }
 0x249   : > { %2268 = vmatmul.f32.gmra.mxu0 %v1208_v49  ;;  %v2124_v49 = vperm.slane %v2116_v24, 0 }
 0x24b   : > { %v2145_v4 = vadd.f32 %v2124_v49, %v2072_v53  ;;  %v2144_v56 = vadd.f32 %v2124_v49, %v2066_v32  ;;  %v2137_v49 = vadd.f32 %v5832_v62, %v5722_v3 }
 0x24d   : > { %vm2161_vm9 = vcmp.ge.f32.partialorder %v2145_v4, 0.0  ;;  %v2176_v24 = vmul.f32 0.33, %v2144_v56  ;;  %vm2160_vm10 = vcmp.ge.f32.partialorder %v2144_v56, 0.0  ;;  %vm2153_vm1 = vcmp.ge.f32.partialorder %v2137_v49, 0.0 }
 0x250   : > { %v2092_v17 = vpop.permute.xlu1 %2091 }
 0x251   : > { %2271 = vmatmul.f32.gmra.mxu0 %v1209_v29  ;;  %v2148_v54 = vadd.f32 %v2126_v61, %v2092_v17  ;;  %v2146_v29 = vadd.f32 %v2125_v5, %v2079_v9  ;;  %v2114_v17 = vrot.slane %v5718_v1, 2  ;;  %v2177_v61 = vmul.f32 0.33, %v2145_v4 }
 0x253   : > { %v2180_v60 = vmul.f32 0.33, %v2148_v54  ;;  %vm2164_vm6 = vcmp.ge.f32.partialorder %v2148_v54, 0.0  ;;  %vm2162_vm8 = vcmp.ge.f32.partialorder %v2146_v29, 0.0  ;;  %v2122_v53 = vperm.slane %v2114_v17, 0  ;;  %v1220_v17 = vld [vmem:[%s7000_s26] sm:$0xff] }
 0x254   : > { %v2193_v5 = vsel %vm2161_vm9, %v2145_v4, %v2177_v61  ;;  %v2169_v4 = vmul.f32 0.33, %v2137_v49 }
 0x255   : > { %v2196_v11 = vsel %vm2164_vm6, %v2148_v54, %v2180_v60  ;;  %v2141_v32 = vadd.f32 %v2122_v53, %v5839_v10 }
 0x257   : > { %vm2157_vm13 = vcmp.ge.f32.partialorder %v2141_v32, 0.0 }
 0x259   : > { %2274 = vmatmul.f32.gmra.mxu0 %v1210_v6  ;;  %v2198_v6 = vsel %vm2166_vm4, %v2150_v13, %v2182_v55  ;;  %v2113_v13 = vrot.slane %v5718_v1, 1  ;;  %v2174_v1 = vmul.f32 0.33, %v2142_v25 }
 0x25b   : > { %v2121_v54 = vperm.slane %v2113_v13, 0  ;;  %v2190_v2 = vsel %vm2158_vm12, %v2142_v25, %v2174_v1 }
 0x25d   : > { %v2138_v10 = vadd.f32 %v2121_v54, %v5834_v30 }
 0x25f   : > { %v2170_v60 = vmul.f32 0.33, %v2138_v10  ;;  %vm2154_vm0 = vcmp.ge.f32.partialorder %v2138_v10, 0.0 }
 0x260   : > { %v2111_v14 = vpop.permute.xlu1 %2110 }
 0x261   : > { %v2151_v45 = vadd.f32 %v2127_v7, %v2111_v14  ;;  %2277 = vmatmul.f32.gmra.mxu0 %v1211_v52  ;;  %v2179_v7 = vmul.f32 0.33, %v2147_v18  ;;  %v2178_v52 = vmul.f32 0.33, %v2146_v29  ;;  %v2143_v14 = vadd.f32 %v2123_v47, %v2059_v0  ;;  %v1222_v47 = vld [vmem:[%s7000_s26 + $0x10] sm:$0xff] }
 0x262   : > { %v2140_v0 = vadd.f32 %v2122_v53, %v5845_v8  ;;  %v2186_v62 = vsel %vm2154_vm0, %v2138_v10, %v2170_v60  ;;  %v1225_v53 = vld [vmem:[%s7000_s26 + $0x28] sm:$0xff] }
 0x263   : > { %v2183_v16 = vmul.f32 0.33, %v2151_v45  ;;  %vm2167_vm3 = vcmp.ge.f32.partialorder %v2151_v45, 0.0  ;;  %v2195_v9 = vsel %vm2163_vm7, %v2147_v18, %v2179_v7  ;;  %v2175_v55 = vmul.f32 0.33, %v2143_v14 }
 0x264   : > { %vm2159_vm11 = vcmp.ge.f32.partialorder %v2143_v14, 0.0  ;;  %v2139_v18 = vadd.f32 %v2121_v54, %v5837_v48  ;;  %v2172_v57 = vmul.f32 0.33, %v2140_v0  ;;  %vm2156_vm14 = vcmp.ge.f32.partialorder %v2140_v0, 0.0 }
 0x265   : > { %v2199_v63 = vsel %vm2167_vm3, %v2151_v45, %v2183_v16  ;;  %v2194_v45 = vsel %vm2162_vm8, %v2146_v29, %v2178_v52  ;;  %v2192_v16 = vsel %vm2160_vm10, %v2144_v56, %v2176_v24  ;;  %v2191_v33 = vsel %vm2159_vm11, %v2143_v14, %v2175_v55  ;;  %v1223_v56 = vld [vmem:[%s7000_s26 + $0x18] sm:$0xff]  ;;  %v1224_v52 = vld [vmem:[%s7000_s26 + $0x20] sm:$0xff] }
 0x266   : > { %2321 = vmatpush.msrb.mxu1 %v2199_v63  ;;  %v2173_v63 = vmul.f32 0.33, %v2141_v32  ;;  %v2171_v29 = vmul.f32 0.33, %v2139_v18  ;;  %vm2155_vm15 = vcmp.ge.f32.partialorder %v2139_v18, 0.0  ;;  %v2136_v48 = vadd.f32 %v5829_v21, %v5722_v3  ;;  %v1221_v21 = vld [vmem:[%s7000_s26 + $0x8] sm:$0xff] }
 0x267   : > { %v2185_v7 = vsel %vm2153_vm1, %v2137_v49, %v2169_v4  ;;  %v5922_v4 = vpop.f32.mrf.mxu1 }
 0x268   : > { %2322 = vmatpush.msrb.mxu1 %v2198_v6  ;;  %v2189_v8 = vsel %vm2157_vm13, %v2141_v32, %v2173_v63  ;;  %v2188_v6 = vsel %vm2156_vm14, %v2140_v0, %v2172_v57  ;;  %v2187_v30 = vsel %vm2155_vm15, %v2139_v18, %v2171_v29  ;;  %vm2152_vm2 = vcmp.ge.f32.partialorder %v2136_v48, 0.0  ;;  %v1227_v32 = vld [vmem:[%s7000_s26 + $0x38] sm:$0xff]  ;;  %7002 = vst [vmem:[#allocation54_spill] sm:$0xff] %v5922_v4 }
 0x26a   : > { %2323 = vmatpush.msrb.mxu1 %v2197_v34  ;;  %v2168_v34 = vmul.f32 0.33, %v2136_v48 }
 0x26c   : > { %2324 = vmatpush.msrb.mxu1 %v2196_v11  ;;  %v2184_v3 = vsel %vm2152_vm2, %v2136_v48, %v2168_v34  ;;  %v5870_v11 = vpop.f32.mrf.mxu0 }
 0x26d   : > { %7001 = vst [vmem:[#allocation53_spill] sm:$0xff] %v5870_v11 }
 0x26e   : > { %2325 = vmatpush.msrb.mxu1 %v2195_v9 }
 0x270   : > { %2326 = vmatpush.msrb.mxu1 %v2194_v45  ;;  %v1226_v45 = vld [vmem:[%s7000_s26 + $0x30] sm:$0xff] }
 0x272   : > { %2327 = vmatpush.msrb.mxu1 %v2193_v5 }
 0x274   : > { %2328 = vmatpush.msrb.mxu1 %v2192_v16 }
 0x276   : > { %2329 = vmatpush.msrb.mxu1 %v2191_v33 }
 0x278   : > { %2330 = vmatpush.msrb.mxu1 %v2190_v2 }
 0x27a   : > { %2331 = vmatpush.msrb.mxu1 %v2189_v8 }
 0x27c   : > { %2332 = vmatpush.msrb.mxu1 %v2188_v6 }
 0x27e   : > { %2333 = vmatpush.msrb.mxu1 %v2187_v30 }
 0x280   : > { %2334 = vmatpush.msrb.mxu1 %v2186_v62 }
 0x282   : > { %2335 = vmatpush.msrb.mxu1 %v2185_v7 }
 0x284   : > { %2336 = vmatpush.msrb.mxu1 %v2184_v3 }
 0x285   : > { %2337 = vmatmul.f32.vlgmr.msrb.gmra.mxu1 %v1220_v17 }
 0x28d   : > { %2340 = vmatmul.f32.gmra.mxu1 %v1221_v21 }
 0x295   : > { %2343 = vmatmul.f32.gmra.mxu1 %v1222_v47 }
 0x29d   : > { %2346 = vmatmul.f32.gmra.mxu1 %v1223_v56 }
 0x2a5   : > { %2349 = vmatmul.f32.gmra.mxu1 %v1224_v52 }
 0x2a6   : > { %v2257_v61 = vpop.f32.mrf.mxu0 }
 0x2a7   : > { %v2258_v14 = vadd.f32 %v2257_v61, %v5745_v15 }
 0x2a9   : > { %v2375_v9 = vperm.slane %v2258_v14, 1  ;;  %v2362_v13 = vperm.slane %v2258_v14, 0  ;;  %v2388_v25 = vperm.slane %v2258_v14, 2  ;;  %v2401_v24 = vperm.slane %v2258_v14, 3 }
 0x2aa   : > { %v2414_v15 = vperm.slane %v2258_v14, 4  ;;  %v2427_v5 = vperm.slane %v2258_v14, 5  ;;  %v2440_v0 = vperm.slane %v2258_v14, 6  ;;  %v2453_v1 = vperm.slane %v2258_v14, 7 }
 0x2ab   : > { %2380 = vperm.xlu1 %5076, %v2375_v9   ;;  %2373 = vperm.xlu0 %5075, %v2362_v13  }
 0x2ac   : > { %2367 = vperm.xlu2 %5074, %v2362_v13  }
 0x2ad   : > { %2352 = vmatmul.f32.gmra.mxu1 %v1225_v53 }
 0x2ae   : > { %v2260_v55 = vpop.f32.mrf.mxu0 }
 0x2af   : > { %v5885_v54 = vadd.f32 %v2260_v55, %v5755_v20 }
 0x2b1   : > { %v2466_v16 = vperm.slane %v5885_v54, 0  ;;  %v2492_v18 = vperm.slane %v5885_v54, 2  ;;  %v2479_v20 = vperm.slane %v5885_v54, 1  ;;  %v2531_v33 = vperm.slane %v5885_v54, 5 }
 0x2b2   : > { %v2505_v63 = vperm.slane %v5885_v54, 3  ;;  %v2557_v57 = vperm.slane %v5885_v54, 7  ;;  %v2518_v10 = vperm.slane %v5885_v54, 4  ;;  %v2544_v6 = vperm.slane %v5885_v54, 6 }
 0x2b3   : > { %2393 = vperm.xlu1 %5076, %v2388_v25   ;;  %5078 = vset.pattern.permute.xlu0 %v5683_v35 }
 0x2b4   : > { %5077 = vset.pattern.permute.xlu2 %v5688_v37 }
 0x2b5   : > { %2355 = vmatmul.f32.gmra.mxu1 %v1226_v45 }
 0x2b6   : > { %v2263_v2 = vpop.f32.mrf.mxu0 }
 0x2b7   : > { %v5904_v49 = vadd.f32 %v2263_v2, %v5753_v19 }
 0x2b9   : > { %v2772_v8 = vperm.slane %v5904_v49, 2  ;;  %v2798_v60 = vperm.slane %v5904_v49, 4  ;;  %v2746_v7 = vperm.slane %v5904_v49, 0  ;;  %v6915_v17 = vperm.slane %v5904_v49, 7 }
 0x2ba   : > { %v2759_v52 = vperm.slane %v5904_v49, 1  ;;  %v7013_v43 = vperm.slane %v5904_v49, 7 }
 0x2bb   : > { %5079 = vset.pattern.permute.xlu1 %v5688_v37  ;;  %2406 = vperm.xlu0 %5078, %v2401_v24  }
 0x2bc   : > { %2386 = vperm.xlu2 %5077, %v2375_v9  }
 0x2bd   : > { %2358 = vmatmul.f32.gmra.mxu1 %v1227_v32 }
 0x2be   : > { %v2266_v61 = vpop.f32.mrf.mxu0 }
 0x2bf   : > { %v5948_v9 = vadd.f32 %v2266_v61, %v5782_v38 }
 0x2c1   : > { %v6914_v45 = vperm.slane %v5948_v9, 1 }
 0x2c3   : > { %2412 = vperm.xlu1 %5079, %v2401_v24   ;;  %5081 = vset.pattern.permute.xlu0 %v5688_v37 }
 0x2c4   : > { %2399 = vperm.xlu2 %5077, %v2388_v25  }
 0x2cb   : > { %2425 = vperm.xlu1 %5079, %v2414_v15   ;;  %2438 = vperm.xlu0 %5081, %v2427_v5  }
 0x2cc   : > { %5080 = vset.pattern.permute.xlu2 %v5683_v35 }
 0x2d3   : > { %5082 = vset.pattern.permute.xlu1 %v5683_v35  ;;  %5084 = vset.pattern.permute.xlu0 %v5683_v35 }
 0x2d4   : > { %2419 = vperm.xlu2 %5080, %v2414_v15  }
 0x2db   : > { %2445 = vperm.xlu1 %5082, %v2440_v0   ;;  %2471 = vperm.xlu0 %5084, %v2466_v16  }
 0x2dc   : > { %2432 = vperm.xlu2 %5080, %v2427_v5  }
 0x2e3   : > { %2458 = vperm.xlu1 %5082, %v2453_v1   ;;  %5087 = vset.pattern.permute.xlu0 %v5688_v37 }
 0x2e4   : > { %5083 = vset.pattern.permute.xlu2 %v5688_v37 }
 0x2eb   : > { %5085 = vset.pattern.permute.xlu1 %v5688_v37  ;;  %2503 = vperm.xlu0 %5087, %v2492_v18  }
 0x2ec   : > { %2451 = vperm.xlu2 %5083, %v2440_v0   ;;  %v2785_v0 = vperm.slane %v5904_v49, 3 }
 0x2f3   : > { %2477 = vperm.xlu1 %5085, %v2466_v16   ;;  %5090 = vset.pattern.permute.xlu0 %v5683_v35  ;;  %v6913_v16 = vperm.slane %v5948_v9, 4 }
 0x2f4   : > { %2464 = vperm.xlu2 %5083, %v2453_v1  }
 0x2fb   : > { %2490 = vperm.xlu1 %5085, %v2479_v20   ;;  %2536 = vperm.xlu0 %5090, %v2531_v33  }
 0x2fc   : > { %5086 = vset.pattern.permute.xlu2 %v5683_v35 }
 0x302   : > { %v5934_v21 = vpop.f32.mrf.mxu1 }
 0x303   : > { %5088 = vset.pattern.permute.xlu1 %v5683_v35  ;;  %5093 = vset.pattern.permute.xlu0 %v5688_v37 }
 0x304   : > { %2484 = vperm.xlu2 %5086, %v2479_v20  }
 0x306   : > { %v5908_v29 = vpop.permute.xlu2 %2367 }
 0x30a   : > { %v2341_v13 = vpop.f32.mrf.mxu1 }
 0x30b   : > { %2510 = vperm.xlu1 %5088, %v2505_v63   ;;  %2568 = vperm.xlu0 %5093, %v2557_v57   ;;  %v5953_v25 = vadd.f32 %v2341_v13, %v5780_v36  ;;  %v2811_v13 = vperm.slane %v5904_v49, 5 }
 0x30c   : > { %2497 = vperm.xlu2 %5086, %v2492_v18  }
 0x30d   : > { %v2594_v38 = vperm.slane %v5953_v25, 0  ;;  %v2580_v54 = vrot.slane %v5953_v25, 2  ;;  %v2579_v1 = vrot.slane %v5953_v25, 1  ;;  %v2583_v61 = vrot.slane %v5953_v25, 5 }
 0x30f   : > { %v2596_v18 = vperm.slane %v2580_v54, 0  ;;  %v2599_v54 = vperm.slane %v2583_v61, 0 }
 0x312   : > { %v2344_v42 = vpop.f32.mrf.mxu1 }
 0x313   : > { %2523 = vperm.xlu1 %5088, %v2518_v10   ;;  %5096 = vset.pattern.permute.xlu0 %v5683_v35 }
 0x314   : > { %5089 = vset.pattern.permute.xlu2 %v5688_v37 }
 0x316   : > { %v5911_v48 = vpop.permute.xlu2 %2386 }
 0x31b   : > { %5091 = vset.pattern.permute.xlu1 %v5688_v37  ;;  %2777 = vperm.xlu0 %5096, %v2772_v8  }
 0x31c   : > { %2516 = vperm.xlu2 %5089, %v2505_v63   ;;  %v2595_v63 = vperm.slane %v2579_v1, 0 }
 0x31d   : > { %v5918_v19 = vpop.permute.xlu1 %2380  ;;  %v5926_v62 = vpop.permute.xlu0 %2373 }
 0x31e   : > { %v5920_v30 = vpop.permute.xlu2 %2399 }
 0x323   : > { %2542 = vperm.xlu1 %5091, %v2531_v33   ;;  %5099 = vset.pattern.permute.xlu0 %v5688_v37 }
 0x324   : > { %2529 = vperm.xlu2 %5089, %v2518_v10  }
 0x325   : > { %v5928_v34 = vpop.permute.xlu1 %2393 }
 0x32b   : > { %2555 = vperm.xlu1 %5091, %v2544_v6   ;;  %2809 = vperm.xlu0 %5099, %v2798_v60  }
 0x32c   : > { %5092 = vset.pattern.permute.xlu2 %v5683_v35 }
 0x32d   : > { %v5938_v47 = vpop.permute.xlu0 %2406 }
 0x32e   : > { %v5932_v3 = vpop.permute.xlu2 %2419 }
 0x333   : > { %5094 = vset.pattern.permute.xlu1 %v5683_v35  ;;  %5102 = vset.pattern.permute.xlu0 %v5683_v35 }
 0x334   : > { %2549 = vperm.xlu2 %5092, %v2544_v6  }
 0x335   : > { %v5940_v56 = vpop.permute.xlu1 %2412 }
 0x336   : > { %v5944_v14 = vpop.permute.xlu2 %2432 }
 0x33b   : > { %2751 = vperm.xlu1 %5094, %v2746_v7   ;;  %2842 = vperm.xlu0 %5102, %v6915_v17  }
 0x33c   : > { %2562 = vperm.xlu2 %5092, %v2557_v57  }
 0x33d   : > { %v5950_v53 = vpop.permute.xlu0 %2438  ;;  %v5956_v24 = vpop.permute.xlu1 %2425 }
 0x343   : > { %2764 = vperm.xlu1 %5094, %v2759_v52   ;;  %5105 = vset.pattern.permute.xlu0 %v5688_v37 }
 0x344   : > { %5095 = vset.pattern.permute.xlu2 %v5688_v37 }
 0x346   : > { %v5961_v32 = vpop.permute.xlu2 %2451 }
 0x34b   : > { %5097 = vset.pattern.permute.xlu1 %v5688_v37  ;;  %2874 = vperm.xlu0 %5105, %v6914_v45  }
 0x34c   : > { %2757 = vperm.xlu2 %5095, %v2746_v7  }
 0x34d   : > { %v2472_v15 = vpop.permute.xlu0 %2471  ;;  %v5966_v55 = vpop.permute.xlu1 %2445 }
 0x34e   : > { %v5964_v5 = vadd.f32 %v2594_v38, %v2472_v15  ;;  %v5969_v36 = vpop.permute.xlu2 %2464  ;;  %v6912_v15 = vperm.slane %v5948_v9, 6 }
 0x350   : > { %7003 = vst [vmem:[#allocation55_spill] sm:$0xff] %v5964_v5 }
 0x353   : > { %2783 = vperm.xlu1 %5097, %v2772_v8   ;;  %5108 = vset.pattern.permute.xlu0 %v5683_v35 }
 0x354   : > { %2770 = vperm.xlu2 %5095, %v2759_v52  }
 0x355   : > { %v5978_v20 = vpop.permute.xlu1 %2458 }
 0x35b   : > { %2796 = vperm.xlu1 %5097, %v2785_v0   ;;  %2907 = vperm.xlu0 %5108, %v6913_v16  }
 0x35c   : > { %5098 = vset.pattern.permute.xlu2 %v5683_v35 }
 0x35d   : > { %v2504_v33 = vpop.permute.xlu0 %2503 }
 0x35e   : > { %v5980_v57 = vadd.f32 %v2596_v18, %v2504_v33  ;;  %v2485_v10 = vpop.permute.xlu2 %2484  ;;  %v2824_v33 = vperm.slane %v5904_v49, 6 }
 0x35f   : > { %v5982_v2 = vadd.f32 %v2595_v63, %v2485_v10  ;;  %v2581_v10 = vrot.slane %v5953_v25, 3 }
 0x360   : > { %7004 = vst [vmem:[#allocation56_spill] sm:$0xff] %v5980_v57 }
 0x361   : > { %7005 = vst [vmem:[#allocation57_spill] sm:$0xff] %v5982_v2 }
 0x363   : > { %5100 = vset.pattern.permute.xlu1 %v5683_v35  ;;  %5111 = vset.pattern.permute.xlu0 %v5688_v37 }
 0x364   : > { %2790 = vperm.xlu2 %5098, %v2785_v0  }
 0x365   : > { %v2478_v8 = vpop.permute.xlu1 %2477 }
 0x366   : > { %v5986_v6 = vadd.f32 %v2594_v38, %v2478_v8  ;;  %v2498_v7 = vpop.permute.xlu2 %2497  ;;  %v2269_v8 = vpop.f32.mrf.mxu0 }
 0x367   : > { %v5988_v52 = vadd.f32 %v2596_v18, %v2498_v7  ;;  %v6006_v7 = vadd.f32 %v2269_v8, %v5765_v23 }
 0x368   : > { %7006 = vst [vmem:[#allocation58_spill] sm:$0xff] %v5986_v6 }
 0x369   : > { %7007 = vst [vmem:[#allocation59_spill] sm:$0xff] %v5988_v52  ;;  %v7021_v28 = vperm.slane %v6006_v7, 1  ;;  %v3245_v5 = vperm.slane %v6006_v7, 2 }
 0x36b   : > { %2816 = vperm.xlu1 %5100, %v2811_v13   ;;  %2939 = vperm.xlu0 %5111, %v6912_v15  }
 0x36c   : > { %2803 = vperm.xlu2 %5098, %v2798_v60   ;;  %v2597_v60 = vperm.slane %v2581_v10, 0 }
 0x36d   : > { %v2491_v0 = vpop.permute.xlu1 %2490  ;;  %v2537_v38 = vpop.permute.xlu0 %2536 }
 0x36e   : > { %v5997_v1 = vadd.f32 %v2595_v63, %v2491_v0  ;;  %v5999_v18 = vadd.f32 %v2599_v54, %v2537_v38  ;;  %v2585_v63 = vrot.slane %v5953_v25, 7  ;;  %v6917_v0 = vperm.slane %v6006_v7, 1 }
 0x36f   : > { %v2582_v38 = vrot.slane %v5953_v25, 4 }
 0x370   : > { %7008 = vst [vmem:[#allocation60_spill] sm:$0xff] %v5997_v1  ;;  %v2601_v16 = vperm.slane %v2585_v63, 0  ;;  %v6922_v63 = vperm.slane %v6006_v7, 3 }
 0x371   : > { %7009 = vst [vmem:[#allocation61_spill] sm:$0xff] %v5999_v18  ;;  %v2598_v8 = vperm.slane %v2582_v38, 0  ;;  %v2876_v38 = vperm.slane %v5948_v9, 2 }
 0x373   : > { %2829 = vperm.xlu1 %5100, %v2824_v33   ;;  %5114 = vset.pattern.permute.xlu0 %v5683_v35 }
 0x374   : > { %5101 = vset.pattern.permute.xlu2 %v5688_v37 }
 0x376   : > { %v2517_v61 = vpop.permute.xlu2 %2516 }
 0x377   : > { %v6008_v15 = vadd.f32 %v2597_v60, %v2517_v61 }
 0x379   : > { %7010 = vst [vmem:[#allocation62_spill] sm:$0xff] %v6008_v15 }
 0x37b   : > { %5103 = vset.pattern.permute.xlu1 %v5688_v37  ;;  %3237 = vperm.xlu0 %5114, %v6917_v0  }
 0x37c   : > { %2822 = vperm.xlu2 %5101, %v2811_v13   ;;  %v2850_v13 = vperm.slane %v5948_v9, 0 }
 0x37d   : > { %v2511_v45 = vpop.permute.xlu1 %2510  ;;  %v2569_v23 = vpop.permute.xlu0 %2568 }
 0x37e   : > { %v6016_v10 = vadd.f32 %v2597_v60, %v2511_v45  ;;  %v6018_v61 = vadd.f32 %v2601_v16, %v2569_v23  ;;  %v2530_v17 = vpop.permute.xlu2 %2529  ;;  %v2584_v45 = vrot.slane %v5953_v25, 6  ;;  %v6920_v23 = vperm.slane %v6006_v7, 6 }
 0x37f   : > { %v6020_v4 = vadd.f32 %v2598_v8, %v2530_v17 }
 0x380   : > { %7011 = vst [vmem:[#allocation63_spill] sm:$0xff] %v6016_v10  ;;  %v2600_v49 = vperm.slane %v2584_v45, 0 }
 0x381   : > { %7012 = vst [vmem:[#allocation64_spill] sm:$0xff] %v6020_v4 }
 0x383   : > { %2848 = vperm.xlu1 %5103, %v7013_v43   ;;  %5117 = vset.pattern.permute.xlu0 %v5688_v37 }
 0x384   : > { %2835 = vperm.xlu2 %5101, %v2824_v33  }
 0x385   : > { %v2524_v12 = vpop.permute.xlu1 %2523 }
 0x386   : > { %v6025_v0 = vadd.f32 %v2598_v8, %v2524_v12  ;;  %v7017_v8 = vperm.slane %v5948_v9, 1 }
 0x388   : > { %7014 = vst [vmem:[#allocation65_spill] sm:$0xff] %v6025_v0 }
 0x38b   : > { %2861 = vperm.xlu1 %5103, %v2850_v13   ;;  %3269 = vperm.xlu0 %5117, %v6922_v63  }
 0x38c   : > { %5104 = vset.pattern.permute.xlu2 %v5683_v35 }
 0x38d   : > { %v6095_v63 = vpop.permute.xlu0 %2777 }
 0x38e   : > { %v2550_v43 = vpop.permute.xlu2 %2549 }
 0x38f   : > { %v6033_v17 = vadd.f32 %v2600_v49, %v2550_v43 }
 0x391   : > { %7015 = vst [vmem:[#allocation66_spill] sm:$0xff] %v6033_v17 }
 0x393   : > { %5106 = vset.pattern.permute.xlu1 %v5683_v35  ;;  %5120 = vset.pattern.permute.xlu0 %v5683_v35 }
 0x394   : > { %2855 = vperm.xlu2 %5104, %v2850_v13   ;;  %v2272_v13 = vpop.f32.mrf.mxu0 }
 0x395   : > { %v2543_v12 = vpop.permute.xlu1 %2542 }
 0x396   : > { %v6037_v33 = vadd.f32 %v2599_v54, %v2543_v12  ;;  %v2563_v60 = vpop.permute.xlu2 %2562  ;;  %v2889_v54 = vperm.slane %v5948_v9, 3 }
 0x397   : > { %v6039_v25 = vadd.f32 %v2601_v16, %v2563_v60  ;;  %v6053_v16 = vadd.f32 %v2272_v13, %v5763_v22  ;;  %v7019_v60 = vperm.slane %v5948_v9, 4  ;;  %v2915_v22 = vperm.slane %v5948_v9, 5 }
 0x398   : > { %7016 = vst [vmem:[#allocation67_spill] sm:$0xff] %v6037_v33  ;;  %v6944_v33 = vperm.slane %v6006_v7, 4 }
 0x399   : > { %v6919_v12 = vperm.slane %v6053_v16, 0 }
 0x39b   : > { %2881 = vperm.xlu1 %5106, %v2876_v38   ;;  %3302 = vperm.xlu0 %5120, %v6920_v23   ;;  %v7020_v23 = vperm.slane %v5948_v9, 6 }
 0x39c   : > { %2868 = vperm.xlu2 %5104, %v7017_v8  }
 0x39d   : > { %v2556_v45 = vpop.permute.xlu1 %2555  ;;  %v2810_v11 = vpop.permute.xlu0 %2809 }
 0x39e   : > { %v6047_v43 = vadd.f32 %v2600_v49, %v2556_v45  ;;  %v6918_v49 = vperm.slane %v6053_v16, 6  ;;  %v2275_v45 = vpop.f32.mrf.mxu0 }
 0x3a0   : > { %7018 = vst [vmem:[#allocation68_spill] sm:$0xff] %v6047_v43  ;;  %v6138_v43 = vpop.f32.mrf.mxu1 }
 0x3a3   : > { %2894 = vperm.xlu1 %5106, %v2889_v54   ;;  %5123 = vset.pattern.permute.xlu0 %v5688_v37 }
 0x3a4   : > { %5107 = vset.pattern.permute.xlu2 %v5688_v37 }
 0x3a6   : > { %v6076_v13 = vpop.permute.xlu2 %2757 }
 0x3ab   : > { %5109 = vset.pattern.permute.xlu1 %v5688_v37  ;;  %3334 = vperm.xlu0 %5123, %v6919_v12  }
 0x3ac   : > { %2887 = vperm.xlu2 %5107, %v2876_v38   ;;  %v6921_v38 = vperm.slane %v6053_v16, 3 }
 0x3ad   : > { %v6067_v8 = vpop.permute.xlu1 %2751  ;;  %v2843_v58 = vpop.permute.xlu0 %2842 }
 0x3b3   : > { %2913 = vperm.xlu1 %5109, %v7019_v60   ;;  %3412 = vperm.xlu0 %5123, %v6918_v49   ;;  %v2941_v49 = vperm.slane %v5948_v9, 7  ;;  %v2278_v9 = vpop.f32.mrf.mxu0 }
 0x3b4   : > { %2900 = vperm.xlu2 %5107, %v2889_v54   ;;  %v6074_v54 = vadd.f32 %v2275_v45, %v5771_v27  ;;  %v3219_v27 = vperm.slane %v6006_v7, 0  ;;  %v6104_v50 = vadd.f32 %v2278_v9, %v5769_v26 }
 0x3b5   : > { %v6078_v60 = vpop.permute.xlu1 %2764 }
 0x3b6   : > { %v6923_v12 = vperm.slane %v6074_v54, 7  ;;  %v6927_v45 = vperm.slane %v6074_v54, 4 }
 0x3bb   : > { %2926 = vperm.xlu1 %5109, %v2915_v22   ;;  %5132 = vset.pattern.permute.xlu0 %v5683_v35 }
 0x3bc   : > { %5110 = vset.pattern.permute.xlu2 %v5683_v35 }
 0x3bd   : > { %v6115_v26 = vpop.permute.xlu0 %2874 }
 0x3c3   : > { %5112 = vset.pattern.permute.xlu1 %v5683_v35  ;;  %3367 = vperm.xlu0 %5132, %v6921_v38   ;;  %v6086_v38 = vpop.permute.xlu2 %2770 }
 0x3c4   : > { %2920 = vperm.xlu2 %5110, %v2915_v22  }
 0x3c5   : > { %v6088_v22 = vpop.permute.xlu1 %2783 }
 0x3cb   : > { %2946 = vperm.xlu1 %5112, %v2941_v49   ;;  %3744 = vperm.xlu0 %5132, %v6923_v12   ;;  %v6097_v12 = vpop.permute.xlu2 %2790 }
 0x3cc   : > { %2933 = vperm.xlu2 %5110, %v7020_v23  }
 0x3cd   : > { %v6099_v23 = vpop.permute.xlu1 %2796  ;;  %v6121_v52 = vpop.permute.xlu0 %2907 }
 0x3d3   : > { %3224 = vperm.xlu1 %5112, %v3219_v27   ;;  %3705 = vperm.xlu0 %5132, %v6927_v45   ;;  %v2804_v44 = vpop.permute.xlu2 %2803  ;;  %v3817_v45 = vperm.slane %v6104_v50, 5 }
 0x3d4   : > { %5113 = vset.pattern.permute.xlu2 %v5688_v37 }
 0x3db   : > { %5115 = vset.pattern.permute.xlu1 %v5688_v37  ;;  %5142 = vset.pattern.permute.xlu0 %v5688_v37  ;;  %v2823_v40 = vpop.permute.xlu2 %2822 }
 0x3dc   : > { %2952 = vperm.xlu2 %5113, %v2941_v49   ;;  %v6111_v49 = vadd.f32 %v2344_v42, %v5777_v31 }
 0x3dd   : > { %v2817_v59 = vpop.permute.xlu1 %2816 }
 0x3de   : > { %v2960_v2 = vrot.slane %v6111_v49, 5  ;;  %v2959_v0 = vrot.slane %v6111_v49, 4 }
 0x3e0   : > { %v2975_v4 = vperm.slane %v2960_v2, 0 }
 0x3e2   : > { %v3013_v17 = vadd.f32 %v2975_v4, %v2823_v40  ;;  %v3012_v2 = vadd.f32 %v2975_v4, %v2817_v59 }
 0x3e3   : > { %3243 = vperm.xlu1 %5115, %v7021_v28   ;;  %3828 = vperm.xlu0 %5142, %v3817_v45   ;;  %v2962_v28 = vrot.slane %v6111_v49, 7  ;;  %v2836_v1 = vpop.permute.xlu2 %2835 }
 0x3e4   : > { %3230 = vperm.xlu2 %5113, %v3219_v27   ;;  %v2961_v27 = vrot.slane %v6111_v49, 6  ;;  %vm3045_vm7 = vcmp.ge.f32.partialorder %v3013_v17, 0.0  ;;  %vm3044_vm8 = vcmp.ge.f32.partialorder %v3012_v2, 0.0 }
 0x3e5   : > { %v2830_v9 = vpop.permute.xlu1 %2829  ;;  %v2977_v6 = vperm.slane %v2962_v28, 0 }
 0x3e6   : > { %v2976_v31 = vperm.slane %v2961_v27, 0  ;;  %v2958_v27 = vrot.slane %v6111_v49, 3 }
 0x3e7   : > { %v3016_v42 = vadd.f32 %v2977_v6, %v2843_v58 }
 0x3e8   : > { %v3015_v10 = vadd.f32 %v2976_v31, %v2836_v1  ;;  %v3014_v46 = vadd.f32 %v2976_v31, %v2830_v9  ;;  %v7022_v1 = vperm.slane %v6006_v7, 3  ;;  %v3077_v31 = vmul.f32 0.33, %v3013_v17 }
 0x3e9   : > { %v3080_v18 = vmul.f32 0.33, %v3016_v42  ;;  %vm3048_vm4 = vcmp.ge.f32.partialorder %v3016_v42, 0.0  ;;  %v2973_v59 = vperm.slane %v2958_v27, 0 }
 0x3ea   : > { %vm3047_vm5 = vcmp.ge.f32.partialorder %v3015_v10, 0.0  ;;  %vm3046_vm6 = vcmp.ge.f32.partialorder %v3014_v46, 0.0 }
 0x3eb   : > { %3256 = vperm.xlu1 %5115, %v3245_v5   ;;  %5143 = vset.pattern.permute.xlu0 %v5683_v35  ;;  %v3112_v40 = vsel %vm3048_vm4, %v3016_v42, %v3080_v18  ;;  %v3284_v18 = vperm.slane %v6006_v7, 5 }
 0x3ec   : > { %5116 = vset.pattern.permute.xlu2 %v5683_v35 }
 0x3f3   : > { %5118 = vset.pattern.permute.xlu1 %v5683_v35  ;;  %3822 = vperm.xlu0 %5143, %v3817_v45   ;;  %v3079_v45 = vmul.f32 0.33, %v3015_v10 }
 0x3f4   : > { %3250 = vperm.xlu2 %5116, %v3245_v5   ;;  %v6945_v5 = vperm.slane %v6104_v50, 2 }
 0x3f5   : > { %v2849_v57 = vpop.permute.xlu1 %2848 }
 0x3f6   : > { %v3017_v15 = vadd.f32 %v2977_v6, %v2849_v57  ;;  %v2974_v57 = vperm.slane %v2959_v0, 0  ;;  %v3078_v6 = vmul.f32 0.33, %v3014_v46  ;;  %v3076_v0 = vmul.f32 0.33, %v3012_v2 }
 0x3f8   : > { %vm3049_vm3 = vcmp.ge.f32.partialorder %v3017_v15, 0.0  ;;  %v3081_v28 = vmul.f32 0.33, %v3017_v15  ;;  %v3011_v9 = vadd.f32 %v2974_v57, %v2810_v11  ;;  %v3010_v4 = vadd.f32 %v2974_v57, %v2804_v44 }
 0x3f9   : > { %v3009_v11 = vadd.f32 %v2973_v59, %v6099_v23 }
 0x3fa   : > { %v3113_v58 = vsel %vm3049_vm3, %v3017_v15, %v3081_v28  ;;  %v6133_v15 = vpop.permute.xlu0 %2939  ;;  %v3111_v28 = vsel %vm3047_vm5, %v3015_v10, %v3079_v45  ;;  %v3075_v42 = vmul.f32 0.33, %v3011_v9  ;;  %v3109_v10 = vsel %vm3045_vm7, %v3013_v17, %v3077_v31 }
 0x3fb   : > { %3276 = vperm.xlu1 %5118, %v6944_v33   ;;  %3135 = vmatpush.msrb.mxu2 %v3113_v58  ;;  %v2957_v58 = vrot.slane %v6111_v49, 2  ;;  %v6136_v33 = vpop.permute.xlu2 %2855  ;;  %v2956_v45 = vrot.slane %v6111_v49, 1  ;;  %vm3043_vm9 = vcmp.ge.f32.partialorder %v3011_v9, 0.0  ;;  %v3074_v27 = vmul.f32 0.33, %v3010_v4 }
 0x3fc   : > { %3783 = vperm.xlu0 %5143, %v6945_v5   ;;  %3263 = vperm.xlu2 %5116, %v7022_v1   ;;  %v3110_v5 = vsel %vm3046_vm6, %v3014_v46, %v3078_v6  ;;  %v3008_v46 = vadd.f32 %v2973_v59, %v6097_v12  ;;  %vm3042_vm10 = vcmp.ge.f32.partialorder %v3010_v4, 0.0  ;;  %v3073_v23 = vmul.f32 0.33, %v3009_v11 }
 0x3fd   : > { %3136 = vmatpush.msrb.mxu2 %v3112_v40  ;;  %v2972_v44 = vperm.slane %v2957_v58, 0  ;;  %v3107_v6 = vsel %vm3043_vm9, %v3011_v9, %v3075_v42  ;;  %v6153_v1 = vadd.f32 %v5934_v21, %v5789_v41  ;;  %vm3041_vm11 = vcmp.ge.f32.partialorder %v3009_v11, 0.0 }
 0x3fe   : > { %v2971_v40 = vperm.slane %v2956_v45, 0  ;;  %v3072_v31 = vmul.f32 0.33, %v3008_v46  ;;  %vm3040_vm12 = vcmp.ge.f32.partialorder %v3008_v46, 0.0  ;;  %v3105_v9 = vsel %vm3041_vm11, %v3009_v11, %v3073_v23 }
 0x3ff   : > { %3137 = vmatpush.msrb.mxu2 %v3111_v28  ;;  %v3007_v17 = vadd.f32 %v2972_v44, %v6088_v22  ;;  %v3006_v12 = vadd.f32 %v2972_v44, %v6095_v63  ;;  %v3106_v28 = vsel %vm3042_vm10, %v3010_v4, %v3074_v27  ;;  %v3687_v22 = vperm.slane %v6074_v54, 3 }
 0x400   : > { %v2578_v41 = vrot.slane %v6153_v1, 7  ;;  %v2970_v63 = vperm.slane %v6111_v49, 0  ;;  %v3004_v4 = vadd.f32 %v2971_v40, %v6078_v60  ;;  %v3104_v42 = vsel %vm3040_vm12, %v3008_v46, %v3072_v31  ;;  %v6177_v46 = vpop.permute.xlu1 %2861 }
 0x401   : > { %3138 = vmatpush.msrb.mxu2 %v3110_v5  ;;  %v3108_v5 = vsel %vm3044_vm8, %v3012_v2, %v3076_v0  ;;  %v3005_v2 = vadd.f32 %v2971_v40, %v6086_v38  ;;  %v3071_v58 = vmul.f32 0.33, %v3007_v17  ;;  %v6160_v0 = vpop.f32.mrf.mxu1  ;;  %vm3039_vm13 = vcmp.ge.f32.partialorder %v3007_v17, 0.0 }
 0x402   : > { %v6148_v57 = vpop.permute.xlu0 %3237  ;;  %v3070_v21 = vmul.f32 0.33, %v3006_v12  ;;  %v7023_v38 = vperm.slane %v6006_v7, 4  ;;  %vm3038_vm14 = vcmp.ge.f32.partialorder %v3006_v12, 0.0  ;;  %v2593_v27 = vperm.slane %v2578_v41, 0 }
 0x403   : > { %3289 = vperm.xlu1 %5118, %v3284_v18   ;;  %3139 = vmatpush.msrb.mxu2 %v3109_v10  ;;  %v6157_v59 = vpop.permute.xlu2 %2868  ;;  %v3003_v10 = vadd.f32 %v2970_v63, %v6076_v13  ;;  %v3069_v45 = vmul.f32 0.33, %v3005_v2  ;;  %v3103_v44 = vsel %vm3039_vm13, %v3007_v17, %v3071_v58  ;;  %vm3037_vm15 = vcmp.ge.f32.partialorder %v3005_v2, 0.0 }
 0x404   : > { %5148 = vset.pattern.permute.xlu0 %v5688_v37  ;;  %5119 = vset.pattern.permute.xlu2 %v5688_v37  ;;  %v2577_v60 = vrot.slane %v6153_v1, 6  ;;  %v3002_v49 = vadd.f32 %v2970_v63, %v6067_v8  ;;  %v3102_v23 = vsel %vm3038_vm14, %v3006_v12, %v3070_v21  ;;  %vm3036_vm0 = vcmp.ge.f32.partialorder %v3004_v4, 0.0 }
 0x405   : > { %3140 = vmatpush.msrb.mxu2 %v3108_v5  ;;  %v3068_v5 = vmul.f32 0.33, %v3004_v4  ;;  %v3067_v40 = vmul.f32 0.33, %v3003_v10  ;;  %v3765_v13 = vperm.slane %v6104_v50, 1  ;;  %v3101_v17 = vsel %vm3037_vm15, %v3005_v2, %v3069_v45 }
 0x406   : > { %v7024_v58 = vperm.slane %v6006_v7, 6  ;;  %vm3035_vm1 = vcmp.ge.f32.partialorder %v3003_v10, 0.0  ;;  %v2592_v8 = vperm.slane %v2577_v60, 0  ;;  %v3066_v12 = vmul.f32 0.33, %v3002_v49 }
 0x407   : > { %3141 = vmatpush.msrb.mxu2 %v3107_v6  ;;  %v2633_v6 = vadd.f32 %v2593_v27, %v5969_v36  ;;  %v2632_v36 = vadd.f32 %v2593_v27, %v5978_v20  ;;  %vm3034_vm2 = vcmp.ge.f32.partialorder %v3002_v49, 0.0  ;;  %v2575_v20 = vrot.slane %v6153_v1, 4 }
 0x408   : > { %v2631_v63 = vadd.f32 %v2592_v8, %v5961_v32 }
 0x409   : > { %3142 = vmatpush.msrb.mxu2 %v3106_v28  ;;  %v2576_v28 = vrot.slane %v6153_v1, 5  ;;  %v2353_v41 = vpop.f32.mrf.mxu1  ;;  %v2697_v2 = vmul.f32 0.33, %v2633_v6  ;;  %vm2665_vm3 = vcmp.ge.f32.partialorder %v2633_v6, 0.0  ;;  %vm2664_vm4 = vcmp.ge.f32.partialorder %v2632_v36, 0.0 }
 0x40a   : > { %v6171_v11 = vpop.permute.xlu0 %3269  ;;  %v6195_v45 = vadd.f32 %v2353_v41, %v5784_v39  ;;  %v2574_v39 = vrot.slane %v6153_v1, 3  ;;  %vm2663_vm5 = vcmp.ge.f32.partialorder %v2631_v63, 0.0 }
 0x40b   : > { %5121 = vset.pattern.permute.xlu1 %v5688_v37  ;;  %3143 = vmatpush.msrb.mxu2 %v3105_v9  ;;  %v6179_v31 = vpop.permute.xlu2 %2887  ;;  %v3100_v9 = vsel %vm3036_vm0, %v3004_v4, %v3068_v5  ;;  %v2696_v4 = vmul.f32 0.33, %v2632_v36  ;;  %v2729_v60 = vsel %vm2665_vm3, %v2633_v6, %v2697_v2  ;;  %v3310_v5 = vperm.slane %v6006_v7, 7 }
 0x40c   : > { %3698 = vperm.xlu0 %5148, %v3687_v22   ;;  %3282 = vperm.xlu2 %5119, %v7023_v38   ;;  %v3099_v38 = vsel %vm3035_vm1, %v3003_v10, %v3067_v40  ;;  %v2695_v10 = vmul.f32 0.33, %v2631_v63  ;;  %v2590_v40 = vperm.slane %v2575_v20, 0  ;;  %v3451_v7 = vperm.slane %v6195_v45, 0 }
 0x40d   : > { %3144 = vmatpush.msrb.mxu2 %v3104_v42  ;;  %v2591_v42 = vperm.slane %v2576_v28, 0  ;;  %v6198_v27 = vpop.permute.xlu1 %2881 }
 0x40e   : > { %v2627_v28 = vadd.f32 %v2590_v40, %v5956_v24 }
 0x40f   : > { %3145 = vmatpush.msrb.mxu2 %v3103_v44  ;;  %v3098_v44 = vsel %vm3034_vm2, %v3002_v49, %v3066_v12  ;;  %v2629_v32 = vadd.f32 %v2591_v42, %v5950_v53  ;;  %v2728_v53 = vsel %vm2664_vm4, %v2632_v36, %v2696_v4  ;;  %v2573_v12 = vrot.slane %v6153_v1, 2 }
 0x410   : > { %v2626_v36 = vadd.f32 %v2590_v40, %v5932_v3  ;;  %v2691_v24 = vmul.f32 0.33, %v2627_v28  ;;  %vm2659_vm9 = vcmp.ge.f32.partialorder %v2627_v28, 0.0 }
 0x411   : > { %3146 = vmatpush.msrb.mxu2 %v3102_v23  ;;  %v3752_v23 = vperm.slane %v6104_v50, 0  ;;  %vm2661_vm7 = vcmp.ge.f32.partialorder %v2629_v32, 0.0 }
 0x412   : > { %v6190_v21 = vpop.permute.xlu0 %3302  ;;  %v2690_v3 = vmul.f32 0.33, %v2626_v36  ;;  %vm2658_vm10 = vcmp.ge.f32.partialorder %v2626_v36, 0.0 }
 0x413   : > { %3308 = vperm.xlu1 %5121, %v7024_v58   ;;  %3147 = vmatpush.msrb.mxu2 %v3101_v17  ;;  %v6205_v17 = vpop.permute.xlu2 %2900  ;;  %v2693_v58 = vmul.f32 0.33, %v2629_v32 }
 0x414   : > { %3776 = vperm.xlu0 %5148, %v3765_v13   ;;  %3295 = vperm.xlu2 %5119, %v3284_v18   ;;  %v2630_v18 = vadd.f32 %v2592_v8, %v5966_v55  ;;  %v2628_v55 = vadd.f32 %v2591_v42, %v5944_v14  ;;  %v2727_v8 = vsel %vm2663_vm5, %v2631_v63, %v2695_v10  ;;  %v2572_v42 = vrot.slane %v6153_v1, 1 }
 0x415   : > { %3148 = vmatpush.msrb.mxu2 %v3100_v9  ;;  %v2589_v9 = vperm.slane %v2574_v39, 0  ;;  %v2725_v20 = vsel %vm2661_vm7, %v2629_v32, %v2693_v58  ;;  %v6220_v4 = vpop.permute.xlu1 %2894  ;;  %v2588_v63 = vperm.slane %v2573_v12, 0  ;;  %v7025_v10 = vmov 0  }
 0x416   : > { %v2694_v49 = vmul.f32 0.33, %v2630_v18  ;;  %vm2662_vm6 = vcmp.ge.f32.partialorder %v2630_v18, 0.0  ;;  %v2692_v41 = vmul.f32 0.33, %v2628_v55  ;;  %vm2660_vm8 = vcmp.ge.f32.partialorder %v2628_v55, 0.0 }
 0x417   : > { %3149 = vmatpush.msrb.mxu2 %v3099_v38  ;;  %v2625_v38 = vadd.f32 %v2589_v9, %v5940_v56  ;;  %v2623_v56 = vadd.f32 %v2588_v63, %v5920_v30  ;;  %v2723_v39 = vsel %vm2659_vm9, %v2627_v28, %v2691_v24  ;;  %v2587_v40 = vperm.slane %v2572_v42, 0 }
 0x418   : > { %v2726_v2 = vsel %vm2662_vm6, %v2630_v18, %v2694_v49  ;;  %v2724_v18 = vsel %vm2660_vm8, %v2628_v55, %v2692_v41  ;;  %v2622_v49 = vadd.f32 %v2588_v63, %v5928_v34  ;;  %v2586_v30 = vperm.slane %v6153_v1, 0 }
 0x419   : > { %3150 = vmatpush.msrb.mxu2 %v3098_v44  ;;  %v2624_v44 = vadd.f32 %v2589_v9, %v5938_v47  ;;  %v2689_v32 = vmul.f32 0.33, %v2625_v38  ;;  %vm2657_vm11 = vcmp.ge.f32.partialorder %v2625_v38, 0.0  ;;  %v2722_v47 = vsel %vm2658_vm10, %v2626_v36, %v2690_v3 }
 0x41a   : > { %v2687_v55 = vmul.f32 0.33, %v2623_v56  ;;  %vm2655_vm13 = vcmp.ge.f32.partialorder %v2623_v56, 0.0  ;;  %v2620_v34 = vadd.f32 %v2587_v40, %v5918_v19  ;;  %v7026_v28 = vperm.slane %v6053_v16, 0 }
 0x41b   : > { %3179 = vmatpush.msra.mxu2 %v2729_v60  ;;  %3321 = vperm.xlu1 %5121, %v3310_v5   ;;  %vm2656_vm12 = vcmp.ge.f32.partialorder %v2624_v44, 0.0  ;;  %v2721_v58 = vsel %vm2657_vm11, %v2625_v38, %v2689_v32  ;;  %v2686_v9 = vmul.f32 0.33, %v2622_v49  ;;  %vm2654_vm14 = vcmp.ge.f32.partialorder %v2622_v49, 0.0 }
 0x41c   : > { %3763 = vperm.xlu0 %5148, %v3752_v23   ;;  %5122 = vset.pattern.permute.xlu2 %v5683_v35  ;;  %v2619_v36 = vadd.f32 %v2586_v30, %v5926_v62  ;;  %v2618_v19 = vadd.f32 %v2586_v30, %v5908_v29  ;;  %v2684_v24 = vmul.f32 0.33, %v2620_v34  ;;  %vm2652_vm0 = vcmp.ge.f32.partialorder %v2620_v34, 0.0 }
 0x41d   : > { %3180 = vmatpush.msra.mxu2 %v2728_v53  ;;  %v3335_v6 = vpop.permute.xlu0 %3334  ;;  %v2688_v53 = vmul.f32 0.33, %v2624_v44  ;;  %v2718_v1 = vsel %vm2654_vm14, %v2622_v49, %v2686_v9 }
 0x41e   : > { %v6214_v14 = vadd.f32 %v3451_v7, %v3335_v6  ;;  %v6224_v60 = vpop.permute.xlu2 %2920  ;;  %v3336_v6 = vperm.slane %v6053_v16, 1  ;;  %v2683_v42 = vmul.f32 0.33, %v2619_v36  ;;  %vm2651_vm1 = vcmp.ge.f32.partialorder %v2619_v36, 0.0 }
 0x41f   : > { %3181 = vmatpush.msra.mxu2 %v2727_v8  ;;  %v2720_v12 = vsel %vm2656_vm12, %v2624_v44, %v2688_v53  ;;  %v2716_v62 = vsel %vm2652_vm0, %v2620_v34, %v2684_v24  ;;  %v2682_v63 = vmul.f32 0.33, %v2618_v19  ;;  %vm2650_vm2 = vcmp.ge.f32.partialorder %v2618_v19, 0.0 }
 0x420   : > { %v3388_v24 = vperm.slane %v6053_v16, 5 }
 0x421   : > { %3182 = vmatpush.msra.mxu2 %v2726_v2  ;;  %v2719_v2 = vsel %vm2655_vm13, %v2623_v56, %v2687_v55  ;;  %v2715_v56 = vsel %vm2651_vm1, %v2619_v36, %v2683_v42 }
 0x423   : > { %3183 = vmatpush.msra.mxu2 %v2725_v20  ;;  %5124 = vset.pattern.permute.xlu1 %v5683_v35 }
 0x424   : > { %3315 = vperm.xlu2 %5122, %v3310_v5   ;;  %5155 = vset.pattern.permute.xlu0 %v7025_v10  ;;  %v2621_v5 = vadd.f32 %v2587_v40, %v5911_v48  ;;  %v6241_v48 = vadd.f32 %v6138_v43, %v5798_v51  ;;  %v7027_v43 = vperm.slane %v6053_v16, 6 }
 0x425   : > { %3184 = vmatpush.msra.mxu2 %v2724_v18  ;;  %v6231_v8 = vpop.permute.xlu1 %2913  ;;  %v6250_v40 = vpop.permute.xlu0 %3412 }
 0x426   : > { %v2934_v41 = vpop.permute.xlu2 %2933  ;;  %v2685_v38 = vmul.f32 0.33, %v2621_v5  ;;  %vm2653_vm15 = vcmp.ge.f32.partialorder %v2621_v5, 0.0  ;;  %v2969_v20 = vrot.slane %v6241_v48, 7  ;;  %v2968_v3 = vrot.slane %v6241_v48, 6 }
 0x427   : > { %3185 = vmatpush.msra.mxu2 %v2723_v39  ;;  %v2714_v39 = vsel %vm2650_vm2, %v2618_v19, %v2682_v63  ;;  %v2966_v34 = vrot.slane %v6241_v48, 4  ;;  %v2965_v19 = vrot.slane %v6241_v48, 3  ;;  %v2964_v63 = vrot.slane %v6241_v48, 2 }
 0x428   : > { %v2717_v51 = vsel %vm2653_vm15, %v2621_v5, %v2685_v38  ;;  %v2985_v29 = vperm.slane %v2969_v20, 0  ;;  %v2984_v53 = vperm.slane %v2968_v3, 0  ;;  %v3414_v5 = vperm.slane %v6053_v16, 7 }
 0x429   : > { %3186 = vmatpush.msra.mxu2 %v2722_v47  ;;  %v2967_v47 = vrot.slane %v6241_v48, 5 }
 0x42b   : > { %3187 = vmatpush.msra.mxu2 %v2721_v58  ;;  %3341 = vperm.xlu1 %5124, %v3336_v6   ;;  %v3031_v58 = vadd.f32 %v2984_v53, %v6133_v15  ;;  %v2982_v15 = vperm.slane %v2966_v34, 0 }
 0x42c   : > { %3328 = vperm.xlu2 %5122, %v7026_v28   ;;  %v2983_v28 = vperm.slane %v2967_v47, 0 }
 0x42d   : > { %3188 = vmatpush.msra.mxu2 %v2720_v12  ;;  %v2927_v44 = vpop.permute.xlu1 %2926  ;;  %v3030_v12 = vadd.f32 %v2984_v53, %v2934_v41  ;;  %v3095_v36 = vmul.f32 0.33, %v3031_v58  ;;  %vm3063_vm5 = vcmp.ge.f32.partialorder %v3031_v58, 0.0  ;;  %v3027_v41 = vadd.f32 %v2982_v15, %v6231_v8 }
 0x42e   : > { %v3028_v20 = vadd.f32 %v2983_v28, %v6224_v60  ;;  %v2963_v8 = vrot.slane %v6241_v48, 1 }
 0x42f   : > { %3189 = vmatpush.msra.mxu2 %v2719_v2  ;;  %v3029_v2 = vadd.f32 %v2983_v28, %v2927_v44  ;;  %v3094_v42 = vmul.f32 0.33, %v3030_v12  ;;  %vm3062_vm6 = vcmp.ge.f32.partialorder %v3030_v12, 0.0  ;;  %v3026_v44 = vadd.f32 %v2982_v15, %v6121_v52 }
 0x430   : > { %v3092_v3 = vmul.f32 0.33, %v3028_v20  ;;  %vm3060_vm8 = vcmp.ge.f32.partialorder %v3028_v20, 0.0  ;;  %vm3059_vm9 = vcmp.ge.f32.partialorder %v3027_v41, 0.0 }
 0x431   : > { %3190 = vmatpush.msra.mxu2 %v2718_v1  ;;  %vm3061_vm7 = vcmp.ge.f32.partialorder %v3029_v2, 0.0  ;;  %v3126_v60 = vsel %vm3062_vm6, %v3030_v12, %v3094_v42  ;;  %vm3058_vm10 = vcmp.ge.f32.partialorder %v3026_v44, 0.0 }
 0x432   : > { %v3124_v47 = vsel %vm3060_vm8, %v3028_v20, %v3092_v3  ;;  %v2712_v3 = vmul.f32 0.33, %v6039_v25 }
 0x433   : > { %3191 = vmatpush.msra.mxu2 %v2717_v51  ;;  %3406 = vperm.xlu1 %5124, %v7027_v43   ;;  %v3093_v43 = vmul.f32 0.33, %v3029_v2 }
 0x434   : > { %5125 = vset.pattern.permute.xlu2 %v5688_v37 }
 0x435   : > { %3192 = vmatpush.msra.mxu2 %v2716_v62  ;;  %v6258_v1 = vpop.permute.xlu0 %3367  ;;  %v3127_v62 = vsel %vm3063_vm5, %v3031_v58, %v3095_v36 }
 0x436   : > { %v2953_v18 = vpop.permute.xlu2 %2952 }
 0x437   : > { %v3033_v32 = vadd.f32 %v2985_v29, %v2953_v18  ;;  %3193 = vmatpush.msra.mxu2 %v2715_v56  ;;  %v3091_v56 = vmul.f32 0.33, %v3027_v41 }
 0x439   : > { %vm3065_vm3 = vcmp.ge.f32.partialorder %v3033_v32, 0.0  ;;  %v3097_v49 = vmul.f32 0.33, %v3033_v32  ;;  %3194 = vmatpush.msra.mxu2 %v2714_v39  ;;  %v3090_v39 = vmul.f32 0.33, %v3026_v44  ;;  %v3123_v58 = vsel %vm3059_vm9, %v3027_v41, %v3091_v56  ;;  %v7028_v56 = vld [vmem:[#allocation68_spill] sm:$0xff] }
 0x43a   : > { %vm2679_vm5 = vcmp.ge.f32.partialorder %v7028_v56, 0.0 }
 0x43b   : > { %5127 = vset.pattern.permute.xlu1 %v5688_v37  ;;  %v3129_v55 = vsel %vm3065_vm3, %v3033_v32, %v3097_v49  ;;  %v3125_v32 = vsel %vm3061_vm7, %v3029_v2, %v3093_v43  ;;  %v2980_v49 = vperm.slane %v2964_v63, 0  ;;  %v3122_v12 = vsel %vm3058_vm10, %v3026_v44, %v3090_v39  ;;  %v7029_v39 = vld [vmem:[#allocation66_spill] sm:$0xff] }
 0x43c   : > { %3425 = vperm.xlu2 %5125, %v3414_v5   ;;  %3155 = vmatpush.msrb.mxu3 %v3129_v55  ;;  %v3375_v63 = vperm.slane %v6053_v16, 4  ;;  %vm2681_vm3 = vcmp.ge.f32.partialorder %v6018_v61, 0.0  ;;  %vm2678_vm6 = vcmp.ge.f32.partialorder %v7029_v39, 0.0 }
 0x43d   : > { %v2947_v30 = vpop.permute.xlu1 %2946  ;;  %v6269_v55 = vpop.permute.xlu0 %3744  ;;  %v3023_v52 = vadd.f32 %v2980_v49, %v6179_v31  ;;  %v3022_v34 = vadd.f32 %v2980_v49, %v6198_v27  ;;  %v2978_v31 = vperm.slane %v6241_v48, 0  ;;  %v2710_v49 = vmul.f32 0.33, %v7029_v39 }
 0x43e   : > { %v3032_v9 = vadd.f32 %v2985_v29, %v2947_v30  ;;  %v2981_v29 = vperm.slane %v2965_v19, 0  ;;  %v2979_v30 = vperm.slane %v2963_v8, 0 }
 0x43f   : > { %vm3055_vm13 = vcmp.ge.f32.partialorder %v3023_v52, 0.0  ;;  %v3086_v2 = vmul.f32 0.33, %v3022_v34  ;;  %vm3054_vm14 = vcmp.ge.f32.partialorder %v3022_v34, 0.0  ;;  %v3019_v15 = vadd.f32 %v2978_v31, %v6177_v46 }
 0x440   : > { %v3096_v38 = vmul.f32 0.33, %v3032_v9  ;;  %vm3064_vm4 = vcmp.ge.f32.partialorder %v3032_v9, 0.0  ;;  %v3025_v18 = vadd.f32 %v2981_v29, %v6205_v17  ;;  %v3024_v53 = vadd.f32 %v2981_v29, %v6220_v4 }
 0x441   : > { %v3021_v4 = vadd.f32 %v2979_v30, %v6115_v26  ;;  %v3018_v48 = vadd.f32 %v2978_v31, %v6136_v33  ;;  %v3118_v42 = vsel %vm3054_vm14, %v3022_v34, %v3086_v2  ;;  %vm3051_vm1 = vcmp.ge.f32.partialorder %v3019_v15, 0.0  ;;  %v7033_v31 = vld [vmem:[#allocation64_spill] sm:$0xff] }
 0x442   : > { %v3128_v51 = vsel %vm3064_vm4, %v3032_v9, %v3096_v38  ;;  %v3089_v17 = vmul.f32 0.33, %v3025_v18  ;;  %vm3057_vm11 = vcmp.ge.f32.partialorder %v3025_v18, 0.0  ;;  %v3088_v28 = vmul.f32 0.33, %v3024_v53  ;;  %v6277_v38 = vpop.permute.xlu2 %3230 }
 0x443   : > { %3399 = vperm.xlu1 %5127, %v3388_v24   ;;  %3156 = vmatpush.msrb.mxu3 %v3128_v51  ;;  %vm3056_vm12 = vcmp.ge.f32.partialorder %v3024_v53, 0.0  ;;  %v3087_v9 = vmul.f32 0.33, %v3023_v52  ;;  %v3085_v27 = vmul.f32 0.33, %v3021_v4  ;;  %vm3053_vm15 = vcmp.ge.f32.partialorder %v3021_v4, 0.0  ;;  %v6284_v51 = vpop.f32.mrf.mxu1 }
 0x444   : > { %5126 = vset.pattern.permute.xlu2 %v5683_v35  ;;  %v3121_v36 = vsel %vm3057_vm11, %v3025_v18, %v3089_v17  ;;  %v3120_v19 = vsel %vm3056_vm12, %v3024_v53, %v3088_v28  ;;  %v3082_v46 = vmul.f32 0.33, %v3018_v48  ;;  %v2713_v33 = vmul.f32 0.33, %v6018_v61 }
 0x445   : > { %3157 = vmatpush.msrb.mxu3 %v3127_v62  ;;  %v3119_v26 = vsel %vm3055_vm13, %v3023_v52, %v3087_v9  ;;  %v6281_v20 = vpop.permute.xlu0 %3705  ;;  %v3117_v41 = vsel %vm3053_vm15, %v3021_v4, %v3085_v27  ;;  %v6286_v43 = vpop.permute.xlu1 %3224  ;;  %vm3050_vm2 = vcmp.ge.f32.partialorder %v3018_v48, 0.0  ;;  %vm2680_vm4 = vcmp.ge.f32.partialorder %v6039_v25, 0.0 }
 0x446   : > { %v3114_v18 = vsel %vm3050_vm2, %v3018_v48, %v3082_v46  ;;  %v2745_v8 = vsel %vm2681_vm3, %v6018_v61, %v2713_v33  ;;  %v3349_v52 = vperm.slane %v6053_v16, 2  ;;  %vm2675_vm9 = vcmp.ge.f32.partialorder %v7033_v31, 0.0 }
 0x447   : > { %3158 = vmatpush.msrb.mxu3 %v3126_v60 }
 0x449   : > { %3159 = vmatpush.msrb.mxu3 %v3125_v32  ;;  %v2711_v32 = vmul.f32 0.33, %v7028_v56 }
 0x44b   : > { %5128 = vset.pattern.permute.xlu1 %v5683_v35  ;;  %3160 = vmatpush.msrb.mxu3 %v3124_v47  ;;  %v2744_v47 = vsel %vm2680_vm4, %v6039_v25, %v2712_v3  ;;  %v2359_v17 = vpop.f32.mrf.mxu1  ;;  %v2743_v61 = vsel %vm2679_vm5, %v7028_v56, %v2711_v32  ;;  %v7031_v25 = vld [vmem:[#allocation51_spill] sm:$0xff]  ;;  %v7037_v56 = vld [vmem:[#allocation56_spill] sm:$0xff] }
 0x44c   : > { %3419 = vperm.xlu2 %5126, %v3414_v5   ;;  %v3020_v5 = vadd.f32 %v2979_v30, %v6157_v59  ;;  %v6316_v28 = vadd.f32 %v2359_v17, %v7031_v25  ;;  %v2703_v32 = vmul.f32 0.33, %v7037_v56  ;;  %vm2671_vm13 = vcmp.ge.f32.partialorder %v7037_v56, 0.0  ;;  %v7039_v17 = vld [vmem:[#allocation60_spill] sm:$0xff]  ;;  %v7040_v25 = vld [vmem:[#allocation57_spill] sm:$0xff] }
 0x44d   : > { %3161 = vmatpush.msrb.mxu3 %v3123_v58  ;;  %v7030_v58 = vld [vmem:[#allocation67_spill] sm:$0xff]  ;;  %vm2669_vm15 = vcmp.ge.f32.partialorder %v7039_v17, 0.0 }
 0x44e   : > { %v3084_v59 = vmul.f32 0.33, %v3020_v5  ;;  %vm3052_vm0 = vcmp.ge.f32.partialorder %v3020_v5, 0.0  ;;  %v6288_v62 = vpop.permute.xlu2 %3250  ;;  %v2709_v30 = vmul.f32 0.33, %v7030_v58  ;;  %vm2677_vm7 = vcmp.ge.f32.partialorder %v7030_v58, 0.0 }
 0x44f   : > { %3162 = vmatpush.msrb.mxu3 %v3122_v12  ;;  %v7032_v12 = vld [vmem:[#allocation61_spill] sm:$0xff]  ;;  %v3866_v48 = vrot.slane %v6316_v28, 2 }
 0x450   : > { %v3116_v44 = vsel %vm3052_vm0, %v3020_v5, %v3084_v59  ;;  %v2708_v4 = vmul.f32 0.33, %v7032_v12  ;;  %vm2676_vm8 = vcmp.ge.f32.partialorder %v7032_v12, 0.0  ;;  %v2707_v5 = vmul.f32 0.33, %v7033_v31  ;;  %v7035_v59 = vld [vmem:[#allocation62_spill] sm:$0xff] }
 0x451   : > { %3163 = vmatpush.msrb.mxu3 %v3121_v36  ;;  %v2742_v36 = vsel %vm2678_vm6, %v7029_v39, %v2710_v49  ;;  %v2741_v2 = vsel %vm2677_vm7, %v7030_v58, %v2709_v30  ;;  %vm2673_vm11 = vcmp.ge.f32.partialorder %v7035_v59, 0.0  ;;  %v7038_v39 = vld [vmem:[#allocation59_spill] sm:$0xff]  ;;  %v2701_v58 = vmul.f32 0.33, %v7039_v17 }
 0x452   : > { %v2702_v49 = vmul.f32 0.33, %v7038_v39  ;;  %vm2670_vm14 = vcmp.ge.f32.partialorder %v7038_v39, 0.0  ;;  %vm2668_vm0 = vcmp.ge.f32.partialorder %v7040_v25, 0.0 }
 0x453   : > { %3393 = vperm.xlu1 %5128, %v3388_v24   ;;  %3164 = vmatpush.msrb.mxu3 %v3120_v19  ;;  %v3083_v24 = vmul.f32 0.33, %v3019_v15  ;;  %v7034_v19 = vld [vmem:[#allocation65_spill] sm:$0xff] }
 0x454   : > { %5129 = vset.pattern.permute.xlu2 %v5688_v37  ;;  %v2706_v27 = vmul.f32 0.33, %v7034_v19  ;;  %vm2674_vm10 = vcmp.ge.f32.partialorder %v7034_v19, 0.0 }
 0x455   : > { %3165 = vmatpush.msrb.mxu3 %v3119_v26  ;;  %v3115_v29 = vsel %vm3051_vm1, %v3019_v15, %v3083_v24  ;;  %v6295_v60 = vpop.permute.xlu0 %3828  ;;  %v6302_v53 = vpop.permute.xlu1 %3243  ;;  %v2740_v15 = vsel %vm2676_vm8, %v7032_v12, %v2708_v4  ;;  %v3726_v26 = vperm.slane %v6074_v54, 6  ;;  %v2700_v12 = vmul.f32 0.33, %v7040_v25 }
 0x456   : > { %v6311_v34 = vpop.permute.xlu2 %3263  ;;  %v2738_v3 = vsel %vm2674_vm10, %v7034_v19, %v2706_v27  ;;  %v2734_v4 = vsel %vm2670_vm14, %v7038_v39, %v2702_v49  ;;  %v7042_v19 = vld [vmem:[#allocation55_spill] sm:$0xff] }
 0x457   : > { %3166 = vmatpush.msrb.mxu3 %v3118_v42  ;;  %v2705_v42 = vmul.f32 0.33, %v7035_v59  ;;  %v2698_v27 = vmul.f32 0.33, %v7042_v19  ;;  %vm2666_vm2 = vcmp.ge.f32.partialorder %v7042_v19, 0.0 }
 0x459   : > { %3167 = vmatpush.msrb.mxu3 %v3117_v41  ;;  %v2739_v41 = vsel %vm2675_vm9, %v7033_v31, %v2707_v5  ;;  %v7041_v31 = vld [vmem:[#allocation58_spill] sm:$0xff] }
 0x45a   : > { %v2699_v5 = vmul.f32 0.33, %v7041_v31  ;;  %vm2667_vm1 = vcmp.ge.f32.partialorder %v7041_v31, 0.0 }
 0x45b   : > { %5133 = vset.pattern.permute.xlu1 %v5688_v37  ;;  %3168 = vmatpush.msrb.mxu3 %v3116_v44  ;;  %v7036_v44 = vld [vmem:[#allocation63_spill] sm:$0xff] }
 0x45c   : > { %3386 = vperm.xlu2 %5129, %v3375_v63   ;;  %v2704_v33 = vmul.f32 0.33, %v7036_v44  ;;  %vm2672_vm12 = vcmp.ge.f32.partialorder %v7036_v44, 0.0 }
 0x45d   : > { %3169 = vmatpush.msrb.mxu3 %v3115_v29  ;;  %v6332_v24 = vpop.permute.xlu1 %3256  ;;  %v6339_v29 = vperm.slane %v3866_v48, 0  ;;  %v2731_v48 = vsel %vm2667_vm1, %v7041_v31, %v2699_v5 }
 0x45f   : > { %3170 = vmatpush.msrb.mxu3 %v3114_v18 }
 0x461   : > { %3199 = vmatpush.msra.mxu3 %v2745_v8 }
 0x463   : > { %3200 = vmatpush.msra.mxu3 %v2744_v47  ;;  %3360 = vperm.xlu1 %5133, %v3349_v52   ;;  %v2736_v47 = vsel %vm2672_vm12, %v7036_v44, %v2704_v33  ;;  %v7044_v33 = vld [vmem:[#allocation50_spill] sm:$0xff] }
 0x464   : > { %5130 = vset.pattern.permute.xlu2 %v5683_v35 }
 0x465   : > { %3201 = vmatpush.msra.mxu3 %v2743_v61  ;;  %v6319_v9 = vpop.permute.xlu0 %3822  ;;  %v2735_v61 = vsel %vm2671_vm13, %v7037_v56, %v2703_v32 }
 0x466   : > { %v6335_v46 = vpop.permute.xlu2 %3282 }
 0x467   : > { %3202 = vmatpush.msra.mxu3 %v2742_v36 }
 0x469   : > { %3203 = vmatpush.msra.mxu3 %v2741_v2  ;;  %v2733_v2 = vsel %vm2669_vm15, %v7039_v17, %v2701_v58 }
 0x46b   : > { %3204 = vmatpush.msra.mxu3 %v2740_v15  ;;  %3737 = vperm.xlu1 %5133, %v3726_v26   ;;  %v2732_v15 = vsel %vm2668_vm0, %v7040_v25, %v2700_v12 }
 0x46c   : > { %3380 = vperm.xlu2 %5130, %v3375_v63   ;;  %v2737_v63 = vsel %vm2673_vm11, %v7035_v59, %v2705_v42  ;;  %v7043_v59 = vperm.slane %v6053_v16, 3 }
 0x46d   : > { %3205 = vmatpush.msra.mxu3 %v2739_v41  ;;  %v6353_v30 = vpop.permute.xlu1 %3276  ;;  %v2730_v41 = vsel %vm2666_vm2, %v7042_v19, %v2698_v27  ;;  %v3442_v19 = vrot.slane %v6195_v45, 7 }
 0x46e   : > { %v3784_v18 = vpop.permute.xlu0 %3783  ;;  %v3296_v36 = vpop.permute.xlu2 %3295 }
 0x46f   : > { %3206 = vmatpush.msra.mxu3 %v2738_v3  ;;  %v6345_v8 = vadd.f32 %v6339_v29, %v3784_v18  ;;  %v6374_v3 = vadd.f32 %v6160_v0, %v7044_v33  ;;  %v3713_v0 = vperm.slane %v6074_v54, 5 }
 0x471   : > { %3207 = vmatpush.msra.mxu3 %v2737_v63  ;;  %v3435_v56 = vrot.slane %v6374_v3, 7  ;;  %v3434_v39 = vrot.slane %v6374_v3, 6  ;;  %v3432_v12 = vrot.slane %v6374_v3, 4 }
 0x473   : > { %3208 = vmatpush.msra.mxu3 %v2736_v47  ;;  %5134 = vset.pattern.permute.xlu1 %v5683_v35  ;;  %v3450_v49 = vperm.slane %v3435_v56, 0  ;;  %v3433_v47 = vrot.slane %v6374_v3, 5 }
 0x474   : > { %5131 = vset.pattern.permute.xlu2 %v5688_v37 }
 0x475   : > { %3209 = vmatpush.msra.mxu3 %v2735_v61  ;;  %v3290_v42 = vpop.permute.xlu1 %3289 }
 0x477   : > { %3210 = vmatpush.msra.mxu3 %v2734_v4  ;;  %v3448_v4 = vperm.slane %v3433_v47, 0 }
 0x479   : > { %3211 = vmatpush.msra.mxu3 %v2733_v2  ;;  %v3674_v2 = vperm.slane %v6074_v54, 2  ;;  %v3486_v27 = vadd.f32 %v3448_v4, %v3296_v36 }
 0x47b   : > { %3212 = vmatpush.msra.mxu3 %v2732_v15  ;;  %3731 = vperm.xlu1 %5134, %v3726_v26   ;;  %v7045_v26 = vperm.slane %v6074_v54, 7  ;;  %vm3518_vm7 = vcmp.ge.f32.partialorder %v3486_v27, 0.0 }
 0x47c   : > { %3373 = vperm.xlu2 %5131, %v7043_v59   ;;  %v3431_v59 = vrot.slane %v6374_v3, 3 }
 0x47d   : > { %3213 = vmatpush.msra.mxu3 %v2731_v48 }
 0x47e   : > { %v3316_v44 = vpop.permute.xlu2 %3315  ;;  %v3699_v16 = vpop.permute.xlu0 %3698 }
 0x47f   : > { %3214 = vmatpush.msra.mxu3 %v2730_v41  ;;  %v3489_v17 = vadd.f32 %v3450_v49, %v3316_v44  ;;  %v3485_v44 = vadd.f32 %v3448_v4, %v3290_v42 }
 0x481   : > { %v3553_v31 = vmul.f32 0.33, %v3489_v17  ;;  %vm3521_vm4 = vcmp.ge.f32.partialorder %v3489_v17, 0.0  ;;  %vm3517_vm9 = vcmp.ge.f32.partialorder %v3485_v44, 0.0 }
 0x483   : > { %3692 = vperm.xlu1 %5134, %v3687_v22   ;;  %v3449_v22 = vperm.slane %v3434_v39, 0  ;;  %v3585_v33 = vsel %vm3521_vm4, %v3489_v17, %v3553_v31  ;;  %v3446_v39 = vperm.slane %v3431_v59, 0  ;;  %v3429_v31 = vrot.slane %v6374_v3, 1 }
 0x484   : > { %3750 = vperm.xlu2 %5131, %v7045_v26   ;;  %v6397_v26 = vperm.slane %v3442_v19, 0 }
 0x485   : > { %v3309_v18 = vpop.permute.xlu1 %3308 }
 0x486   : > { %v3329_v32 = vpop.permute.xlu2 %3328  ;;  %v3488_v61 = vadd.f32 %v3449_v22, %v3309_v18  ;;  %v3550_v18 = vmul.f32 0.33, %v3486_v27 }
 0x487   : > { %v6383_v63 = vadd.f32 %v3451_v7, %v3329_v32  ;;  %v3487_v7 = vadd.f32 %v3449_v22, %v6190_v21  ;;  %v3447_v21 = vperm.slane %v3432_v12, 0  ;;  %v3549_v22 = vmul.f32 0.33, %v3485_v44 }
 0x488   : > { %v3552_v15 = vmul.f32 0.33, %v3488_v61  ;;  %vm3520_vm5 = vcmp.ge.f32.partialorder %v3488_v61, 0.0  ;;  %v3582_v4 = vsel %vm3518_vm7, %v3486_v27, %v3550_v18 }
 0x489   : > { %v3551_v41 = vmul.f32 0.33, %v3487_v7  ;;  %vm3519_vm6 = vcmp.ge.f32.partialorder %v3487_v7, 0.0  ;;  %v3484_v36 = vadd.f32 %v3447_v21, %v6335_v46  ;;  %v3483_v42 = vadd.f32 %v3447_v21, %v6353_v30 }
 0x48a   : > { %v3584_v32 = vsel %vm3520_vm5, %v3488_v61, %v3552_v15  ;;  %v3843_v46 = vperm.slane %v6104_v50, 7  ;;  %v3482_v61 = vadd.f32 %v3446_v39, %v6171_v11 }
 0x48b   : > { %5137 = vset.pattern.permute.xlu1 %v5688_v37  ;;  %v3583_v17 = vsel %vm3519_vm6, %v3487_v7, %v3551_v41  ;;  %v3548_v12 = vmul.f32 0.33, %v3484_v36  ;;  %vm3516_vm10 = vcmp.ge.f32.partialorder %v3484_v36, 0.0  ;;  %v3481_v7 = vadd.f32 %v3446_v39, %v6311_v34 }
 0x48c   : > { %3724 = vperm.xlu2 %5131, %v3713_v0   ;;  %v3547_v19 = vmul.f32 0.33, %v3483_v42  ;;  %vm3515_vm11 = vcmp.ge.f32.partialorder %v3483_v42, 0.0  ;;  %v3546_v27 = vmul.f32 0.33, %v3482_v61  ;;  %vm3514_vm12 = vcmp.ge.f32.partialorder %v3482_v61, 0.0 }
 0x48d   : > { %v3322_v58 = vpop.permute.xlu1 %3321  ;;  %v3580_v21 = vsel %vm3516_vm10, %v3484_v36, %v3548_v12  ;;  %v3444_v34 = vperm.slane %v3429_v31, 0  ;;  %v3545_v18 = vmul.f32 0.33, %v3481_v7  ;;  %vm3513_vm13 = vcmp.ge.f32.partialorder %v3481_v7, 0.0 }
 0x48e   : > { %v3490_v25 = vadd.f32 %v3450_v49, %v3322_v58  ;;  %v3430_v49 = vrot.slane %v6374_v3, 2  ;;  %v3436_v58 = vrot.slane %v6195_v45, 1  ;;  %v3578_v39 = vsel %vm3514_vm12, %v3482_v61, %v3546_v27 }
 0x48f   : > { %v3477_v36 = vadd.f32 %v3444_v34, %v6148_v57 }
 0x490   : > { %vm3522_vm3 = vcmp.ge.f32.partialorder %v3490_v25, 0.0  ;;  %v3554_v5 = vmul.f32 0.33, %v3490_v25  ;;  %v6410_v15 = vperm.slane %v3436_v58, 0 }
 0x491   : > { %v3541_v57 = vmul.f32 0.33, %v3477_v36  ;;  %vm3509_vm2 = vcmp.ge.f32.partialorder %v3477_v36, 0.0 }
 0x492   : > { %v3586_v48 = vsel %vm3522_vm3, %v3490_v25, %v3554_v5  ;;  %v3445_v5 = vperm.slane %v3430_v49, 0  ;;  %v3443_v49 = vperm.slane %v6374_v3, 0 }
 0x493   : > { %3685 = vperm.xlu1 %5137, %v3674_v2   ;;  %3607 = vmatpush.msra.mxu0 %v3586_v48  ;;  %v3581_v48 = vsel %vm3517_vm9, %v3485_v44, %v3549_v22  ;;  %v3478_v44 = vadd.f32 %v3444_v34, %v6302_v53  ;;  %v3440_v34 = vrot.slane %v6195_v45, 5 }
 0x494   : > { %5135 = vset.pattern.permute.xlu2 %v5683_v35  ;;  %v3480_v59 = vadd.f32 %v3445_v5, %v6332_v24  ;;  %v3476_v53 = vadd.f32 %v3443_v49, %v6277_v38  ;;  %v3475_v3 = vadd.f32 %v3443_v49, %v6286_v43  ;;  %v7048_v43 = vperm.slane %v6074_v54, 4 }
 0x495   : > { %3608 = vmatpush.msra.mxu0 %v3585_v33  ;;  %v3441_v33 = vrot.slane %v6195_v45, 6  ;;  %vm3510_vm0 = vcmp.ge.f32.partialorder %v3478_v44, 0.0  ;;  %v3804_v49 = vperm.slane %v6104_v50, 4 }
 0x496   : > { %v3426_v56 = vpop.permute.xlu2 %3425  ;;  %vm3512_vm14 = vcmp.ge.f32.partialorder %v3480_v59, 0.0  ;;  %vm3508_vm4 = vcmp.ge.f32.partialorder %v3476_v53, 0.0  ;;  %vm3507_vm6 = vcmp.ge.f32.partialorder %v3475_v3, 0.0 }
 0x497   : > { %v3506_v47 = vadd.f32 %v6397_v26, %v3426_v56  ;;  %3609 = vmatpush.msra.mxu0 %v3584_v32  ;;  %v3579_v56 = vsel %vm3515_vm11, %v3483_v42, %v3547_v19  ;;  %v3544_v32 = vmul.f32 0.33, %v3480_v59  ;;  %v3457_v24 = vperm.slane %v3441_v33, 0 }
 0x498   : > { %v3573_v19 = vsel %vm3509_vm2, %v3477_v36, %v3541_v57 }
 0x499   : > { %vm3538_vm8 = vcmp.ge.f32.partialorder %v3506_v47, 0.0  ;;  %v3570_v25 = vmul.f32 0.33, %v3506_v47  ;;  %3610 = vmatpush.msra.mxu0 %v3583_v17  ;;  %v3504_v42 = vadd.f32 %v3457_v24, %v6250_v40  ;;  %v3542_v17 = vmul.f32 0.33, %v3478_v44 }
 0x49a   : > { %v3540_v40 = vmul.f32 0.33, %v3476_v53 }
 0x49b   : > { %3854 = vperm.xlu1 %5137, %v3843_v46   ;;  %3611 = vmatpush.msra.mxu0 %v3582_v4  ;;  %v3602_v30 = vsel %vm3538_vm8, %v3506_v47, %v3570_v25  ;;  %v3576_v25 = vsel %vm3512_vm14, %v3480_v59, %v3544_v32  ;;  %v3568_v31 = vmul.f32 0.33, %v3504_v42  ;;  %v3574_v38 = vsel %vm3510_vm0, %v3478_v44, %v3542_v17  ;;  %v4198_v59 = vld [vmem:[%s7047_s8 + $0x78] sm:$0xff]  ;;  %v4195_v32 = vld [vmem:[%s7047_s8 + $0x60] sm:$0xff] }
 0x49c   : > { %3718 = vperm.xlu2 %5135, %v3713_v0   ;;  %3627 = vmatpush.msra.mxu1 %v3602_v30  ;;  %v3479_v0 = vadd.f32 %v3445_v5, %v6288_v62  ;;  %v3577_v62 = vsel %vm3513_vm13, %v3481_v7, %v3545_v18  ;;  %vm3536_vm3 = vcmp.ge.f32.partialorder %v3504_v42, 0.0  ;;  %v3539_v7 = vmul.f32 0.33, %v3475_v3  ;;  %v4196_v18 = vld [vmem:[%s7047_s8 + $0x68] sm:$0xff] }
 0x49d   : > { %v3342_v11 = vpop.permute.xlu1 %3341  ;;  %3612 = vmatpush.msra.mxu0 %v3581_v48  ;;  %v6432_v48 = vld [vmem:[%s7046_s7] sm:$0xff] }
 0x49e   : > { %v6414_v41 = vadd.f32 %v6410_v15, %v3342_v11  ;;  %v3543_v47 = vmul.f32 0.33, %v3479_v0  ;;  %vm3511_vm15 = vcmp.ge.f32.partialorder %v3479_v0, 0.0  ;;  %v3600_v11 = vsel %vm3536_vm3, %v3504_v42, %v3568_v31  ;;  %v4192_v42 = vld [vmem:[%s7047_s8 + $0x48] sm:$0xff] }
 0x49f   : > { %3613 = vmatpush.msra.mxu0 %v3580_v21  ;;  %v3603_v21 = vperm.slane %v6432_v48, 4  ;;  %v3571_v33 = vsel %vm3507_vm6, %v3475_v3, %v3539_v7  ;;  %v4185_v7 = vld [vmem:[%s7047_s8 + $0x10] sm:$0xff] }
 0x4a0   : > { %v3575_v4 = vsel %vm3511_vm15, %v3479_v0, %v3543_v47  ;;  %v4197_v0 = vld [vmem:[%s7047_s8 + $0x70] sm:$0xff] }
 0x4a1   : > { %3614 = vmatpush.msra.mxu0 %v3579_v56  ;;  %v3456_v56 = vperm.slane %v3440_v34, 0  ;;  %v4193_v47 = vld [vmem:[%s7047_s8 + $0x50] sm:$0xff] }
 0x4a3   : > { %5139 = vset.pattern.permute.xlu1 %v5683_v35  ;;  %3615 = vmatpush.msra.mxu0 %v3578_v39 }
 0x4a4   : > { %5136 = vset.pattern.permute.xlu2 %v5688_v37 }
 0x4a5   : > { %v3407_v22 = vpop.permute.xlu1 %3406  ;;  %3616 = vmatpush.msra.mxu0 %v3577_v62 }
 0x4a6   : > { %v3420_v58 = vpop.permute.xlu2 %3419  ;;  %v3503_v61 = vadd.f32 %v3457_v24, %v3407_v22  ;;  %v4194_v24 = vld [vmem:[%s7047_s8 + $0x58] sm:$0xff]  ;;  %v4191_v22 = vld [vmem:[%s7047_s8 + $0x40] sm:$0xff] }
 0x4a7   : > { %v3505_v12 = vadd.f32 %v6397_v26, %v3420_v58  ;;  %3617 = vmatpush.msra.mxu0 %v3576_v25  ;;  %v4190_v58 = vld [vmem:[%s7047_s8 + $0x38] sm:$0xff]  ;;  %v4189_v25 = vld [vmem:[%s7047_s8 + $0x30] sm:$0xff] }
 0x4a8   : > { %v3567_v30 = vmul.f32 0.33, %v3503_v61  ;;  %vm3535_vm5 = vcmp.ge.f32.partialorder %v3503_v61, 0.0 }
 0x4a9   : > { %v3569_v5 = vmul.f32 0.33, %v3505_v12  ;;  %3618 = vmatpush.msra.mxu0 %v3575_v4  ;;  %vm3537_vm1 = vcmp.ge.f32.partialorder %v3505_v12, 0.0  ;;  %v4187_v4 = vld [vmem:[%s7047_s8 + $0x20] sm:$0xff] }
 0x4aa   : > { %v3599_v27 = vsel %vm3535_vm5, %v3503_v61, %v3567_v30 }
 0x4ab   : > { %3848 = vperm.xlu1 %5139, %v3843_v46   ;;  %3619 = vmatpush.msra.mxu0 %v3574_v38  ;;  %v3601_v26 = vsel %vm3537_vm1, %v3505_v12, %v3569_v5  ;;  %v3572_v46 = vsel %vm3508_vm4, %v3476_v53, %v3540_v40  ;;  %v3439_v53 = vrot.slane %v6195_v45, 4  ;;  %v4188_v12 = vld [vmem:[%s7047_s8 + $0x28] sm:$0xff]  ;;  %v4186_v38 = vld [vmem:[%s7047_s8 + $0x18] sm:$0xff] }
 0x4ac   : > { %3711 = vperm.xlu2 %5136, %v7048_v43   ;;  %3628 = vmatpush.msra.mxu1 %v3601_v26 }
 0x4ad   : > { %3620 = vmatpush.msra.mxu0 %v3573_v19  ;;  %v3455_v61 = vperm.slane %v3439_v53, 0  ;;  %v3830_v19 = vperm.slane %v6104_v50, 6 }
 0x4ae   : > { %3629 = vmatpush.msra.mxu1 %v3600_v11 }
 0x4af   : > { %3621 = vmatpush.msra.mxu0 %v3572_v46  ;;  %v4184_v46 = vld [vmem:[%s7047_s8 + $0x8] sm:$0xff] }
 0x4b0   : > { %3630 = vmatpush.msra.mxu1 %v3599_v27  ;;  %v7050_v27 = vld [vmem:[#allocation36_spill] sm:$0xff] }
 0x4b1   : > { %3622 = vmatpush.msra.mxu0 %v3571_v33  ;;  %vm1500_vm11 = vcmp.ge.f32.partialorder %v7050_v27, 0.0  ;;  %v4183_v33 = vld [vmem:[%s7047_s8] sm:$0xff] }
 0x4b2   : > { %3623 = vmatmul.f32.vlgmr.msra.gmra.mxu0 %v3603_v21 }
 0x4b3   : > { %4247 = vmatpush.msrb.mxu0 %v4198_v59  ;;  %5144 = vset.pattern.permute.xlu1 %v5688_v37  ;;  %v1504_v59 = vmul.f32 0.33, %v7050_v27 }
 0x4b4   : > { %5138 = vset.pattern.permute.xlu2 %v5683_v35 }
 0x4b5   : > { %4248 = vmatpush.msrb.mxu0 %v4197_v0  ;;  %v3400_v44 = vpop.permute.xlu1 %3399  ;;  %v3438_v0 = vrot.slane %v6195_v45, 3 }
 0x4b6   : > { %v3502_v39 = vadd.f32 %v3456_v56, %v3400_v44  ;;  %v3387_v17 = vpop.permute.xlu2 %3386  ;;  %v4101_v44 = vld [vmem:[%s7049_s16 + $0x70] sm:$0xff] }
 0x4b7   : > { %4249 = vmatpush.msrb.mxu0 %v4196_v18  ;;  %v3500_v57 = vadd.f32 %v3455_v61, %v3387_v17  ;;  %v4102_v18 = vld [vmem:[%s7049_s16 + $0x78] sm:$0xff] }
 0x4b8   : > { %v3566_v36 = vmul.f32 0.33, %v3502_v39  ;;  %vm3534_vm7 = vcmp.ge.f32.partialorder %v3502_v39, 0.0 }
 0x4b9   : > { %4250 = vmatpush.msrb.mxu0 %v4195_v32  ;;  %v3564_v30 = vmul.f32 0.33, %v3500_v57  ;;  %vm3532_vm9 = vcmp.ge.f32.partialorder %v3500_v57, 0.0  ;;  %v3437_v32 = vrot.slane %v6195_v45, 2  ;;  %v4099_v45 = vld [vmem:[%s7049_s16 + $0x60] sm:$0xff] }
 0x4ba   : > { %v3598_v62 = vsel %vm3534_vm7, %v3502_v39, %v3566_v36  ;;  %v7051_v39 = vld [vmem:[#allocation52_spill] sm:$0xff]  ;;  %v3454_v36 = vperm.slane %v3438_v0, 0 }
 0x4bb   : > { %4251 = vmatpush.msrb.mxu0 %v4194_v24  ;;  %3815 = vperm.xlu1 %5144, %v3804_v49   ;;  %v3596_v21 = vsel %vm3532_vm9, %v3500_v57, %v3564_v30  ;;  %v6471_v24 = vadd.f32 %v6284_v51, %v7051_v39  ;;  %v4097_v57 = vld [vmem:[%s7049_s16 + $0x50] sm:$0xff] }
 0x4bc   : > { %3631 = vmatpush.msra.mxu1 %v3598_v62  ;;  %3679 = vperm.xlu2 %5138, %v3674_v2   ;;  %v3131_v2 = vperm.slane %v6432_v48, 2  ;;  %v6477_v62 = vperm.slane %v3437_v32, 0  ;;  %v4090_v32 = vld [vmem:[%s7049_s16 + $0x18] sm:$0xff] }
 0x4bd   : > { %4252 = vmatpush.msrb.mxu0 %v4193_v47  ;;  %v3497_v47 = vadd.f32 %v3454_v36, %v6258_v1  ;;  %v3864_v53 = vrot.slane %v6471_v24, 7  ;;  %v3863_v1 = vrot.slane %v6471_v24, 6 }
 0x4be   : > { %3151 = vmatmul.f32.vlgmr.msrb.gmra.mxu2 %v3131_v2 }
 0x4bf   : > { %4253 = vmatpush.msrb.mxu0 %v4192_v42  ;;  %vm3529_vm13 = vcmp.ge.f32.partialorder %v3497_v47, 0.0  ;;  %v3879_v2 = vperm.slane %v3864_v53, 0 }
 0x4c1   : > { %4254 = vmatpush.msrb.mxu0 %v4191_v22 }
 0x4c3   : > { %4255 = vmatpush.msrb.mxu0 %v4190_v58  ;;  %5145 = vset.pattern.permute.xlu1 %v5683_v35  ;;  %v4098_v58 = vld [vmem:[%s7049_s16 + $0x58] sm:$0xff] }
 0x4c4   : > { %5140 = vset.pattern.permute.xlu2 %v5688_v37 }
 0x4c5   : > { %4256 = vmatpush.msrb.mxu0 %v4189_v25  ;;  %v3394_v3 = vpop.permute.xlu1 %3393  ;;  %v3791_v25 = vperm.slane %v6104_v50, 3 }
 0x4c6   : > { %v3501_v31 = vadd.f32 %v3456_v56, %v3394_v3  ;;  %v3381_v5 = vpop.permute.xlu2 %3380  ;;  %v1508_v56 = vsel %vm1500_vm11, %v7050_v27, %v1504_v59 }
 0x4c7   : > { %4257 = vmatpush.msrb.mxu0 %v4188_v12  ;;  %v3499_v40 = vadd.f32 %v3455_v61, %v3381_v5  ;;  %v3561_v61 = vmul.f32 0.33, %v3497_v47  ;;  %v3918_v5 = vadd.f32 %v3879_v2, %v6269_v55  ;;  %v4093_v55 = vld [vmem:[%s7049_s16 + $0x30] sm:$0xff] }
 0x4c8   : > { %v3565_v26 = vmul.f32 0.33, %v3501_v31  ;;  %vm3533_vm8 = vcmp.ge.f32.partialorder %v3501_v31, 0.0 }
 0x4c9   : > { %4258 = vmatpush.msrb.mxu0 %v4187_v4  ;;  %v3563_v43 = vmul.f32 0.33, %v3499_v40  ;;  %vm3531_vm10 = vcmp.ge.f32.partialorder %v3499_v40, 0.0  ;;  %v3593_v30 = vsel %vm3529_vm13, %v3497_v47, %v3561_v61  ;;  %v3982_v27 = vmul.f32 0.33, %v3918_v5  ;;  %v4088_v47 = vld [vmem:[%s7049_s16 + $0x8] sm:$0xff] }
 0x4ca   : > { %v3597_v11 = vsel %vm3533_vm8, %v3501_v31, %v3565_v26  ;;  %v4096_v31 = vld [vmem:[%s7049_s16 + $0x48] sm:$0xff]  ;;  %vm3950_vm0 = vcmp.ge.f32.partialorder %v3918_v5, 0.0 }
 0x4cb   : > { %4259 = vmatpush.msrb.mxu0 %v4186_v38  ;;  %3809 = vperm.xlu1 %5145, %v3804_v49   ;;  %v3595_v34 = vsel %vm3531_vm10, %v3499_v40, %v3563_v43  ;;  %v4100_v49 = vld [vmem:[%s7049_s16 + $0x68] sm:$0xff]  ;;  %v3878_v40 = vperm.slane %v3863_v1, 0  ;;  %v4014_v0 = vsel %vm3950_vm0, %v3918_v5, %v3982_v27  ;;  %v4163_v5 = vld [vmem:[%s7049_s16 + $0x260] sm:$0xff]  ;;  %v3861_v27 = vrot.slane %v6471_v24, 4 }
 0x4cc   : > { %3632 = vmatpush.msra.mxu1 %v3597_v11  ;;  %3841 = vperm.xlu2 %5140, %v3830_v19  }
 0x4cd   : > { %4260 = vmatpush.msrb.mxu0 %v4185_v7  ;;  %v4095_v7 = vld [vmem:[%s7049_s16 + $0x40] sm:$0xff] }
 0x4ce   : > { %3633 = vmatpush.msra.mxu1 %v3596_v21 }
 0x4cf   : > { %4261 = vmatpush.msrb.mxu0 %v4184_v46 }
 0x4d0   : > { %3634 = vmatpush.msra.mxu1 %v3595_v34  ;;  %v4092_v34 = vld [vmem:[%s7049_s16 + $0x28] sm:$0xff] }
 0x4d1   : > { %4262 = vmatpush.msrb.mxu0 %v4183_v33 }
 0x4d2   : > { %4263 = vmatmul.f32.vlgmr.msrb.gmra.mxu0 %v1508_v56  ;;  %v3862_v56 = vrot.slane %v6471_v24, 5 }
 0x4d3   : > { %4327 = vmatpush.msra.mxu0 %v4102_v18  ;;  %5146 = vset.pattern.permute.xlu1 %v5688_v37  ;;  %v4091_v18 = vld [vmem:[%s7049_s16 + $0x20] sm:$0xff] }
 0x4d4   : > { %5141 = vset.pattern.permute.xlu2 %v5683_v35 }
 0x4d5   : > { %4328 = vmatpush.msra.mxu0 %v4101_v44  ;;  %v3361_v42 = vpop.permute.xlu1 %3360 }
 0x4d6   : > { %v3374_v22 = vpop.permute.xlu2 %3373  ;;  %v3496_v51 = vadd.f32 %v6477_v62, %v3361_v42  ;;  %v7052_v42 = vld [vmem:[#allocation32_spill] sm:$0xff] }
 0x4d7   : > { %4329 = vmatpush.msra.mxu0 %v4100_v49  ;;  %v3498_v17 = vadd.f32 %v3454_v36, %v3374_v22  ;;  %v4089_v36 = vld [vmem:[%s7049_s16 + $0x10] sm:$0xff]  ;;  %v3877_v49 = vperm.slane %v3862_v56, 0  ;;  %vm1383_vm2 = vcmp.ge.f32.partialorder %v7052_v42, 0.0 }
 0x4d8   : > { %v3560_v3 = vmul.f32 0.33, %v3496_v51  ;;  %vm3528_vm14 = vcmp.ge.f32.partialorder %v3496_v51, 0.0 }
 0x4d9   : > { %4330 = vmatpush.msra.mxu0 %v4099_v45  ;;  %v3562_v12 = vmul.f32 0.33, %v3498_v17  ;;  %vm3530_vm12 = vcmp.ge.f32.partialorder %v3498_v17, 0.0  ;;  %v1389_v45 = vmul.f32 0.33, %v7052_v42 }
 0x4da   : > { %v3592_v46 = vsel %vm3528_vm14, %v3496_v51, %v3560_v3 }
 0x4db   : > { %4331 = vmatpush.msra.mxu0 %v4098_v58  ;;  %3802 = vperm.xlu1 %5146, %v3791_v25   ;;  %v3594_v4 = vsel %vm3530_vm12, %v3498_v17, %v3562_v12  ;;  %v4087_v17 = vld [vmem:[%s7049_s16] sm:$0xff]  ;;  %v4165_v12 = vld [vmem:[%s7049_s16 + $0x270] sm:$0xff] }
 0x4dc   : > { %3835 = vperm.xlu2 %5141, %v3830_v19   ;;  %3635 = vmatpush.msra.mxu1 %v3594_v4  ;;  %v4094_v19 = vld [vmem:[%s7049_s16 + $0x38] sm:$0xff]  ;;  %v3132_v4 = vperm.slane %v6432_v48, 3 }
 0x4dd   : > { %4332 = vmatpush.msra.mxu0 %v4097_v57  ;;  %v3738_v38 = vpop.permute.xlu1 %3737  ;;  %v7053_v57 = vperm.slane %v6104_v50, 2  ;;  %v3868_v50 = vrot.slane %v6316_v28, 4 }
 0x4de   : > { %3636 = vmatpush.msra.mxu1 %v3593_v30  ;;  %v3751_v26 = vpop.permute.xlu2 %3750  ;;  %v3917_v43 = vadd.f32 %v3878_v40, %v3738_v38  ;;  %3171 = vmatmul.f32.vlgmr.msrb.gmra.mxu3 %v3132_v4  ;;  %v4162_v38 = vld [vmem:[%s7049_s16 + $0x258] sm:$0xff]  ;;  %v4151_v4 = vld [vmem:[%s7049_s16 + $0x200] sm:$0xff] }
 0x4df   : > { %4333 = vmatpush.msra.mxu0 %v4096_v31  ;;  %v3919_v11 = vadd.f32 %v3879_v2, %v3751_v26  ;;  %v4164_v2 = vld [vmem:[%s7049_s16 + $0x268] sm:$0xff]  ;;  %v4161_v26 = vld [vmem:[%s7049_s16 + $0x250] sm:$0xff] }
 0x4e0   : > { %3637 = vmatpush.msra.mxu1 %v3592_v46  ;;  %v3981_v21 = vmul.f32 0.33, %v3917_v43  ;;  %vm3949_vm1 = vcmp.ge.f32.partialorder %v3917_v43, 0.0 }
 0x4e1   : > { %vm3951_vm15 = vcmp.ge.f32.partialorder %v3919_v11, 0.0  ;;  %v3983_v59 = vmul.f32 0.33, %v3919_v11  ;;  %4334 = vmatpush.msra.mxu0 %v4095_v7  ;;  %v3661_v7 = vperm.slane %v6074_v54, 1 }
 0x4e2   : > { %v4013_v44 = vsel %vm3949_vm1, %v3917_v43, %v3981_v21  ;;  %v4157_v21 = vld [vmem:[%s7049_s16 + $0x230] sm:$0xff] }
 0x4e3   : > { %4335 = vmatpush.msra.mxu0 %v4094_v19  ;;  %5149 = vset.pattern.permute.xlu1 %v5683_v35  ;;  %v4015_v33 = vsel %vm3951_vm15, %v3919_v11, %v3983_v59  ;;  %v4160_v11 = vld [vmem:[%s7049_s16 + $0x248] sm:$0xff]  ;;  %v4159_v19 = vld [vmem:[%s7049_s16 + $0x240] sm:$0xff]  ;;  %v4158_v59 = vld [vmem:[%s7049_s16 + $0x238] sm:$0xff] }
 0x4e4   : > { %3796 = vperm.xlu2 %5141, %v3791_v25   ;;  %4036 = vmatpush.msrb.mxu2 %v4015_v33  ;;  %v4166_v25 = vld [vmem:[%s7049_s16 + $0x278] sm:$0xff]  ;;  %v3876_v33 = vperm.slane %v3861_v27, 0  ;;  %v4491_v27 = vld [vmem:[%s7055_s19 + $0x160] sm:$0xff] }
 0x4e5   : > { %4336 = vmatpush.msra.mxu0 %v4093_v55  ;;  %v3860_v55 = vrot.slane %v6471_v24, 3 }
 0x4e6   : > { %4037 = vmatpush.msrb.mxu2 %v4014_v0  ;;  %v3725_v39 = vpop.permute.xlu2 %3724  ;;  %v3912_v0 = vadd.f32 %v3876_v33, %v6281_v20  ;;  %v4153_v20 = vld [vmem:[%s7049_s16 + $0x210] sm:$0xff] }
 0x4e7   : > { %4337 = vmatpush.msra.mxu0 %v4092_v34  ;;  %v3915_v22 = vadd.f32 %v3877_v49, %v3725_v39  ;;  %v3859_v34 = vrot.slane %v6471_v24, 2 }
 0x4e8   : > { %4038 = vmatpush.msrb.mxu2 %v4013_v44  ;;  %vm3944_vm7 = vcmp.ge.f32.partialorder %v3912_v0, 0.0 }
 0x4e9   : > { %4338 = vmatpush.msra.mxu0 %v4091_v18  ;;  %v3979_v61 = vmul.f32 0.33, %v3915_v22  ;;  %vm3947_vm4 = vcmp.ge.f32.partialorder %v3915_v22, 0.0  ;;  %v3875_v18 = vperm.slane %v3860_v55, 0 }
 0x4eb   : > { %4339 = vmatpush.msra.mxu0 %v4090_v32  ;;  %3354 = vperm.xlu1 %5149, %v3349_v52   ;;  %v1395_v52 = vsel %vm1383_vm2, %v7052_v42, %v1389_v45  ;;  %v4011_v3 = vsel %vm3947_vm4, %v3915_v22, %v3979_v61  ;;  %v4155_v32 = vld [vmem:[%s7049_s16 + $0x220] sm:$0xff]  ;;  %v3911_v39 = vadd.f32 %v3875_v18, %v3699_v16  ;;  %v3871_v42 = vrot.slane %v6316_v28, 7 }
 0x4ec   : > { %5147 = vset.pattern.permute.xlu2 %v5688_v37  ;;  %v3976_v45 = vmul.f32 0.33, %v3912_v0 }
 0x4ed   : > { %4340 = vmatpush.msra.mxu0 %v4089_v36  ;;  %v3732_v53 = vpop.permute.xlu1 %3731  ;;  %v3887_v61 = vperm.slane %v3871_v42, 0  ;;  %vm3943_vm8 = vcmp.ge.f32.partialorder %v3911_v39, 0.0  ;;  %v4482_v42 = vld [vmem:[%s7055_s19 + $0x118] sm:$0xff] }
 0x4ee   : > { %v3916_v51 = vadd.f32 %v3878_v40, %v3732_v53 }
 0x4ef   : > { %4341 = vmatpush.msra.mxu0 %v4088_v47  ;;  %v4154_v47 = vld [vmem:[%s7049_s16 + $0x218] sm:$0xff] }
 0x4f0   : > { %v3980_v58 = vmul.f32 0.33, %v3916_v51  ;;  %vm3948_vm3 = vcmp.ge.f32.partialorder %v3916_v51, 0.0 }
 0x4f1   : > { %4342 = vmatpush.msra.mxu0 %v4087_v17 }
 0x4f2   : > { %4343 = vmatmul.f32.vlgmr.msra.gmra.mxu0 %v1395_v52  ;;  %v4012_v1 = vsel %vm3948_vm3, %v3916_v51, %v3980_v58  ;;  %v3975_v51 = vmul.f32 0.33, %v3911_v39  ;;  %v7054_v52 = vld [vmem:[#allocation45_spill] sm:$0xff] }
 0x4f3   : > { %4407 = vmatpush.msrb.mxu0 %v4166_v25  ;;  %5150 = vset.pattern.permute.xlu1 %v5688_v37  ;;  %v4152_v25 = vld [vmem:[%s7049_s16 + $0x208] sm:$0xff]  ;;  %vm1387_vm9 = vcmp.ge.f32.partialorder %v7054_v52, 0.0 }
 0x4f4   : > { %3789 = vperm.xlu2 %5147, %v7053_v57   ;;  %4039 = vmatpush.msrb.mxu2 %v4012_v1 }
 0x4f5   : > { %4408 = vmatpush.msrb.mxu0 %v4165_v12  ;;  %v3693_v46 = vpop.permute.xlu1 %3692  ;;  %v1393_v12 = vmul.f32 0.33, %v7054_v52 }
 0x4f6   : > { %4040 = vmatpush.msrb.mxu2 %v4011_v3  ;;  %v3719_v31 = vpop.permute.xlu2 %3718  ;;  %v3910_v22 = vadd.f32 %v3875_v18, %v3693_v46  ;;  %v4492_v46 = vld [vmem:[%s7055_s19 + $0x168] sm:$0xff]  ;;  %v4486_v18 = vld [vmem:[%s7055_s19 + $0x138] sm:$0xff] }
 0x4f7   : > { %4409 = vmatpush.msrb.mxu0 %v4164_v2  ;;  %v3914_v40 = vadd.f32 %v3877_v49, %v3719_v31  ;;  %v3874_v49 = vperm.slane %v3859_v34, 0  ;;  %v4008_v2 = vsel %vm3944_vm7, %v3912_v0, %v3976_v45  ;;  %v4007_v31 = vsel %vm3943_vm8, %v3911_v39, %v3975_v51  ;;  %v4487_v34 = vld [vmem:[%s7055_s19 + $0x140] sm:$0xff]  ;;  %v7056_v45 = vld [vmem:[#allocation38_spill] sm:$0xff]  ;;  %v4481_v51 = vld [vmem:[%s7055_s19 + $0x110] sm:$0xff] }
 0x4f8   : > { %v3974_v1 = vmul.f32 0.33, %v3910_v22  ;;  %vm3942_vm10 = vcmp.ge.f32.partialorder %v3910_v22, 0.0 }
 0x4f9   : > { %v3978_v30 = vmul.f32 0.33, %v3914_v40  ;;  %4410 = vmatpush.msrb.mxu0 %v4163_v5  ;;  %vm3946_vm5 = vcmp.ge.f32.partialorder %v3914_v40, 0.0 }
 0x4fb   : > { %4411 = vmatpush.msrb.mxu0 %v4162_v38  ;;  %3347 = vperm.xlu1 %5150, %v3336_v6   ;;  %v4010_v43 = vsel %vm3946_vm5, %v3914_v40, %v3978_v30  ;;  %v4156_v6 = vld [vmem:[%s7049_s16 + $0x228] sm:$0xff]  ;;  %v4494_v40 = vld [vmem:[%s7055_s19 + $0x178] sm:$0xff]  ;;  %v1399_v38 = vsel %vm1387_vm9, %v7054_v52, %v1393_v12  ;;  %v4006_v30 = vsel %vm3942_vm10, %v3910_v22, %v3974_v1  ;;  %v7057_v22 = vld [vmem:[#allocation53_spill] sm:$0xff]  ;;  %vm3956_vm10 = vcmp.ge.f32.partialorder %v6345_v8, 0.0 }
 0x4fc   : > { %3672 = vperm.xlu2 %5147, %v3661_v7   ;;  %4041 = vmatpush.msrb.mxu2 %v4010_v43  ;;  %v4639_v52 = vld [vmem:[%s7058_s20 + $0x178] sm:$0xff]  ;;  %v4638_v1 = vld [vmem:[%s7058_s20 + $0x170] sm:$0xff] }
 0x4fd   : > { %4412 = vmatpush.msrb.mxu0 %v4161_v26  ;;  %v3648_v26 = vperm.slane %v6074_v54, 0 }
 0x4ff   : > { %4413 = vmatpush.msrb.mxu0 %v4160_v11 }
 0x501   : > { %4414 = vmatpush.msrb.mxu0 %v4159_v19 }
 0x503   : > { %4415 = vmatpush.msrb.mxu0 %v4158_v59  ;;  %5152 = vset.pattern.permute.xlu1 %v5683_v35  ;;  %v4490_v59 = vld [vmem:[%s7055_s19 + $0x158] sm:$0xff] }
 0x504   : > { %5151 = vset.pattern.permute.xlu2 %v5683_v35 }
 0x505   : > { %4416 = vmatpush.msrb.mxu0 %v4157_v21  ;;  %v3686_v56 = vpop.permute.xlu1 %3685  ;;  %v4489_v21 = vld [vmem:[%s7055_s19 + $0x150] sm:$0xff] }
 0x506   : > { %v3712_v44 = vpop.permute.xlu2 %3711  ;;  %v3909_v17 = vadd.f32 %v3874_v49, %v3686_v56  ;;  %v3870_v56 = vrot.slane %v6316_v28, 6 }
 0x507   : > { %4417 = vmatpush.msrb.mxu0 %v4156_v6  ;;  %v3913_v36 = vadd.f32 %v3876_v33, %v3712_v44  ;;  %v4485_v44 = vld [vmem:[%s7055_s19 + $0x130] sm:$0xff] }
 0x508   : > { %vm3941_vm12 = vcmp.ge.f32.partialorder %v3909_v17, 0.0  ;;  %v3886_v39 = vperm.slane %v3870_v56, 0  ;;  %v4628_v56 = vld [vmem:[%s7058_s20 + $0x120] sm:$0xff] }
 0x509   : > { %v3977_v53 = vmul.f32 0.33, %v3913_v36  ;;  %4418 = vmatpush.msrb.mxu0 %v4155_v32  ;;  %vm3945_vm6 = vcmp.ge.f32.partialorder %v3913_v36, 0.0 }
 0x50b   : > { %4419 = vmatpush.msrb.mxu0 %v4154_v47  ;;  %3770 = vperm.xlu1 %5152, %v3765_v13   ;;  %v4009_v58 = vsel %vm3945_vm6, %v3913_v36, %v3977_v53  ;;  %v3973_v13 = vmul.f32 0.33, %v3909_v17  ;;  %v1598_v53 = vadd.f32 %v7057_v22, %v7056_v45  ;;  %v4625_v22 = vld [vmem:[%s7058_s20 + $0x108] sm:$0xff] }
 0x50c   : > { %3666 = vperm.xlu2 %5151, %v3661_v7   ;;  %4042 = vmatpush.msrb.mxu2 %v4009_v58  ;;  %v4493_v7 = vld [vmem:[%s7055_s19 + $0x170] sm:$0xff] }
 0x50d   : > { %4420 = vmatpush.msrb.mxu0 %v4153_v20  ;;  %v3855_v57 = vpop.permute.xlu1 %3854  ;;  %v4005_v11 = vsel %vm3941_vm12, %v3909_v17, %v3973_v13  ;;  %v4480_v17 = vld [vmem:[%s7055_s19 + $0x108] sm:$0xff]  ;;  %v1626_v58 = vmul.f32 0.33, %v1598_v53  ;;  %vm1622_vm0 = vcmp.ge.f32.partialorder %v1598_v53, 0.0 }
 0x50e   : > { %v3935_v3 = vadd.f32 %v3887_v61, %v3855_v57  ;;  %4043 = vmatpush.msrb.mxu2 %v4008_v2 }
 0x50f   : > { %4421 = vmatpush.msrb.mxu0 %v4152_v25  ;;  %v4479_v25 = vld [vmem:[%s7055_s19 + $0x100] sm:$0xff]  ;;  %v1630_v12 = vsel %vm1622_vm0, %v1598_v53, %v1626_v58  ;;  %vm3525_vm0 = vcmp.ge.f32.partialorder %v6414_v41, 0.0 }
 0x510   : > { %vm3967_vm11 = vcmp.ge.f32.partialorder %v3935_v3, 0.0  ;;  %v3999_v5 = vmul.f32 0.33, %v3935_v3  ;;  %4044 = vmatpush.msrb.mxu2 %v4007_v31 }
 0x511   : > { %4422 = vmatpush.msrb.mxu0 %v4151_v4  ;;  %v4636_v4 = vld [vmem:[%s7058_s20 + $0x160] sm:$0xff] }
 0x512   : > { %4423 = vmatmul.f32.vlgmr.msrb.gmra.mxu0 %v1399_v38  ;;  %4045 = vmatpush.msrb.mxu2 %v4006_v30  ;;  %v4031_v43 = vsel %vm3967_vm11, %v3935_v3, %v3999_v5  ;;  %v3884_v5 = vperm.slane %v3868_v50, 0  ;;  %v4635_v38 = vld [vmem:[%s7058_s20 + $0x158] sm:$0xff]  ;;  %v3858_v50 = vrot.slane %v6471_v24, 1 }
 0x513   : > { %4551 = vmatpush.msra.mxu0 %v4494_v40  ;;  %3653 = vperm.xlu1 %5152, %v3648_v26  }
 0x514   : > { %5153 = vset.pattern.permute.xlu2 %v5688_v37  ;;  %4046 = vmatpush.msrb.mxu2 %v4005_v11  ;;  %v4488_v37 = vld [vmem:[%s7055_s19 + $0x148] sm:$0xff] }
 0x515   : > { %4552 = vmatpush.msra.mxu0 %v4493_v7  ;;  %4056 = vmatpush.msrb.mxu3 %v4031_v43  ;;  %v4634_v43 = vld [vmem:[%s7058_s20 + $0x150] sm:$0xff] }
 0x516   : > { %v3680_v19 = vpop.permute.xlu2 %3679 }
 0x517   : > { %4553 = vmatpush.msra.mxu0 %v4492_v46  ;;  %v3908_v54 = vadd.f32 %v3874_v49, %v3680_v19  ;;  %v4483_v49 = vld [vmem:[%s7055_s19 + $0x120] sm:$0xff]  ;;  %v4633_v46 = vld [vmem:[%s7058_s20 + $0x148] sm:$0xff] }
 0x519   : > { %v3972_v55 = vmul.f32 0.33, %v3908_v54  ;;  %4554 = vmatpush.msra.mxu0 %v4491_v27  ;;  %vm3940_vm13 = vcmp.ge.f32.partialorder %v3908_v54, 0.0 }
 0x51b   : > { %4555 = vmatpush.msra.mxu0 %v4490_v59  ;;  %v4004_v33 = vsel %vm3940_vm13, %v3908_v54, %v3972_v55  ;;  %5156 = vset.pattern.permute.xlu1 %v7025_v10  ;;  %v4484_v10 = vld [vmem:[%s7055_s19 + $0x128] sm:$0xff]  ;;  %v4632_v54 = vld [vmem:[%s7058_s20 + $0x140] sm:$0xff] }
 0x51c   : > { %3659 = vperm.xlu2 %5153, %v3648_v26   ;;  %4047 = vmatpush.msrb.mxu2 %v4004_v33  ;;  %v4631_v33 = vld [vmem:[%s7058_s20 + $0x138] sm:$0xff] }
 0x51d   : > { %4556 = vmatpush.msra.mxu0 %v4489_v21  ;;  %v3849_v16 = vpop.permute.xlu1 %3848 }
 0x51e   : > { %v3934_v6 = vadd.f32 %v3887_v61, %v3849_v16  ;;  %v3869_v61 = vrot.slane %v6316_v28, 5  ;;  %v4630_v16 = vld [vmem:[%s7058_s20 + $0x130] sm:$0xff] }
 0x51f   : > { %4557 = vmatpush.msra.mxu0 %v4488_v37 }
 0x520   : > { %v3998_v0 = vmul.f32 0.33, %v3934_v6  ;;  %vm3966_vm14 = vcmp.ge.f32.partialorder %v3934_v6, 0.0  ;;  %v3885_v57 = vperm.slane %v3869_v61, 0 }
 0x521   : > { %4558 = vmatpush.msra.mxu0 %v4487_v34  ;;  %v4629_v34 = vld [vmem:[%s7058_s20 + $0x128] sm:$0xff] }
 0x522   : > { %v4030_v32 = vsel %vm3966_vm14, %v3934_v6, %v3998_v0  ;;  %v3931_v2 = vadd.f32 %v3885_v57, %v6295_v60  ;;  %v3930_v31 = vadd.f32 %v3885_v57, %v6319_v9  ;;  %v3867_v0 = vrot.slane %v6316_v28, 3 }
 0x523   : > { %4559 = vmatpush.msra.mxu0 %v4486_v18  ;;  %4057 = vmatpush.msrb.mxu3 %v4030_v32  ;;  %v7059_v32 = vld [vmem:[#allocation41_spill] sm:$0xff] }
 0x524   : > { %5154 = vset.pattern.permute.xlu2 %v5683_v35  ;;  %v3995_v30 = vmul.f32 0.33, %v3931_v2  ;;  %vm3963_vm2 = vcmp.ge.f32.partialorder %v3931_v2, 0.0  ;;  %v3994_v60 = vmul.f32 0.33, %v3930_v31  ;;  %vm3962_vm3 = vcmp.ge.f32.partialorder %v3930_v31, 0.0 }
 0x525   : > { %4560 = vmatpush.msra.mxu0 %v4485_v44  ;;  %v4627_v44 = vld [vmem:[%s7058_s20 + $0x118] sm:$0xff] }
 0x526   : > { %v3842_v36 = vpop.permute.xlu2 %3841  ;;  %v4027_v27 = vsel %vm3963_vm2, %v3931_v2, %v3995_v30  ;;  %v4026_v55 = vsel %vm3962_vm3, %v3930_v31, %v3994_v60  ;;  %v3873_v31 = vperm.slane %v3858_v50, 0  ;;  %vm3523_vm2 = vcmp.ge.f32.partialorder %v6383_v63, 0.0  ;;  %v4206_v50 = vld [vmem:[%s7047_s8 + $0xb8] sm:$0xff] }
 0x527   : > { %4561 = vmatpush.msra.mxu0 %v4484_v10  ;;  %v3933_v47 = vadd.f32 %v3886_v39, %v3842_v36  ;;  %v7060_v10 = vld [vmem:[#allocation49_spill] sm:$0xff]  ;;  %v3883_v36 = vperm.slane %v3867_v0, 0 }
 0x529   : > { %v3997_v20 = vmul.f32 0.33, %v3933_v47  ;;  %4562 = vmatpush.msra.mxu0 %v4483_v49  ;;  %vm3965_vm15 = vcmp.ge.f32.partialorder %v3933_v47, 0.0  ;;  %v4626_v49 = vld [vmem:[%s7058_s20 + $0x110] sm:$0xff] }
 0x52b   : > { %4563 = vmatpush.msra.mxu0 %v4482_v42  ;;  %v4029_v35 = vsel %vm3965_vm15, %v3933_v47, %v3997_v20  ;;  %v3865_v47 = vrot.slane %v6316_v28, 1 }
 0x52c   : > { %3757 = vperm.xlu2 %5154, %v3752_v23   ;;  %4058 = vmatpush.msrb.mxu3 %v4029_v35  ;;  %v4637_v23 = vld [vmem:[%s7058_s20 + $0x168] sm:$0xff] }
 0x52d   : > { %4564 = vmatpush.msra.mxu0 %v4481_v51  ;;  %v3816_v3 = vpop.permute.xlu1 %3815  ;;  %v4624_v51 = vld [vmem:[%s7058_s20 + $0x100] sm:$0xff]  ;;  %v6589_v58 = vperm.slane %v3865_v47, 0 }
 0x52e   : > { %v3929_v26 = vadd.f32 %v3884_v5, %v3816_v3 }
 0x52f   : > { %4565 = vmatpush.msra.mxu0 %v4480_v17 }
 0x530   : > { %v3993_v9 = vmul.f32 0.33, %v3929_v26  ;;  %vm3961_vm4 = vcmp.ge.f32.partialorder %v3929_v26, 0.0 }
 0x531   : > { %4566 = vmatpush.msra.mxu0 %v4479_v25  ;;  %v3777_v25 = vpop.permute.xlu0 %3776 }
 0x532   : > { %4567 = vmatmul.f32.vlgmr.msra.gmra.mxu0 %v1630_v12  ;;  %v4025_v37 = vsel %vm3961_vm4, %v3929_v26, %v3993_v9 }
 0x533   : > { %4696 = vmatpush.msrb.mxu0 %v4639_v52 }
 0x535   : > { %4697 = vmatpush.msrb.mxu0 %v4638_v1  ;;  %v3175_v1 = vperm.slane %v6432_v48, 0 }
 0x536   : > { %v3836_v13 = vpop.permute.xlu2 %3835 }
 0x537   : > { %4698 = vmatpush.msrb.mxu0 %v4637_v23  ;;  %v3932_v40 = vadd.f32 %v3886_v39, %v3836_v13  ;;  %v1722_v39 = vadd.f32 %v7060_v10, %v7059_v32  ;;  %v3923_v23 = vadd.f32 %v6589_v58, %v3777_v25  ;;  %3195 = vmatmul.f32.vlgmr.msra.gmra.mxu2 %v3175_v1  ;;  %v4214_v10 = vld [vmem:[%s7047_s8 + $0xf8] sm:$0xff] }
 0x539   : > { %4699 = vmatpush.msrb.mxu0 %v4636_v4  ;;  %v3996_v7 = vmul.f32 0.33, %v3932_v40  ;;  %vm3964_vm1 = vcmp.ge.f32.partialorder %v3932_v40, 0.0  ;;  %v1750_v53 = vmul.f32 0.33, %v1722_v39  ;;  %vm1746_vm6 = vcmp.ge.f32.partialorder %v1722_v39, 0.0 }
 0x53a   : > { %v3988_v4 = vmul.f32 0.33, %v6345_v8  ;;  %vm3955_vm11 = vcmp.ge.f32.partialorder %v3923_v23, 0.0 }
 0x53b   : > { %4700 = vmatpush.msrb.mxu0 %v4635_v38  ;;  %v4028_v11 = vsel %vm3964_vm1, %v3932_v40, %v3996_v7  ;;  %v1754_v57 = vsel %vm1746_vm6, %v1722_v39, %v1750_v53  ;;  %vm3524_vm1 = vcmp.ge.f32.partialorder %v6214_v14, 0.0  ;;  %v3764_v39 = vpop.permute.xlu0 %3763 }
 0x53c   : > { %4059 = vmatpush.msrb.mxu3 %v4028_v11  ;;  %v4020_v26 = vsel %vm3956_vm10, %v6345_v8, %v3988_v4 }
 0x53d   : > { %4701 = vmatpush.msrb.mxu0 %v4634_v43  ;;  %v3810_v19 = vpop.permute.xlu1 %3809 }
 0x53e   : > { %v3928_v59 = vadd.f32 %v3884_v5, %v3810_v19  ;;  %4060 = vmatpush.msrb.mxu3 %v4027_v27  ;;  %v3797_v18 = vpop.permute.xlu2 %3796  ;;  %v3987_v5 = vmul.f32 0.33, %v3923_v23 }
 0x53f   : > { %4702 = vmatpush.msrb.mxu0 %v4633_v46  ;;  %v3926_v42 = vadd.f32 %v3883_v36, %v3797_v18 }
 0x540   : > { %v3992_v21 = vmul.f32 0.33, %v3928_v59  ;;  %4061 = vmatpush.msrb.mxu3 %v4026_v55  ;;  %vm3960_vm5 = vcmp.ge.f32.partialorder %v3928_v59, 0.0  ;;  %v4019_v43 = vsel %vm3955_vm11, %v3923_v23, %v3987_v5  ;;  %v5157_v23 = vld [vmem:[%s7046_s7] sm:$0xff]  ;;  %v4230_v5 = vld [vmem:[%s7047_s8 + $0x178] sm:$0xff]  ;;  %s4763_s7 = sshll.u32 %s4759_s6, 4  ;;  %s4764_s7 = int_to_ptr.hbm [resolvable:$true] %s4763_s7 }
 0x541   : > { %4703 = vmatpush.msrb.mxu0 %v4632_v54  ;;  %v3990_v52 = vmul.f32 0.33, %v3926_v42  ;;  %vm3958_vm8 = vcmp.ge.f32.partialorder %v3926_v42, 0.0 }
 0x542   : > { %4062 = vmatpush.msrb.mxu3 %v4025_v37  ;;  %v4024_v6 = vsel %vm3960_vm5, %v3928_v59, %v3992_v21 }
 0x543   : > { %4704 = vmatpush.msrb.mxu0 %v4631_v33  ;;  %v4022_v13 = vsel %vm3958_vm8, %v3926_v42, %v3990_v52  ;;  %v3557_v33 = vmul.f32 0.33, %v6414_v41  ;;  %v4211_v42 = vld [vmem:[%s7047_s8 + $0xe0] sm:$0xff] }
 0x544   : > { %4063 = vmatpush.msrb.mxu3 %v4024_v6  ;;  %v3555_v6 = vmul.f32 0.33, %v6383_v63 }
 0x545   : > { %4705 = vmatpush.msrb.mxu0 %v4630_v16 }
 0x546   : > { %v3587_v32 = vsel %vm3523_vm2, %v6383_v63, %v3555_v6  ;;  %v4118_v6 = vld [vmem:[%s7049_s16 + $0xf8] sm:$0xff] }
 0x547   : > { %4706 = vmatpush.msrb.mxu0 %v4629_v34  ;;  %v3589_v34 = vsel %vm3525_vm0, %v6414_v41, %v3557_v33 }
 0x549   : > { %4707 = vmatpush.msrb.mxu0 %v4628_v56  ;;  %v3604_v56 = vperm.slane %v6432_v48, 5 }
 0x54b   : > { %4708 = vmatpush.msrb.mxu0 %v4627_v44 }
 0x54d   : > { %4709 = vmatpush.msrb.mxu0 %v4626_v49  ;;  %v3803_v20 = vpop.permute.xlu1 %3802 }
 0x54e   : > { %v3927_v35 = vadd.f32 %v3883_v36, %v3803_v20  ;;  %v3790_v17 = vpop.permute.xlu2 %3789  ;;  %v4213_v36 = vld [vmem:[%s7047_s8 + $0xf0] sm:$0xff]  ;;  %v4210_v20 = vld [vmem:[%s7047_s8 + $0xd8] sm:$0xff] }
 0x54f   : > { %4710 = vmatpush.msrb.mxu0 %v4625_v22  ;;  %v3925_v61 = vadd.f32 %v6339_v29, %v3790_v17  ;;  %v3176_v29 = vperm.slane %v6432_v48, 1  ;;  %v4212_v48 = vld [vmem:[%s7047_s8 + $0xe8] sm:$0xff] }
 0x550   : > { %v3991_v12 = vmul.f32 0.33, %v3927_v35  ;;  %vm3959_vm7 = vcmp.ge.f32.partialorder %v3927_v35, 0.0 }
 0x551   : > { %4711 = vmatpush.msrb.mxu0 %v4624_v51  ;;  %v3989_v2 = vmul.f32 0.33, %v3925_v61  ;;  %vm3957_vm9 = vcmp.ge.f32.partialorder %v3925_v61, 0.0  ;;  %3215 = vmatmul.f32.vlgmr.msra.gmra.mxu3 %v3176_v29  ;;  %v4033_v29 = vperm.slane %v5157_v23, 7 }
 0x552   : > { %4712 = vmatmul.f32.vlgmr.msrb.gmra.mxu0 %v1754_v57  ;;  %v4023_v3 = vsel %vm3959_vm7, %v3927_v35, %v3991_v12  ;;  %v4209_v35 = vld [vmem:[%s7047_s8 + $0xd0] sm:$0xff]  ;;  %v4207_v12 = vld [vmem:[%s7047_s8 + $0xc0] sm:$0xff] }
 0x553   : > { %4064 = vmatpush.msrb.mxu3 %v4023_v3  ;;  %v4021_v38 = vsel %vm3957_vm9, %v3925_v61, %v3989_v2  ;;  %v4032_v2 = vperm.slane %v5157_v23, 6  ;;  %v4134_v23 = vld [vmem:[%s7049_s16 + $0x178] sm:$0xff] }
 0x555   : > { %4065 = vmatpush.msrb.mxu3 %v4022_v13  ;;  %v4205_v13 = vld [vmem:[%s7047_s8 + $0xb0] sm:$0xff] }
 0x556   : > { %v3673_v40 = vpop.permute.xlu2 %3672 }
 0x557   : > { %v3907_v30 = vadd.f32 %v3873_v31, %v3673_v40  ;;  %4066 = vmatpush.msrb.mxu3 %v4021_v38  ;;  %v4246_v40 = vld [vmem:[%s7047_s8 + $0x1f8] sm:$0xff]  ;;  %v4204_v38 = vld [vmem:[%s7047_s8 + $0xa8] sm:$0xff] }
 0x559   : > { %v3971_v7 = vmul.f32 0.33, %v3907_v30  ;;  %4067 = vmatpush.msrb.mxu3 %v4020_v26  ;;  %vm3939_vm12 = vcmp.ge.f32.partialorder %v3907_v30, 0.0  ;;  %v4245_v26 = vld [vmem:[%s7047_s8 + $0x1f0] sm:$0xff] }
 0x55b   : > { %v4003_v60 = vsel %vm3939_vm12, %v3907_v30, %v3971_v7  ;;  %4068 = vmatpush.msrb.mxu3 %v4019_v43  ;;  %v4229_v30 = vld [vmem:[%s7047_s8 + $0x170] sm:$0xff]  ;;  %v4203_v7 = vld [vmem:[%s7047_s8 + $0xa0] sm:$0xff]  ;;  %v4228_v43 = vld [vmem:[%s7047_s8 + $0x168] sm:$0xff] }
 0x55c   : > { %4048 = vmatpush.msrb.mxu2 %v4003_v60  ;;  %v4244_v60 = vld [vmem:[%s7047_s8 + $0x1e8] sm:$0xff] }
 0x55d   : > { %v3355_v11 = vpop.permute.xlu1 %3354 }
 0x55e   : > { %v3495_v46 = vadd.f32 %v6477_v62, %v3355_v11  ;;  %v3556_v62 = vmul.f32 0.33, %v6214_v14  ;;  %v4202_v11 = vld [vmem:[%s7047_s8 + $0x98] sm:$0xff] }
 0x560   : > { %v3559_v9 = vmul.f32 0.33, %v3495_v46  ;;  %vm3527_vm13 = vcmp.ge.f32.partialorder %v3495_v46, 0.0  ;;  %v3588_v18 = vsel %vm3524_vm1, %v6214_v14, %v3556_v62  ;;  %v4224_v62 = vld [vmem:[%s7047_s8 + $0x148] sm:$0xff] }
 0x562   : > { %v3591_v19 = vsel %vm3527_vm13, %v3495_v46, %v3559_v9  ;;  %v4227_v46 = vld [vmem:[%s7047_s8 + $0x160] sm:$0xff] }
 0x563   : > { %3638 = vmatpush.msra.mxu1 %v3591_v19  ;;  %v4243_v9 = vld [vmem:[%s7047_s8 + $0x1e0] sm:$0xff]  ;;  %v4201_v19 = vld [vmem:[%s7047_s8 + $0x90] sm:$0xff] }
 0x566   : > { %v3667_v27 = vpop.permute.xlu2 %3666 }
 0x567   : > { %v3906_v54 = vadd.f32 %v3873_v31, %v3667_v27  ;;  %v4226_v27 = vld [vmem:[%s7047_s8 + $0x158] sm:$0xff] }
 0x569   : > { %v3970_v59 = vmul.f32 0.33, %v3906_v54  ;;  %vm3938_vm14 = vcmp.ge.f32.partialorder %v3906_v54, 0.0 }
 0x56b   : > { %v4002_v55 = vsel %vm3938_vm14, %v3906_v54, %v3970_v59  ;;  %v4242_v54 = vld [vmem:[%s7047_s8 + $0x1d8] sm:$0xff]  ;;  %v4200_v59 = vld [vmem:[%s7047_s8 + $0x88] sm:$0xff] }
 0x56c   : > { %4049 = vmatpush.msrb.mxu2 %v4002_v55  ;;  %v4225_v55 = vld [vmem:[%s7047_s8 + $0x150] sm:$0xff] }
 0x56d   : > { %v3348_v8 = vpop.permute.xlu1 %3347 }
 0x56e   : > { %v3494_v21 = vadd.f32 %v6410_v15, %v3348_v8  ;;  %v3872_v15 = vperm.slane %v6471_v24, 0  ;;  %v3880_v24 = vperm.slane %v6316_v28, 0  ;;  %v1237_v28 = vld [vmem:[#allocation2] sm:$0x1]  ;;  %v4241_v8 = vld [vmem:[%s7047_s8 + $0x1d0] sm:$0xff] }
 0x56f   : > { %4079 = vperm.xlu0 %5155, %v1237_v28   ;;  %v4111_v28 = vld [vmem:[%s7049_s16 + $0xc0] sm:$0xff] }
 0x570   : > { %v3558_v37 = vmul.f32 0.33, %v3494_v21  ;;  %vm3526_vm15 = vcmp.ge.f32.partialorder %v3494_v21, 0.0  ;;  %v3921_v49 = vadd.f32 %v3880_v24, %v3764_v39  ;;  %v4237_v39 = vld [vmem:[%s7047_s8 + $0x1b0] sm:$0xff] }
 0x572   : > { %v3590_v16 = vsel %vm3526_vm15, %v3494_v21, %v3558_v37  ;;  %v3985_v22 = vmul.f32 0.33, %v3921_v49  ;;  %vm3953_vm5 = vcmp.ge.f32.partialorder %v3921_v49, 0.0  ;;  %v7061_v21 = vld [vmem:[#allocation37_spill] sm:$0xff]  ;;  %v4199_v37 = vld [vmem:[%s7047_s8 + $0x80] sm:$0xff] }
 0x573   : > { %3639 = vmatpush.msra.mxu1 %v3590_v16  ;;  %v1505_v33 = vmul.f32 0.33, %v7061_v21  ;;  %vm1501_vm8 = vcmp.ge.f32.partialorder %v7061_v21, 0.0  ;;  %v4240_v16 = vld [vmem:[%s7047_s8 + $0x1c8] sm:$0xff] }
 0x574   : > { %v4017_v17 = vsel %vm3953_vm5, %v3921_v49, %v3985_v22  ;;  %v4219_v49 = vld [vmem:[%s7047_s8 + $0x120] sm:$0xff]  ;;  %v4112_v22 = vld [vmem:[%s7049_s16 + $0xc8] sm:$0xff] }
 0x575   : > { %3640 = vmatpush.msra.mxu1 %v3589_v34  ;;  %v4223_v34 = vld [vmem:[%s7047_s8 + $0x140] sm:$0xff] }
 0x576   : > { %v3660_v0 = vpop.permute.xlu2 %3659 }
 0x577   : > { %v3905_v44 = vadd.f32 %v3872_v15, %v3660_v0  ;;  %3641 = vmatpush.msra.mxu1 %v3588_v18  ;;  %v4239_v0 = vld [vmem:[%s7047_s8 + $0x1c0] sm:$0xff]  ;;  %v4117_v18 = vld [vmem:[%s7049_s16 + $0xf0] sm:$0xff] }
 0x579   : > { %v3969_v41 = vmul.f32 0.33, %v3905_v44  ;;  %3642 = vmatpush.msra.mxu1 %v3587_v32  ;;  %vm3937_vm3 = vcmp.ge.f32.partialorder %v3905_v44, 0.0  ;;  %v4116_v32 = vld [vmem:[%s7049_s16 + $0xe8] sm:$0xff] }
 0x57a   : > { %3643 = vmatmul.f32.vlgmr.msra.gmra.mxu1 %v3604_v56  ;;  %v4222_v56 = vld [vmem:[%s7047_s8 + $0x138] sm:$0xff] }
 0x57b   : > { %4267 = vmatpush.msrb.mxu1 %v4214_v10  ;;  %v4001_v14 = vsel %vm3937_vm3, %v3905_v44, %v3969_v41  ;;  %v4238_v44 = vld [vmem:[%s7047_s8 + $0x1b8] sm:$0xff]  ;;  %v4221_v10 = vld [vmem:[%s7047_s8 + $0x130] sm:$0xff]  ;;  %v4115_v41 = vld [vmem:[%s7049_s16 + $0xe0] sm:$0xff] }
 0x57c   : > { %4050 = vmatpush.msrb.mxu2 %v4001_v14  ;;  %v4114_v14 = vld [vmem:[%s7049_s16 + $0xd8] sm:$0xff] }
 0x57d   : > { %4268 = vmatpush.msrb.mxu1 %v4213_v36  ;;  %v3771_v47 = vpop.permute.xlu1 %3770  ;;  %v4236_v36 = vld [vmem:[%s7047_s8 + $0x1a8] sm:$0xff] }
 0x57e   : > { %v3922_v63 = vadd.f32 %v6589_v58, %v3771_v47  ;;  %v4208_v58 = vld [vmem:[%s7047_s8 + $0xc8] sm:$0xff]  ;;  %v4113_v47 = vld [vmem:[%s7049_s16 + $0xd0] sm:$0xff] }
 0x57f   : > { %4269 = vmatpush.msrb.mxu1 %v4212_v48  ;;  %v4235_v48 = vld [vmem:[%s7047_s8 + $0x1a0] sm:$0xff] }
 0x580   : > { %v3986_v53 = vmul.f32 0.33, %v3922_v63  ;;  %vm3954_vm4 = vcmp.ge.f32.partialorder %v3922_v63, 0.0 }
 0x581   : > { %4270 = vmatpush.msrb.mxu1 %v4211_v42  ;;  %v4234_v42 = vld [vmem:[%s7047_s8 + $0x198] sm:$0xff] }
 0x582   : > { %v4018_v51 = vsel %vm3954_vm4, %v3922_v63, %v3986_v53  ;;  %v4218_v63 = vld [vmem:[%s7047_s8 + $0x118] sm:$0xff]  ;;  %v4217_v53 = vld [vmem:[%s7047_s8 + $0x110] sm:$0xff] }
 0x583   : > { %4271 = vmatpush.msrb.mxu1 %v4210_v20  ;;  %4069 = vmatpush.msrb.mxu3 %v4018_v51  ;;  %v4233_v20 = vld [vmem:[%s7047_s8 + $0x190] sm:$0xff]  ;;  %v4216_v51 = vld [vmem:[%s7047_s8 + $0x108] sm:$0xff] }
 0x585   : > { %4272 = vmatpush.msrb.mxu1 %v4209_v35  ;;  %v3654_v25 = vpop.permute.xlu1 %3653  ;;  %4070 = vmatpush.msrb.mxu3 %v4017_v17  ;;  %v7062_v35 = vld [vmem:[#allocation47_spill] sm:$0xff] }
 0x586   : > { %v3904_v61 = vadd.f32 %v3872_v15, %v3654_v25  ;;  %v3758_v52 = vpop.permute.xlu2 %3757  ;;  %v1509_v15 = vsel %vm1501_vm8, %v7061_v21, %v1505_v33  ;;  %v1506_v17 = vmul.f32 0.33, %v7062_v35  ;;  %vm1502_vm9 = vcmp.ge.f32.partialorder %v7062_v35, 0.0  ;;  %v7063_v25 = vld [vmem:[#allocation48_spill] sm:$0xff]  ;;  %v4127_v21 = vld [vmem:[%s7049_s16 + $0x140] sm:$0xff] }
 0x587   : > { %v3920_v1 = vadd.f32 %v3880_v24, %v3758_v52  ;;  %4273 = vmatpush.msrb.mxu1 %v4208_v58  ;;  %v4220_v24 = vld [vmem:[%s7047_s8 + $0x128] sm:$0xff]  ;;  %v4110_v52 = vld [vmem:[%s7049_s16 + $0xb8] sm:$0xff]  ;;  %vm1503_vm10 = vcmp.ge.f32.partialorder %v7063_v25, 0.0 }
 0x588   : > { %v3968_v57 = vmul.f32 0.33, %v3904_v61  ;;  %vm3936_vm6 = vcmp.ge.f32.partialorder %v3904_v61, 0.0  ;;  %v4232_v58 = vld [vmem:[%s7047_s8 + $0x188] sm:$0xff] }
 0x589   : > { %v3984_v3 = vmul.f32 0.33, %v3920_v1  ;;  %4274 = vmatpush.msrb.mxu1 %v4207_v12  ;;  %vm3952_vm7 = vcmp.ge.f32.partialorder %v3920_v1, 0.0  ;;  %v4215_v12 = vld [vmem:[%s7047_s8 + $0x100] sm:$0xff] }
 0x58a   : > { %v4000_v4 = vsel %vm3936_vm6, %v3904_v61, %v3968_v57  ;;  %v1507_v61 = vmul.f32 0.33, %v7063_v25  ;;  %v4109_v57 = vld [vmem:[%s7049_s16 + $0xb0] sm:$0xff] }
 0x58b   : > { %4275 = vmatpush.msrb.mxu1 %v4206_v50  ;;  %4051 = vmatpush.msrb.mxu2 %v4000_v4  ;;  %v4016_v31 = vsel %vm3952_vm7, %v3920_v1, %v3984_v3  ;;  %v4231_v1 = vld [vmem:[%s7047_s8 + $0x180] sm:$0xff]  ;;  %v1510_v50 = vsel %vm1502_vm9, %v7062_v35, %v1506_v17  ;;  %v4133_v4 = vld [vmem:[%s7049_s16 + $0x170] sm:$0xff]  ;;  %vm4748_vm7 = vcmask 122880   ;;  %s5172_s8 = sshra.s32 %s4764_s7, 4  ;;  %s5173_s8 = int_to_ptr.hbm [resolvable:$true] %s5172_s8 }
 0x58c   : > { %4071 = vmatpush.msrb.mxu3 %v4016_v31  ;;  %4052 = vmatmul.f32.vlgmr.msrb.gmra.mxu2 %v4032_v2  ;;  %v4150_v2 = vld [vmem:[%s7049_s16 + $0x1f8] sm:$0xff]  ;;  %v1511_v3 = vsel %vm1503_vm10, %v7063_v25, %v1507_v61  ;;  %v4107_v31 = vld [vmem:[%s7049_s16 + $0xa0] sm:$0xff]  ;;  %s5174_s12 = scalar_lea.hbm %s5173_s8, 1  ;;  %p5179_p3 = scmp.lt.s32.totalorder %s5173_s8, %s7074_s18 }
 0x58d   : > { %4072 = vmatmul.f32.vlgmr.msrb.gmra.mxu3 %v4033_v29  ;;  %4276 = vmatpush.msrb.mxu1 %v4205_v13  ;;  %v4108_v29 = vld [vmem:[%s7049_s16 + $0xa8] sm:$0xff]  ;;  %v4149_v13 = vld [vmem:[%s7049_s16 + $0x1f0] sm:$0xff]  ;;  %v4119_v35 = vld [vmem:[%s7049_s16 + $0x100] sm:$0xff]  ;;  %p5175_p0 = scmp.ne.s32.totalorder %s5173_s8, %s5174_s12  ;;  %p5180_p4 = scmp.lt.s32.totalorder %s5178_s13, %s5174_s12 }
 0x58e   : > { %4287 = vmatpush.msra.mxu2 %v4230_v5  ;;  %4307 = vmatpush.msra.mxu3 %v4246_v40  ;;  %v4132_v5 = vld [vmem:[%s7049_s16 + $0x168] sm:$0xff]  ;;  %v4135_v17 = vld [vmem:[%s7049_s16 + $0x180] sm:$0xff]  ;;  %v4462_v61 = vld [vmem:[%s7055_s19 + $0x78] sm:$0xff] }
 0x58f   : > { %4277 = vmatpush.msrb.mxu1 %v4204_v38  ;;  %v4148_v40 = vld [vmem:[%s7049_s16 + $0x1e8] sm:$0xff]  ;;  %v4106_v38 = vld [vmem:[%s7049_s16 + $0x98] sm:$0xff]  ;;  %p5176_p1 = pnand %p5175_p0, %p5438_p6  ;;  %p5181_p5 = por %p5180_p4, %p5179_p3 }
 0x590   : > { %4288 = vmatpush.msra.mxu2 %v4229_v30  ;;  %4308 = vmatpush.msra.mxu3 %v4245_v26  ;;  %v4131_v30 = vld [vmem:[%s7049_s16 + $0x160] sm:$0xff] }
 0x591   : > { %4278 = vmatpush.msrb.mxu1 %v4203_v7  ;;  %v4147_v26 = vld [vmem:[%s7049_s16 + $0x1e0] sm:$0xff]  ;;  %v4105_v7 = vld [vmem:[%s7049_s16 + $0x90] sm:$0xff]  ;;  %p5177_p2 = pneg %p5176_p1 }
 0x592   : > { %4289 = vmatpush.msra.mxu2 %v4228_v43  ;;  %4309 = vmatpush.msra.mxu3 %v4244_v60  ;;  %v4130_v43 = vld [vmem:[%s7049_s16 + $0x158] sm:$0xff] }
 0x593   : > { %4279 = vmatpush.msrb.mxu1 %v4202_v11  ;;  %v4146_v60 = vld [vmem:[%s7049_s16 + $0x1d8] sm:$0xff]  ;;  %v4104_v11 = vld [vmem:[%s7049_s16 + $0x88] sm:$0xff]  ;;  %p5182_p7 = pnand %p5181_p5, %p5177_p2 }
 0x594   : > { %4290 = vmatpush.msra.mxu2 %v4227_v46  ;;  %4310 = vmatpush.msra.mxu3 %v4243_v9  ;;  %v4129_v46 = vld [vmem:[%s7049_s16 + $0x150] sm:$0xff] }
 0x595   : > { %4280 = vmatpush.msrb.mxu1 %v4201_v19  ;;  %v4145_v9 = vld [vmem:[%s7049_s16 + $0x1d0] sm:$0xff] }
 0x596   : > { %4291 = vmatpush.msra.mxu2 %v4226_v27  ;;  %4311 = vmatpush.msra.mxu3 %v4242_v54  ;;  %v7064_v19 = vld [vmem:[#allocation33_spill] sm:$0xff]  ;;  %v4103_v54 = vld [vmem:[%s7049_s16 + $0x80] sm:$0xff] }
 0x597   : > { %4281 = vmatpush.msrb.mxu1 %v4200_v59  ;;  %v1390_v27 = vmul.f32 0.33, %v7064_v19  ;;  %vm1384_vm11 = vcmp.ge.f32.partialorder %v7064_v19, 0.0  ;;  %v4128_v59 = vld [vmem:[%s7049_s16 + $0x148] sm:$0xff] }
 0x598   : > { %4292 = vmatpush.msra.mxu2 %v4225_v55  ;;  %4312 = vmatpush.msra.mxu3 %v4241_v8  ;;  %v4144_v55 = vld [vmem:[%s7049_s16 + $0x1c8] sm:$0xff]  ;;  %v4182_v8 = vld [vmem:[%s7049_s16 + $0x2f8] sm:$0xff] }
 0x599   : > { %4282 = vmatpush.msrb.mxu1 %v4199_v37  ;;  %v1396_v33 = vsel %vm1384_vm11, %v7064_v19, %v1390_v27  ;;  %v4143_v37 = vld [vmem:[%s7049_s16 + $0x1c0] sm:$0xff] }
 0x59a   : > { %4293 = vmatpush.msra.mxu2 %v4224_v62  ;;  %4313 = vmatpush.msra.mxu3 %v4240_v16  ;;  %v4181_v62 = vld [vmem:[%s7049_s16 + $0x2f0] sm:$0xff]  ;;  %v4126_v16 = vld [vmem:[%s7049_s16 + $0x138] sm:$0xff]  ;;  %v4455_v19 = vld [vmem:[%s7055_s19 + $0x40] sm:$0xff] }
 0x59b   : > { %4283 = vmatmul.f32.vlgmr.msrb.gmra.mxu1 %v1509_v15  ;;  %v4125_v15 = vld [vmem:[%s7049_s16 + $0x130] sm:$0xff] }
 0x59c   : > { %4347 = vmatpush.msra.mxu1 %v4118_v6  ;;  %4294 = vmatpush.msra.mxu2 %v4223_v34  ;;  %v4142_v6 = vld [vmem:[%s7049_s16 + $0x1b8] sm:$0xff]  ;;  %v4180_v34 = vld [vmem:[%s7049_s16 + $0x2e8] sm:$0xff] }
 0x59d   : > { %4314 = vmatpush.msra.mxu3 %v4239_v0  ;;  %v4141_v0 = vld [vmem:[%s7049_s16 + $0x1b0] sm:$0xff] }
 0x59e   : > { %4348 = vmatpush.msra.mxu1 %v4117_v18  ;;  %4295 = vmatpush.msra.mxu2 %v4222_v56  ;;  %v4179_v18 = vld [vmem:[%s7049_s16 + $0x2e0] sm:$0xff]  ;;  %v4124_v56 = vld [vmem:[%s7049_s16 + $0x128] sm:$0xff] }
 0x59f   : > { %4315 = vmatpush.msra.mxu3 %v4238_v44  ;;  %v4140_v44 = vld [vmem:[%s7049_s16 + $0x1a8] sm:$0xff] }
 0x5a0   : > { %4349 = vmatpush.msra.mxu1 %v4116_v32  ;;  %4296 = vmatpush.msra.mxu2 %v4221_v10  ;;  %v4178_v32 = vld [vmem:[%s7049_s16 + $0x2d8] sm:$0xff]  ;;  %v4123_v10 = vld [vmem:[%s7049_s16 + $0x120] sm:$0xff] }
 0x5a1   : > { %4316 = vmatpush.msra.mxu3 %v4237_v39  ;;  %v4139_v39 = vld [vmem:[%s7049_s16 + $0x1a0] sm:$0xff] }
 0x5a2   : > { %4350 = vmatpush.msra.mxu1 %v4115_v41  ;;  %4297 = vmatpush.msra.mxu2 %v4220_v24  ;;  %v4177_v41 = vld [vmem:[%s7049_s16 + $0x2d0] sm:$0xff]  ;;  %v4122_v24 = vld [vmem:[%s7049_s16 + $0x118] sm:$0xff] }
 0x5a3   : > { %4317 = vmatpush.msra.mxu3 %v4236_v36  ;;  %v4138_v36 = vld [vmem:[%s7049_s16 + $0x198] sm:$0xff] }
 0x5a4   : > { %4351 = vmatpush.msra.mxu1 %v4114_v14  ;;  %4298 = vmatpush.msra.mxu2 %v4219_v49  ;;  %v4176_v14 = vld [vmem:[%s7049_s16 + $0x2c8] sm:$0xff]  ;;  %v4121_v49 = vld [vmem:[%s7049_s16 + $0x110] sm:$0xff] }
 0x5a5   : > { %4318 = vmatpush.msra.mxu3 %v4235_v48  ;;  %v4137_v48 = vld [vmem:[%s7049_s16 + $0x190] sm:$0xff] }
 0x5a6   : > { %4352 = vmatpush.msra.mxu1 %v4113_v47  ;;  %4299 = vmatpush.msra.mxu2 %v4218_v63  ;;  %v4175_v47 = vld [vmem:[%s7049_s16 + $0x2c0] sm:$0xff]  ;;  %v4120_v63 = vld [vmem:[%s7049_s16 + $0x108] sm:$0xff] }
 0x5a7   : > { %4319 = vmatpush.msra.mxu3 %v4234_v42  ;;  %v7065_v42 = vld [vmem:[#allocation34_spill] sm:$0xff] }
 0x5a8   : > { %4353 = vmatpush.msra.mxu1 %v4112_v22  ;;  %4300 = vmatpush.msra.mxu2 %v4217_v53  ;;  %v1391_v22 = vmul.f32 0.33, %v7065_v42  ;;  %v4136_v53 = vld [vmem:[%s7049_s16 + $0x188] sm:$0xff]  ;;  %vm1385_vm12 = vcmp.ge.f32.partialorder %v7065_v42, 0.0 }
 0x5a9   : > { %4320 = vmatpush.msra.mxu3 %v4233_v20  ;;  %v7066_v20 = vld [vmem:[#allocation35_spill] sm:$0xff] }
 0x5aa   : > { %4354 = vmatpush.msra.mxu1 %v4111_v28  ;;  %4301 = vmatpush.msra.mxu2 %v4216_v51  ;;  %v1392_v28 = vmul.f32 0.33, %v7066_v20  ;;  %v4174_v51 = vld [vmem:[%s7049_s16 + $0x2b8] sm:$0xff]  ;;  %vm1386_vm13 = vcmp.ge.f32.partialorder %v7066_v20, 0.0  ;;  %v1397_v25 = vsel %vm1385_vm12, %v7065_v42, %v1391_v22  ;;  %v4447_v42 = vld [vmem:[%s7055_s19] sm:$0xff] }
 0x5ab   : > { %4321 = vmatpush.msra.mxu3 %v4232_v58  ;;  %v4173_v58 = vld [vmem:[%s7049_s16 + $0x2b0] sm:$0xff]  ;;  %v4463_v22 = vld [vmem:[%s7055_s19 + $0x80] sm:$0xff] }
 0x5ac   : > { %4355 = vmatpush.msra.mxu1 %v4110_v52  ;;  %4302 = vmatpush.msra.mxu2 %v4215_v12  ;;  %v4478_v52 = vld [vmem:[%s7055_s19 + $0xf8] sm:$0xff]  ;;  %v1398_v12 = vsel %vm1386_vm13, %v7066_v20, %v1392_v28 }
 0x5ad   : > { %4322 = vmatpush.msra.mxu3 %v4231_v1  ;;  %4303 = vmatmul.f32.vlgmr.msra.gmra.mxu2 %v1510_v50  ;;  %v4172_v1 = vld [vmem:[%s7049_s16 + $0x2a8] sm:$0xff]  ;;  %v4477_v50 = vld [vmem:[%s7055_s19 + $0xf0] sm:$0xff]  ;;  %v4607_v28 = vld [vmem:[%s7058_s20 + $0x78] sm:$0xff] }
 0x5ae   : > { %4323 = vmatmul.f32.vlgmr.msra.gmra.mxu3 %v1511_v3  ;;  %4356 = vmatpush.msra.mxu1 %v4109_v57  ;;  %v4461_v57 = vld [vmem:[%s7055_s19 + $0x70] sm:$0xff]  ;;  %v4476_v3 = vld [vmem:[%s7055_s19 + $0xe8] sm:$0xff] }
 0x5af   : > { %4367 = vmatpush.msrb.mxu2 %v4134_v23  ;;  %4387 = vmatpush.msrb.mxu3 %v4150_v2  ;;  %v4171_v23 = vld [vmem:[%s7049_s16 + $0x2a0] sm:$0xff]  ;;  %v4460_v2 = vld [vmem:[%s7055_s19 + $0x68] sm:$0xff] }
 0x5b0   : > { %4357 = vmatpush.msra.mxu1 %v4108_v29  ;;  %v4170_v29 = vld [vmem:[%s7049_s16 + $0x298] sm:$0xff] }
 0x5b1   : > { %4368 = vmatpush.msrb.mxu2 %v4133_v4  ;;  %4388 = vmatpush.msrb.mxu3 %v4149_v13  ;;  %v4459_v4 = vld [vmem:[%s7055_s19 + $0x60] sm:$0xff] }
 0x5b2   : > { %4358 = vmatpush.msra.mxu1 %v4107_v31  ;;  %v4475_v13 = vld [vmem:[%s7055_s19 + $0xe0] sm:$0xff]  ;;  %v4169_v31 = vld [vmem:[%s7049_s16 + $0x290] sm:$0xff] }
 0x5b3   : > { %4369 = vmatpush.msrb.mxu2 %v4132_v5  ;;  %4389 = vmatpush.msrb.mxu3 %v4148_v40  ;;  %v4458_v5 = vld [vmem:[%s7055_s19 + $0x58] sm:$0xff] }
 0x5b4   : > { %4359 = vmatpush.msra.mxu1 %v4106_v38  ;;  %v4474_v40 = vld [vmem:[%s7055_s19 + $0xd8] sm:$0xff]  ;;  %v4168_v38 = vld [vmem:[%s7049_s16 + $0x288] sm:$0xff] }
 0x5b5   : > { %4370 = vmatpush.msrb.mxu2 %v4131_v30  ;;  %4390 = vmatpush.msrb.mxu3 %v4147_v26  ;;  %v4457_v30 = vld [vmem:[%s7055_s19 + $0x50] sm:$0xff] }
 0x5b6   : > { %4360 = vmatpush.msra.mxu1 %v4105_v7  ;;  %v4473_v26 = vld [vmem:[%s7055_s19 + $0xd0] sm:$0xff]  ;;  %v7067_v7 = vld [vmem:[#allocation46_spill] sm:$0xff] }
 0x5b7   : > { %4371 = vmatpush.msrb.mxu2 %v4130_v43  ;;  %4391 = vmatpush.msrb.mxu3 %v4146_v60  ;;  %v1394_v43 = vmul.f32 0.33, %v7067_v7  ;;  %v4167_v60 = vld [vmem:[%s7049_s16 + $0x280] sm:$0xff]  ;;  %vm1388_vm14 = vcmp.ge.f32.partialorder %v7067_v7, 0.0 }
 0x5b8   : > { %4361 = vmatpush.msra.mxu1 %v4104_v11  ;;  %v4456_v11 = vld [vmem:[%s7055_s19 + $0x48] sm:$0xff] }
 0x5b9   : > { %4372 = vmatpush.msrb.mxu2 %v4129_v46  ;;  %4392 = vmatpush.msrb.mxu3 %v4145_v9  ;;  %v4472_v46 = vld [vmem:[%s7055_s19 + $0xc8] sm:$0xff]  ;;  %v4510_v9 = vld [vmem:[%s7055_s19 + $0x1f8] sm:$0xff]  ;;  %v1400_v27 = vsel %vm1388_vm14, %v7067_v7, %v1394_v43  ;;  %v4600_v7 = vld [vmem:[%s7058_s20 + $0x40] sm:$0xff] }
 0x5ba   : > { %4362 = vmatpush.msra.mxu1 %v4103_v54  ;;  %v4471_v54 = vld [vmem:[%s7055_s19 + $0xc0] sm:$0xff] }
 0x5bb   : > { %4373 = vmatpush.msrb.mxu2 %v4128_v59  ;;  %4393 = vmatpush.msrb.mxu3 %v4144_v55  ;;  %v4509_v59 = vld [vmem:[%s7055_s19 + $0x1f0] sm:$0xff]  ;;  %v4454_v55 = vld [vmem:[%s7055_s19 + $0x38] sm:$0xff] }
 0x5bc   : > { %4363 = vmatmul.f32.vlgmr.msra.gmra.mxu1 %v1396_v33  ;;  %v4453_v33 = vld [vmem:[%s7055_s19 + $0x30] sm:$0xff] }
 0x5bd   : > { %4427 = vmatpush.msrb.mxu1 %v4182_v8  ;;  %4374 = vmatpush.msrb.mxu2 %v4127_v21  ;;  %v4470_v8 = vld [vmem:[%s7055_s19 + $0xb8] sm:$0xff]  ;;  %v4508_v21 = vld [vmem:[%s7055_s19 + $0x1e8] sm:$0xff] }
 0x5be   : > { %4394 = vmatpush.msrb.mxu3 %v4143_v37  ;;  %v4469_v37 = vld [vmem:[%s7055_s19 + $0xb0] sm:$0xff] }
 0x5bf   : > { %4428 = vmatpush.msrb.mxu1 %v4181_v62  ;;  %4375 = vmatpush.msrb.mxu2 %v4126_v16  ;;  %v4507_v62 = vld [vmem:[%s7055_s19 + $0x1e0] sm:$0xff]  ;;  %v4452_v16 = vld [vmem:[%s7055_s19 + $0x28] sm:$0xff] }
 0x5c0   : > { %4395 = vmatpush.msrb.mxu3 %v4142_v6  ;;  %v4468_v6 = vld [vmem:[%s7055_s19 + $0xa8] sm:$0xff] }
 0x5c1   : > { %4429 = vmatpush.msrb.mxu1 %v4180_v34  ;;  %4376 = vmatpush.msrb.mxu2 %v4125_v15  ;;  %v4506_v34 = vld [vmem:[%s7055_s19 + $0x1d8] sm:$0xff]  ;;  %v4451_v15 = vld [vmem:[%s7055_s19 + $0x20] sm:$0xff] }
 0x5c2   : > { %4396 = vmatpush.msrb.mxu3 %v4141_v0  ;;  %v4467_v0 = vld [vmem:[%s7055_s19 + $0xa0] sm:$0xff] }
 0x5c3   : > { %4430 = vmatpush.msrb.mxu1 %v4179_v18  ;;  %4377 = vmatpush.msrb.mxu2 %v4124_v56  ;;  %v4505_v18 = vld [vmem:[%s7055_s19 + $0x1d0] sm:$0xff]  ;;  %v4450_v56 = vld [vmem:[%s7055_s19 + $0x18] sm:$0xff] }
 0x5c4   : > { %4397 = vmatpush.msrb.mxu3 %v4140_v44  ;;  %v4466_v44 = vld [vmem:[%s7055_s19 + $0x98] sm:$0xff] }
 0x5c5   : > { %4431 = vmatpush.msrb.mxu1 %v4178_v32  ;;  %4378 = vmatpush.msrb.mxu2 %v4123_v10  ;;  %v4504_v32 = vld [vmem:[%s7055_s19 + $0x1c8] sm:$0xff]  ;;  %v4449_v10 = vld [vmem:[%s7055_s19 + $0x10] sm:$0xff] }
 0x5c6   : > { %4398 = vmatpush.msrb.mxu3 %v4139_v39  ;;  %v4465_v39 = vld [vmem:[%s7055_s19 + $0x90] sm:$0xff] }
 0x5c7   : > { %4432 = vmatpush.msrb.mxu1 %v4177_v41  ;;  %4379 = vmatpush.msrb.mxu2 %v4122_v24  ;;  %v4503_v41 = vld [vmem:[%s7055_s19 + $0x1c0] sm:$0xff]  ;;  %v4448_v24 = vld [vmem:[%s7055_s19 + $0x8] sm:$0xff] }
 0x5c8   : > { %4399 = vmatpush.msrb.mxu3 %v4138_v36  ;;  %v7068_v36 = vld [vmem:[#allocation39_spill] sm:$0xff] }
 0x5c9   : > { %4433 = vmatpush.msrb.mxu1 %v4176_v14  ;;  %4380 = vmatpush.msrb.mxu2 %v4121_v49  ;;  %v1624_v14 = vmul.f32 0.33, %v7068_v36  ;;  %v4464_v49 = vld [vmem:[%s7055_s19 + $0x88] sm:$0xff]  ;;  %vm1620_vm15 = vcmp.ge.f32.partialorder %v7068_v36, 0.0 }
 0x5ca   : > { %4400 = vmatpush.msrb.mxu3 %v4137_v48  ;;  %v7069_v48 = vld [vmem:[#allocation40_spill] sm:$0xff] }
 0x5cb   : > { %4434 = vmatpush.msrb.mxu1 %v4175_v47  ;;  %4381 = vmatpush.msrb.mxu2 %v4120_v63  ;;  %v1625_v47 = vmul.f32 0.33, %v7069_v48  ;;  %v4502_v63 = vld [vmem:[%s7055_s19 + $0x1b8] sm:$0xff]  ;;  %vm1621_vm0 = vcmp.ge.f32.partialorder %v7069_v48, 0.0  ;;  %v1628_v20 = vsel %vm1620_vm15, %v7068_v36, %v1624_v14  ;;  %v4592_v14 = vld [vmem:[%s7058_s20] sm:$0xff] }
 0x5cc   : > { %4401 = vmatpush.msrb.mxu3 %v4136_v53  ;;  %v4501_v53 = vld [vmem:[%s7055_s19 + $0x1b0] sm:$0xff]  ;;  %v4647_v36 = vld [vmem:[%s7058_s20 + $0x1b8] sm:$0xff] }
 0x5cd   : > { %4435 = vmatpush.msrb.mxu1 %v4174_v51  ;;  %4382 = vmatpush.msrb.mxu2 %v4119_v35  ;;  %v4623_v51 = vld [vmem:[%s7058_s20 + $0xf8] sm:$0xff]  ;;  %v1629_v35 = vsel %vm1621_vm0, %v7069_v48, %v1625_v47  ;;  %v4646_v48 = vld [vmem:[%s7058_s20 + $0x1b0] sm:$0xff] }
 0x5ce   : > { %4402 = vmatpush.msrb.mxu3 %v4135_v17  ;;  %4383 = vmatmul.f32.vlgmr.msrb.gmra.mxu2 %v1397_v25  ;;  %v4500_v17 = vld [vmem:[%s7055_s19 + $0x1a8] sm:$0xff]  ;;  %v4622_v25 = vld [vmem:[%s7058_s20 + $0xf0] sm:$0xff] }
 0x5cf   : > { %4403 = vmatmul.f32.vlgmr.msrb.gmra.mxu3 %v1398_v12  ;;  %4436 = vmatpush.msrb.mxu1 %v4173_v58  ;;  %v4606_v58 = vld [vmem:[%s7058_s20 + $0x70] sm:$0xff]  ;;  %v4621_v12 = vld [vmem:[%s7058_s20 + $0xe8] sm:$0xff] }
 0x5d0   : > { %4511 = vmatpush.msra.mxu2 %v4462_v61  ;;  %4531 = vmatpush.msra.mxu3 %v4478_v52  ;;  %v4499_v61 = vld [vmem:[%s7055_s19 + $0x1a0] sm:$0xff]  ;;  %v4605_v52 = vld [vmem:[%s7058_s20 + $0x68] sm:$0xff] }
 0x5d1   : > { %4437 = vmatpush.msrb.mxu1 %v4172_v1  ;;  %v4498_v1 = vld [vmem:[%s7055_s19 + $0x198] sm:$0xff] }
 0x5d2   : > { %4512 = vmatpush.msra.mxu2 %v4461_v57  ;;  %4532 = vmatpush.msra.mxu3 %v4477_v50  ;;  %v4604_v57 = vld [vmem:[%s7058_s20 + $0x60] sm:$0xff] }
 0x5d3   : > { %4438 = vmatpush.msrb.mxu1 %v4171_v23  ;;  %v4620_v50 = vld [vmem:[%s7058_s20 + $0xe0] sm:$0xff]  ;;  %v7070_v23 = vld [vmem:[#allocation54_spill] sm:$0xff] }
 0x5d4   : > { %4513 = vmatpush.msra.mxu2 %v4460_v2  ;;  %4533 = vmatpush.msra.mxu3 %v4476_v3  ;;  %v1618_v2 = vadd.f32 %v7070_v23, %v7056_v45  ;;  %v4497_v3 = vld [vmem:[%s7055_s19 + $0x190] sm:$0xff]  ;;  %v4495_v45 = vld [vmem:[%s7055_s19 + $0x180] sm:$0xff] }
 0x5d5   : > { %4439 = vmatpush.msrb.mxu1 %v4170_v29  ;;  %v4603_v29 = vld [vmem:[%s7058_s20 + $0x58] sm:$0xff] }
 0x5d6   : > { %4514 = vmatpush.msra.mxu2 %v4459_v4  ;;  %4534 = vmatpush.msra.mxu3 %v4475_v13  ;;  %v4619_v4 = vld [vmem:[%s7058_s20 + $0xd8] sm:$0xff]  ;;  %v4496_v13 = vld [vmem:[%s7055_s19 + $0x188] sm:$0xff]  ;;  %vm1623_vm1 = vcmp.ge.f32.partialorder %v1618_v2, 0.0 }
 0x5d7   : > { %4440 = vmatpush.msrb.mxu1 %v4169_v31  ;;  %v4602_v31 = vld [vmem:[%s7058_s20 + $0x50] sm:$0xff] }
 0x5d8   : > { %4515 = vmatpush.msra.mxu2 %v4458_v5  ;;  %4535 = vmatpush.msra.mxu3 %v4474_v40  ;;  %v4618_v5 = vld [vmem:[%s7058_s20 + $0xd0] sm:$0xff]  ;;  %v1627_v40 = vmul.f32 0.33, %v1618_v2 }
 0x5d9   : > { %4441 = vmatpush.msrb.mxu1 %v4168_v38  ;;  %v4601_v38 = vld [vmem:[%s7058_s20 + $0x48] sm:$0xff] }
 0x5da   : > { %4516 = vmatpush.msra.mxu2 %v4457_v30  ;;  %4536 = vmatpush.msra.mxu3 %v4473_v26  ;;  %v4617_v30 = vld [vmem:[%s7058_s20 + $0xc8] sm:$0xff]  ;;  %v4655_v26 = vld [vmem:[%s7058_s20 + $0x1f8] sm:$0xff]  ;;  %v1631_v43 = vsel %vm1623_vm1, %v1618_v2, %v1627_v40 }
 0x5db   : > { %4442 = vmatpush.msrb.mxu1 %v4167_v60  ;;  %v4616_v60 = vld [vmem:[%s7058_s20 + $0xc0] sm:$0xff] }
 0x5dc   : > { %4517 = vmatpush.msra.mxu2 %v4456_v11  ;;  %4537 = vmatpush.msra.mxu3 %v4472_v46  ;;  %v4654_v11 = vld [vmem:[%s7058_s20 + $0x1f0] sm:$0xff]  ;;  %v4599_v46 = vld [vmem:[%s7058_s20 + $0x38] sm:$0xff] }
 0x5dd   : > { %4443 = vmatmul.f32.vlgmr.msrb.gmra.mxu1 %v1400_v27  ;;  %v4653_v27 = vld [vmem:[%s7058_s20 + $0x1e8] sm:$0xff] }
 0x5de   : > { %4571 = vmatpush.msra.mxu1 %v4510_v9  ;;  %4518 = vmatpush.msra.mxu2 %v4455_v19  ;;  %v1238_v9 = vld [vmem:[#allocation7] sm:$0x1]  ;;  %v4615_v19 = vld [vmem:[%s7058_s20 + $0xb8] sm:$0xff] }
 0x5df   : > { %4538 = vmatpush.msra.mxu3 %v4471_v54  ;;  %v4598_v54 = vld [vmem:[%s7058_s20 + $0x30] sm:$0xff]  ;;  %4739 = vperm.xlu1 %5156, %v1238_v9  }
 0x5e0   : > { %4572 = vmatpush.msra.mxu1 %v4509_v59  ;;  %4519 = vmatpush.msra.mxu2 %v4454_v55  ;;  %v4614_v59 = vld [vmem:[%s7058_s20 + $0xb0] sm:$0xff]  ;;  %v4652_v55 = vld [vmem:[%s7058_s20 + $0x1e0] sm:$0xff] }
 0x5e1   : > { %4539 = vmatpush.msra.mxu3 %v4470_v8  ;;  %v4597_v8 = vld [vmem:[%s7058_s20 + $0x28] sm:$0xff] }
 0x5e2   : > { %4573 = vmatpush.msra.mxu1 %v4508_v21  ;;  %4520 = vmatpush.msra.mxu2 %v4453_v33  ;;  %v4613_v21 = vld [vmem:[%s7058_s20 + $0xa8] sm:$0xff]  ;;  %v4651_v33 = vld [vmem:[%s7058_s20 + $0x1d8] sm:$0xff] }
 0x5e3   : > { %4540 = vmatpush.msra.mxu3 %v4469_v37  ;;  %v4596_v37 = vld [vmem:[%s7058_s20 + $0x20] sm:$0xff] }
 0x5e4   : > { %4574 = vmatpush.msra.mxu1 %v4507_v62  ;;  %4521 = vmatpush.msra.mxu2 %v4452_v16  ;;  %v4612_v62 = vld [vmem:[%s7058_s20 + $0xa0] sm:$0xff]  ;;  %v4650_v16 = vld [vmem:[%s7058_s20 + $0x1d0] sm:$0xff] }
 0x5e5   : > { %4541 = vmatpush.msra.mxu3 %v4468_v6  ;;  %v4595_v6 = vld [vmem:[%s7058_s20 + $0x18] sm:$0xff] }
 0x5e6   : > { %4575 = vmatpush.msra.mxu1 %v4506_v34  ;;  %4522 = vmatpush.msra.mxu2 %v4451_v15  ;;  %v4611_v34 = vld [vmem:[%s7058_s20 + $0x98] sm:$0xff]  ;;  %v4649_v15 = vld [vmem:[%s7058_s20 + $0x1c8] sm:$0xff] }
 0x5e7   : > { %4542 = vmatpush.msra.mxu3 %v4467_v0  ;;  %v4594_v0 = vld [vmem:[%s7058_s20 + $0x10] sm:$0xff] }
 0x5e8   : > { %4576 = vmatpush.msra.mxu1 %v4505_v18  ;;  %4523 = vmatpush.msra.mxu2 %v4450_v56  ;;  %v4610_v18 = vld [vmem:[%s7058_s20 + $0x90] sm:$0xff]  ;;  %v4648_v56 = vld [vmem:[%s7058_s20 + $0x1c0] sm:$0xff] }
 0x5e9   : > { %4543 = vmatpush.msra.mxu3 %v4466_v44  ;;  %v4593_v44 = vld [vmem:[%s7058_s20 + $0x8] sm:$0xff] }
 0x5ea   : > { %4577 = vmatpush.msra.mxu1 %v4504_v32  ;;  %4524 = vmatpush.msra.mxu2 %v4449_v10  ;;  %v7071_v32 = vld [vmem:[#allocation42_spill] sm:$0xff] }
 0x5eb   : > { %4544 = vmatpush.msra.mxu3 %v4465_v39  ;;  %v1748_v10 = vmul.f32 0.33, %v7071_v32  ;;  %v4609_v39 = vld [vmem:[%s7058_s20 + $0x88] sm:$0xff]  ;;  %vm1744_vm2 = vcmp.ge.f32.partialorder %v7071_v32, 0.0 }
 0x5ec   : > { %4578 = vmatpush.msra.mxu1 %v4503_v41  ;;  %4525 = vmatpush.msra.mxu2 %v4448_v24  ;;  %v7072_v41 = vld [vmem:[#allocation43_spill] sm:$0xff] }
 0x5ed   : > { %4545 = vmatpush.msra.mxu3 %v4464_v49  ;;  %v1749_v24 = vmul.f32 0.33, %v7072_v41  ;;  %vm1745_vm3 = vcmp.ge.f32.partialorder %v7072_v41, 0.0  ;;  %v4608_v49 = vld [vmem:[%s7058_s20 + $0x80] sm:$0xff]  ;;  %v1752_v47 = vsel %vm1744_vm2, %v7071_v32, %v1748_v10 }
 0x5ee   : > { %4579 = vmatpush.msra.mxu1 %v4502_v63  ;;  %4526 = vmatpush.msra.mxu2 %v4447_v42  ;;  %v4645_v42 = vld [vmem:[%s7058_s20 + $0x1a8] sm:$0xff] }
 0x5ef   : > { %4546 = vmatpush.msra.mxu3 %v4463_v22  ;;  %4527 = vmatmul.f32.vlgmr.msra.gmra.mxu2 %v1628_v20  ;;  %v1753_v63 = vsel %vm1745_vm3, %v7072_v41, %v1749_v24  ;;  %v4644_v22 = vld [vmem:[%s7058_s20 + $0x1a0] sm:$0xff]  ;;  %v4642_v20 = vld [vmem:[%s7058_s20 + $0x190] sm:$0xff] }
 0x5f0   : > { %4547 = vmatmul.f32.vlgmr.msra.gmra.mxu3 %v1629_v35  ;;  %4580 = vmatpush.msra.mxu1 %v4501_v53  ;;  %v4643_v53 = vld [vmem:[%s7058_s20 + $0x198] sm:$0xff] }
 0x5f1   : > { %4656 = vmatpush.msrb.mxu2 %v4607_v28  ;;  %4676 = vmatpush.msrb.mxu3 %v4623_v51  ;;  %v4641_v28 = vld [vmem:[%s7058_s20 + $0x188] sm:$0xff] }
 0x5f2   : > { %4581 = vmatpush.msra.mxu1 %v4500_v17  ;;  %v7073_v51 = vld [vmem:[#allocation44_spill] sm:$0xff]  ;;  %v4640_v17 = vld [vmem:[%s7058_s20 + $0x180] sm:$0xff] }
 0x5f3   : > { %4657 = vmatpush.msrb.mxu2 %v4606_v58  ;;  %4677 = vmatpush.msrb.mxu3 %v4622_v25  ;;  %v1751_v35 = vmul.f32 0.33, %v7073_v51  ;;  %vm1747_vm4 = vcmp.ge.f32.partialorder %v7073_v51, 0.0  ;;  %v3152_v25 = vpop.f32.mrf.mxu2 }
 0x5f4   : > { %4582 = vmatpush.msra.mxu1 %v4499_v61  ;;  %v3172_v61 = vpop.f32.mrf.mxu3 }
 0x5f5   : > { %4658 = vmatpush.msrb.mxu2 %v4605_v52  ;;  %4678 = vmatpush.msrb.mxu3 %v4621_v12  ;;  %v1755_v58 = vsel %vm1747_vm4, %v7073_v51, %v1751_v35 }
 0x5f6   : > { %4583 = vmatpush.msra.mxu1 %v4498_v1  ;;  %v3624_v1 = vpop.f32.mrf.mxu0 }
 0x5f7   : > { %4659 = vmatpush.msrb.mxu2 %v4604_v57  ;;  %4679 = vmatpush.msrb.mxu3 %v4620_v50  ;;  %v3644_v57 = vpop.f32.mrf.mxu1 }
 0x5f8   : > { %4584 = vmatpush.msra.mxu1 %v4497_v3 }
 0x5f9   : > { %4660 = vmatpush.msrb.mxu2 %v4603_v29  ;;  %4680 = vmatpush.msrb.mxu3 %v4619_v4 }
 0x5fa   : > { %4585 = vmatpush.msra.mxu1 %v4496_v13 }
 0x5fb   : > { %4661 = vmatpush.msrb.mxu2 %v4602_v31  ;;  %4681 = vmatpush.msrb.mxu3 %v4618_v5  ;;  %v3196_v52 = vpop.f32.mrf.mxu2 }
 0x5fc   : > { %4586 = vmatpush.msra.mxu1 %v4495_v45  ;;  %v3216_v12 = vpop.f32.mrf.mxu3 }
 0x5fd   : > { %4662 = vmatpush.msrb.mxu2 %v4601_v38  ;;  %4682 = vmatpush.msrb.mxu3 %v4617_v30 }
 0x5fe   : > { %4587 = vmatmul.f32.vlgmr.msra.gmra.mxu1 %v1631_v43  ;;  %v4264_v2 = vpop.f32.mrf.mxu0  ;;  %v3173_v43 = vadd.f32 %v3172_v61, %v3152_v25 }
 0x5ff   : > { %4716 = vmatpush.msrb.mxu1 %v4655_v26  ;;  %4663 = vmatpush.msrb.mxu2 %v4600_v7 }
 0x600   : > { %4683 = vmatpush.msrb.mxu3 %v4616_v60 }
 0x601   : > { %4717 = vmatpush.msrb.mxu1 %v4654_v11  ;;  %4664 = vmatpush.msrb.mxu2 %v4599_v46 }
 0x602   : > { %4684 = vmatpush.msrb.mxu3 %v4615_v19  ;;  %v3197_v19 = vadd.f32 %v3196_v52, %v3173_v43 }
 0x603   : > { %4718 = vmatpush.msrb.mxu1 %v4653_v27  ;;  %4665 = vmatpush.msrb.mxu2 %v4598_v54 }
 0x604   : > { %4685 = vmatpush.msrb.mxu3 %v4614_v59  ;;  %v3217_v59 = vadd.f32 %v3216_v12, %v3197_v19 }
 0x605   : > { %4719 = vmatpush.msrb.mxu1 %v4652_v55  ;;  %4666 = vmatpush.msrb.mxu2 %v4597_v8  ;;  %v3645_v55 = vadd.f32 %v3644_v57, %v3624_v1 }
 0x606   : > { %4686 = vmatpush.msrb.mxu3 %v4613_v21  ;;  %v4344_v5 = vpop.f32.mrf.mxu0 }
 0x607   : > { %4720 = vmatpush.msrb.mxu1 %v4651_v33  ;;  %4667 = vmatpush.msrb.mxu2 %v4596_v37 }
 0x608   : > { %4687 = vmatpush.msrb.mxu3 %v4612_v62 }
 0x609   : > { %4721 = vmatpush.msrb.mxu1 %v4650_v16  ;;  %4668 = vmatpush.msrb.mxu2 %v4595_v6  ;;  %v4080_v6 = vpop.permute.xlu0 %4079 }
 0x60a   : > { %4688 = vmatpush.msrb.mxu3 %v4611_v34  ;;  %v3647_v34 = vadd.f32 %v3645_v55, %v3217_v59 }
 0x60b   : > { %4722 = vmatpush.msrb.mxu1 %v4649_v15  ;;  %4669 = vmatpush.msrb.mxu2 %v4594_v0 }
 0x60c   : > { %4689 = vmatpush.msrb.mxu3 %v4610_v18 }
 0x60d   : > { %4723 = vmatpush.msrb.mxu1 %v4648_v56  ;;  %4670 = vmatpush.msrb.mxu2 %v4593_v44  ;;  %v4082_v44 = vperm.slane %v4080_v6, 0 }
 0x60e   : > { %4690 = vmatpush.msrb.mxu3 %v4609_v39  ;;  %v4424_v7 = vpop.f32.mrf.mxu0 }
 0x60f   : > { %4724 = vmatpush.msrb.mxu1 %v4647_v36  ;;  %4671 = vmatpush.msrb.mxu2 %v4592_v14  ;;  %v4053_v50 = vpop.f32.mrf.mxu2 }
 0x610   : > { %4691 = vmatpush.msrb.mxu3 %v4608_v49  ;;  %4672 = vmatmul.f32.vlgmr.msrb.gmra.mxu2 %v1752_v47  ;;  %v4073_v23 = vpop.f32.mrf.mxu3 }
 0x611   : > { %4692 = vmatmul.f32.vlgmr.msrb.gmra.mxu3 %v1753_v63  ;;  %4725 = vmatpush.msrb.mxu1 %v4646_v48  ;;  %v4074_v62 = vadd.f32 %v4073_v23, %v4053_v50 }
 0x613   : > { %4726 = vmatpush.msrb.mxu1 %v4645_v42  ;;  %v4076_v56 = vadd.f32 %v4074_v62, %v3647_v34 }
 0x615   : > { %4727 = vmatpush.msrb.mxu1 %v4644_v22  ;;  %v4083_v14 = vadd.f32 %v4082_v44, %v4076_v56 }
 0x616   : > { %v4568_v54 = vpop.f32.mrf.mxu0 }
 0x617   : > { %4728 = vmatpush.msrb.mxu1 %v4643_v53  ;;  %v4085_v42 = vmul.f32 0.33, %v4083_v14  ;;  %vm4084_vm5 = vcmp.ge.f32.partialorder %v4083_v14, 0.0 }
 0x618   : > { %v4284_v3 = vpop.f32.mrf.mxu1 }
 0x619   : > { %4729 = vmatpush.msrb.mxu1 %v4642_v20  ;;  %v4285_v13 = vadd.f32 %v4284_v3, %v4264_v2  ;;  %v4086_v20 = vsel %vm4084_vm5, %v4083_v14, %v4085_v42 }
 0x61b   : > { %4730 = vmatpush.msrb.mxu1 %v4641_v28 }
 0x61d   : > { %4731 = vmatpush.msrb.mxu1 %v4640_v17 }
 0x61e   : > { %4732 = vmatmul.f32.vlgmr.msrb.gmra.mxu1 %v1755_v58  ;;  %v4713_v10 = vpop.f32.mrf.mxu0 }
 0x630   : > { %v4304_v29 = vpop.f32.mrf.mxu2 }
 0x631   : > { %v4324_v4 = vpop.f32.mrf.mxu3  ;;  %v4305_v31 = vadd.f32 %v4304_v29, %v4285_v13 }
 0x633   : > { %v4325_v38 = vadd.f32 %v4324_v4, %v4305_v31 }
 0x635   : > { %v4345_v26 = vadd.f32 %v4344_v5, %v4325_v38 }
 0x639   : > { %v4364_v40 = vpop.f32.mrf.mxu1 }
 0x63a   : > { %v4365_v46 = vadd.f32 %v4364_v40, %v4345_v26 }
 0x651   : > { %v4384_v45 = vpop.f32.mrf.mxu2  ;;  %v4740_v39 = vpop.permute.xlu1 %4739 }
 0x652   : > { %v4404_v30 = vpop.f32.mrf.mxu3  ;;  %v4385_v27 = vadd.f32 %v4384_v45, %v4365_v46  ;;  %v4742_v47 = vperm.slane %v4740_v39, 0 }
 0x654   : > { %v4405_v8 = vadd.f32 %v4404_v30, %v4385_v27 }
 0x656   : > { %v4425_v15 = vadd.f32 %v4424_v7, %v4405_v8 }
 0x65a   : > { %v4444_v60 = vpop.f32.mrf.mxu1 }
 0x65b   : > { %v4445_v41 = vadd.f32 %v4444_v60, %v4425_v15 }
 0x672   : > { %v4528_v11 = vpop.f32.mrf.mxu2 }
 0x673   : > { %v4548_v9 = vpop.f32.mrf.mxu3 }
 0x674   : > { %v4549_v21 = vadd.f32 %v4548_v9, %v4528_v11 }
 0x676   : > { %v4569_v0 = vadd.f32 %v4568_v54, %v4549_v21 }
 0x67b   : > { %v4588_v33 = vpop.f32.mrf.mxu1 }
 0x67c   : > { %v4589_v32 = vadd.f32 %v4588_v33, %v4569_v0 }
 0x67e   : > { %v4591_v49 = vadd.f32 %v4589_v32, %v4445_v41 }
 0x693   : > { %v4673_v37 = vpop.f32.mrf.mxu2 }
 0x694   : > { %v4693_v16 = vpop.f32.mrf.mxu3 }
 0x695   : > { %v4694_v18 = vadd.f32 %v4693_v16, %v4673_v37 }
 0x697   : > { %v4714_v24 = vadd.f32 %v4713_v10, %v4694_v18 }
 0x69b   : > { %v4733_v36 = vpop.f32.mrf.mxu1 }
 0x69c   : > { %v4734_v48 = vadd.f32 %v4733_v36, %v4714_v24 }
 0x69e   : > { %v4736_v63 = vadd.f32 %v4734_v48, %v4591_v49 }
 0x6a0   : > { %v4743_v22 = vadd.f32 %v4742_v47, %v4736_v63 }
 0x6a2   : > { %vm4744_vm6 = vcmp.ge.f32.partialorder %v4743_v22, 0.0  ;;  %v4745_v53 = vmul.f32 0.33, %v4743_v22 }
 0x6a4   : > { %v4746_v28 = vsel %vm4744_vm6, %v4743_v22, %v4745_v53 }
 0x6a5   : > { %v4747_v51 = vadd.f32 %v4746_v28, %v4086_v20 }
 0x6a7   : > { %4749 = vst.msk [vmem:[%s1185_s3] sm:$0x1] %vm4748_vm7, %v4747_v51 }
 0x6a8   : > { %5185 = shalt.err (!%p5182_p7)
}
 0x6a9   : > { %4982 = dma.vmem_to_hbm [thread:$0]  (%p5438_p6), %s4762_s4, 16, %s4764_s7, %s4751_s0  }
 0x6aa PF: > { %s4775_s3 = sand.u32 1, %s5208_s29   ;;  %p4985_p10 = pnand %p4933_p9, %p5442_p8 }
 0x6ab   : > { %s4776_s1 = scalar_lea.sflag [#allocation13], %s4775_s3 }
 0x6ac   : > { %p4986_p11 = pneg %p4985_p10 }
 0x6ae   : > { %5203 = dma.done.wait (%p4986_p11), %s4776_s1, 16  }
 0x6af   : > { %5205 = vsyncadd (%p4986_p11), %s4776_s1, 4294967280  ;;  %p81_p12 = scmp.ge.s32.totalorder %s5420_s22, 4   ;;  %s7075_s29 = smov %s5212_s9 }
 0x6b0   : > { %s7076_s9 = smov %s5216_s15  ;;  %s7077_s15 = smov %s5432_s2 }
 0x6b1   : > { %s7078_s5 = smov %s5420_s22  ;;  %83 = sbr.rel (!%p81_p12) target bundleno = 58 (0x3a), region = 327 }
 0x6b6   :  { %4781 = vsyncpa [#allocation13], 1 }
 0x6b7   :  { %4783 = vsyncpa [#allocation13 + $0x1], 1 }

</bundles_post_ra>
